<compile_context>
chip_gen: v7x
topology: tpu7x:2x2x1
jax: 0.10.0
libtpu: 0.0.40
codegen_flags: <defaults>
</compile_context>

<pallas_src>
import numpy as np

import jax
import jax.numpy as jnp
from jax.experimental import pallas as pl
from jax.experimental.pallas import tpu as pltpu

_MIN_LANES = 8  # pad the network-input channel dim up to this many lanes


# ----------------------------------------------------------------------------
# Fused kernel: encoder (n conv3x3+BN+ReLU units) + decoder (fc1, fc2)
# ----------------------------------------------------------------------------
def _make_fused_kernel(n_conv):
    """Build the fused forward kernel for `n_conv` conv units.

    Per grid step (= one sample), refs are:
      refs[0]                   : x        (H0*W0, C0p)    f32
      refs[1 + 3*l + 0]         : sel_l    (9, M_l, M_l-1) bf16  0/1 tap selectors
      refs[1 + 3*l + 1]         : w_l      (9, Cin, Cout)  bf16  BN-folded tap weights
      refs[1 + 3*l + 2]         : b_l      (1, Cout)       f32   BN-folded bias
      refs[1 + 3*n_conv + 0..3] : w1rows (C4, H4*W4, pca) f32, b1 (1, pca) f32,
                                  w2 (pca, 3V) bf16,       b2 (1, 3V) f32
      refs[-1]                  : out      (1, 3V)         f32
    """

    def kernel(*refs):
        x_ref = refs[0]
        conv_refs = refs[1:1 + 3 * n_conv]
        w1rows_ref, b1_ref, w2_ref, b2_ref, o_ref = refs[1 + 3 * n_conv:]

        x_bf = x_ref[...].astype(jnp.bfloat16)
        x_f32 = None
        for l in range(n_conv):
            sel_ref = conv_refs[3 * l + 0]
            w_ref = conv_refs[3 * l + 1]
            b_ref = conv_refs[3 * l + 2]
            m_out = sel_ref.shape[1]
            cout = w_ref.shape[2]
            # f32 accumulator, bias broadcast over rows (BN folded into w/b at init).
            acc = jnp.zeros((m_out, cout), jnp.float32) + b_ref[...]
            for t in range(9):  # 3x3 taps, unrolled at trace time
                # Gather the tap's shifted/strided input rows (pad rows -> 0) on the MXU.
                g = jnp.dot(sel_ref[t], x_bf,
                            preferred_element_type=jnp.float32)
                acc = acc + jnp.dot(g.astype(jnp.bfloat16), w_ref[t],
                                    preferred_element_type=jnp.float32)
            x_f32 = jnp.maximum(acc, 0.0)          # ReLU
            x_bf = x_f32.astype(jnp.bfloat16)      # operands for the next layer

        # Decoder.  Dropout(p=0.2) is the identity at inference.
        # TODO(synk): training-mode dropout (random mask) not implemented.
        c4 = w1rows_ref.shape[0]
        pca = w1rows_ref.shape[2]
        # fc1 with the PyTorch NCHW-flatten permutation folded into w1rows at init:
        #   out1[p] = sum_{m,c} x[m, c] * w1rows[c, m, p]
        q = jnp.zeros((x_f32.shape[0], pca), jnp.float32)
        for c in range(c4):
            q = q + x_f32[:, c:c + 1] * w1rows_ref[c]
        h1 = jnp.sum(q, axis=0, keepdims=True) + b1_ref[...]          # (1, pca)
        out = jnp.dot(h1.astype(jnp.bfloat16), w2_ref[...],
                      preferred_element_type=jnp.float32) + b2_ref[...]
        o_ref[...] = out.astype(o_ref.dtype)

    return kernel


# ----------------------------------------------------------------------------
# Per-tap selector construction (encodes pad=1, 3x3 shift and the conv stride)
# ----------------------------------------------------------------------------
def _build_tap_selectors(h, w, stride):
    ho = (h - 1) // stride + 1
    wo = (w - 1) // stride + 1
    sel = np.zeros((9, ho * wo, h * w), np.float32)
    for kh in range(3):
        for kw in range(3):
            t = kh * 3 + kw
            for oh in range(ho):
                ih = stride * oh + kh - 1
                if not (0 <= ih < h):
                    continue
                for ow in range(wo):
                    iw = stride * ow + kw - 1
                    if not (0 <= iw < w):
                        continue
                    sel[t, oh * wo + ow, ih * w + iw] = 1.0
    return sel, ho, wo


# ----------------------------------------------------------------------------
# Deterministic parameter construction (synthetic, matches module shapes)
# ----------------------------------------------------------------------------
def init_params(key, channels, pca_size, in_channels, in_size, vertices):
    eps = 1e-5
    conv_kernel = []   # kernel-side (selectors, bf16 tap weights, f32 bias)
    conv_ref = []      # reference-side (folded HWIO weight, bias, stride)
    h, w = in_size
    cin = in_channels
    first = True
    for stage in channels:
        for j, cout in enumerate(stage):
            stride = 2 if j == 0 else 1
            key, k1, k2, k3, k4 = jax.random.split(key, 5)
            fan_in = 9 * cin
            bound = float((6.0 / fan_in) ** 0.5)  # kaiming-uniform style
            wgt = jax.random.uniform(k1, (3, 3, cin, cout), jnp.float32, -bound, bound)
            # Inference-mode BatchNorm, folded into the conv weights/bias.
            gamma = 1.0 + 0.1 * jax.random.normal(k2, (cout,), jnp.float32)
            beta = 0.1 * jax.random.normal(k3, (cout,), jnp.float32)
            rmean = 0.05 * jax.random.normal(k4, (cout,), jnp.float32)
            rvar = jnp.ones((cout,), jnp.float32)
            scale = gamma / jnp.sqrt(rvar + eps)
            w_fold = wgt * scale                        # (3, 3, cin, cout)
            b_fold = beta - rmean * scale               # (cout,)
            conv_ref.append((w_fold, b_fold, stride))

            cin_eff = max(cin, _MIN_LANES) if first else cin
            sel, ho, wo = _build_tap_selectors(h, w, stride)
            taps = []
            for kh in range(3):
                for kw in range(3):
                    tap = w_fold[kh, kw]                # (cin, cout)
                    if cin_eff > cin:
                        tap = jnp.pad(tap, ((0, cin_eff - cin), (0, 0)))
                    taps.append(tap)
            conv_kernel.append(dict(
                sel=jnp.asarray(sel, jnp.bfloat16),                   # (9, Ho*Wo, H*W)
                w=jnp.stack(taps, 0).astype(jnp.bfloat16),            # (9, cin_eff, cout)
                b=b_fold.reshape(1, cout).astype(jnp.float32),
            ))
            h, w, cin, first = ho, wo, cout, False

    # Decoder: fc1 (C*H4*W4 -> pca), fc2 (pca -> 3*vertices).
    in_feat = cin * h * w
    key, k1, k2 = jax.random.split(key, 3)
    bnd = float(1.0 / (in_feat ** 0.5))
    w1t = jax.random.uniform(k1, (in_feat, pca_size), jnp.float32, -bnd, bnd)
    b1 = jax.random.uniform(k2, (pca_size,), jnp.float32, -bnd, bnd)
    key, k1, k2 = jax.random.split(key, 3)
    bnd = float(1.0 / (pca_size ** 0.5))
    w2 = jax.random.uniform(k1, (pca_size, 3 * vertices), jnp.float32, -bnd, bnd)
    b2 = jax.random.uniform(k2, (3 * vertices,), jnp.float32, -bnd, bnd)

    fc_kernel = dict(
        # w1t row index is c*H4*W4 + h*W4 + w (PyTorch NCHW flatten); splitting it into
        # (c, m) here absorbs the flatten permutation into the weights.
        w1rows=w1t.reshape(cin, h * w, pca_size).astype(jnp.float32),  # (C4, H4*W4, pca)
        b1=b1.reshape(1, pca_size).astype(jnp.float32),
        w2=w2.astype(jnp.bfloat16),
        b2=b2.reshape(1, 3 * vertices).astype(jnp.float32),
    )
    kparams = dict(conv=conv_kernel, fc=fc_kernel)
    rparams = dict(conv=conv_ref, fc=(w1t, b1, w2, b2))
    return kparams, rparams


# ----------------------------------------------------------------------------
# Forward pass: one fused pallas_call over grid=(batch,)
# ----------------------------------------------------------------------------
def _const_index_map(ndim):
    return lambda i: (0,) * ndim


def pfpcnet_forward(x_nchw, kparams):
    n, c_in, h, w = x_nchw.shape
    hw0 = h * w
    c0p = kparams["conv"][0]["w"].shape[1]  # padded in-channels of layer 1

    # NCHW -> NHWC -> (rows = b,h,w ; lanes = channels), zero-pad channels to c0p lanes.
    x = jnp.transpose(x_nchw, (0, 2, 3, 1)).reshape(n * hw0, c_in).astype(jnp.float32)
    if c_in < c0p:
        x = jnp.pad(x, ((0, 0), (0, c0p - c_in)))

    conv = kparams["conv"]
    fc = kparams["fc"]
    out_dim = fc["b2"].shape[1]
    vertices = out_dim // 3

    operands = [x]
    in_specs = [pl.BlockSpec((hw0, c0p), lambda i: (i, 0))]
    flops = 0
    for layer in conv:
        for name in ("sel", "w", "b"):
            arr = layer[name]
            operands.append(arr)
            in_specs.append(pl.BlockSpec(arr.shape, _const_index_map(arr.ndim)))
        _, mo, mi = layer["sel"].shape
        _, ci, co = layer["w"].shape
        flops += 2 * 9 * (mo * mi * ci + mo * ci * co)
    for name in ("w1rows", "b1", "w2", "b2"):
        arr = fc[name]
        operands.append(arr)
        in_specs.append(pl.BlockSpec(arr.shape, _const_index_map(arr.ndim)))
    c4, hw4, pca = fc["w1rows"].shape
    flops += 2 * (hw4 * c4 * pca + pca * out_dim)
    flops *= n
    bytes_accessed = int(sum(int(np.prod(a.shape)) * a.dtype.itemsize for a in operands)
                         + n * out_dim * 4)

    out = pl.pallas_call(
        _make_fused_kernel(len(conv)),
        out_shape=jax.ShapeDtypeStruct((n, 1, out_dim), jnp.float32),
        grid=(n,),
        in_specs=in_specs,
        out_specs=pl.BlockSpec((None, 1, out_dim), lambda i: (i, 0, 0)),
        compiler_params=pltpu.CompilerParams(dimension_semantics=("parallel",)),
        cost_estimate=pl.CostEstimate(flops=flops, transcendentals=0,
                                      bytes_accessed=bytes_accessed),
    )(*operands)
    return out.reshape(n, vertices, 3)


# ----------------------------------------------------------------------------
# Pure-JAX f32 reference (matches the PyTorch module semantics)
# ----------------------------------------------------------------------------
def reference_forward(x_nchw, rparams, vertices):
    x = jnp.transpose(x_nchw, (0, 2, 3, 1)).astype(jnp.float32)
    for w_fold, b_fold, stride in rparams["conv"]:
        x = jax.lax.conv_general_dilated(
            x, w_fold, window_strides=(stride, stride), padding=((1, 1), (1, 1)),
            dimension_numbers=("NHWC", "HWIO", "NHWC"))
        x = jnp.maximum(x + b_fold, 0.0)
    n, h, w, c = x.shape
    z = jnp.transpose(x, (0, 3, 1, 2)).reshape(n, c * h * w)   # PyTorch x.view(B, -1)
    w1t, b1, w2, b2 = rparams["fc"]
    z = z @ w1t + b1      # dropout = identity at inference
    z = z @ w2 + b2
    return z.reshape(n, vertices, 3)


if __name__ == "__main__":
    # Small config consistent with the module: each stage starts with a stride-2 conv,
    # and fc1 expects a 5x4 final feature map -> in_size (20, 16) with 2 stages.
    channels = [[4, 4], [8, 8]]
    pca_size = 16
    vertices = 10
    in_channels = 1
    in_size = (20, 16)  # 20->10->5, 16->8->4  =>  fc1 in_features = 8*5*4 = 160
    batch = 2

    key = jax.random.PRNGKey(0)
    kx, kp = jax.random.split(key)
    x = jax.random.normal(kx, (batch, in_channels, in_size[0], in_size[1]), jnp.float32)
    kparams, rparams = init_params(kp, channels, pca_size, in_channels, in_size, vertices)

    out = jax.block_until_ready(pfpcnet_forward(x, kparams))
    ref = jax.block_until_ready(reference_forward(x, rparams, vertices))

    assert out.shape == (batch, vertices, 3), out.shape
    assert bool(jnp.all(jnp.isfinite(out)))
    # bf16 operands / f32 accumulation vs. f32 reference -> small drift only.
    assert bool(jnp.allclose(out, ref, rtol=5e-2, atol=5e-2)), \
        float(jnp.max(jnp.abs(out - ref)))
    print("KERNEL_OK")
</pallas_src>

<mosaic_0001>
module attributes {stable_mosaic.version = 11 : i64} {
  func.func @kernel(%arg0: i32, %arg1: memref<320x8xf32, #tpu.memory_space<vmem>>, %arg2: memref<9x80x320xbf16, #tpu.memory_space<vmem>>, %arg3: memref<9x8x4xbf16, #tpu.memory_space<vmem>>, %arg4: memref<1x4xf32, #tpu.memory_space<vmem>>, %arg5: memref<9x80x80xbf16, #tpu.memory_space<vmem>>, %arg6: memref<9x4x4xbf16, #tpu.memory_space<vmem>>, %arg7: memref<1x4xf32, #tpu.memory_space<vmem>>, %arg8: memref<9x20x80xbf16, #tpu.memory_space<vmem>>, %arg9: memref<9x4x8xbf16, #tpu.memory_space<vmem>>, %arg10: memref<1x8xf32, #tpu.memory_space<vmem>>, %arg11: memref<9x20x20xbf16, #tpu.memory_space<vmem>>, %arg12: memref<9x8x8xbf16, #tpu.memory_space<vmem>>, %arg13: memref<1x8xf32, #tpu.memory_space<vmem>>, %arg14: memref<8x20x16xf32, #tpu.memory_space<vmem>>, %arg15: memref<1x16xf32, #tpu.memory_space<vmem>>, %arg16: memref<16x30xbf16, #tpu.memory_space<vmem>>, %arg17: memref<1x30xf32, #tpu.memory_space<vmem>>, %arg18: memref<1x1x30xf32, #tpu.memory_space<vmem>>) attributes {dimension_semantics = [#tpu.dimension_semantics<parallel>], iteration_bounds = array<i64: 2>, scalar_prefetch = 0 : i64, scratch_operands = 0 : i64, tpu.core_type = #tpu.core_type<tc>, window_params = [{transform_indices = @transform_0, window_bounds = array<i64: 320, 8>}, {pipeline_mode = #tpu.pipeline_mode<synchronous>, transform_indices = @transform_1, window_bounds = array<i64: 9, 80, 320>}, {pipeline_mode = #tpu.pipeline_mode<synchronous>, transform_indices = @transform_2, window_bounds = array<i64: 9, 8, 4>}, {pipeline_mode = #tpu.pipeline_mode<synchronous>, transform_indices = @transform_3, window_bounds = array<i64: 1, 4>}, {pipeline_mode = #tpu.pipeline_mode<synchronous>, transform_indices = @transform_4, window_bounds = array<i64: 9, 80, 80>}, {pipeline_mode = #tpu.pipeline_mode<synchronous>, transform_indices = @transform_5, window_bounds = array<i64: 9, 4, 4>}, {pipeline_mode = #tpu.pipeline_mode<synchronous>, transform_indices = @transform_6, window_bounds = array<i64: 1, 4>}, {pipeline_mode = #tpu.pipeline_mode<synchronous>, transform_indices = @transform_7, window_bounds = array<i64: 9, 20, 80>}, {pipeline_mode = #tpu.pipeline_mode<synchronous>, transform_indices = @transform_8, window_bounds = array<i64: 9, 4, 8>}, {pipeline_mode = #tpu.pipeline_mode<synchronous>, transform_indices = @transform_9, window_bounds = array<i64: 1, 8>}, {pipeline_mode = #tpu.pipeline_mode<synchronous>, transform_indices = @transform_10, window_bounds = array<i64: 9, 20, 20>}, {pipeline_mode = #tpu.pipeline_mode<synchronous>, transform_indices = @transform_11, window_bounds = array<i64: 9, 8, 8>}, {pipeline_mode = #tpu.pipeline_mode<synchronous>, transform_indices = @transform_12, window_bounds = array<i64: 1, 8>}, {pipeline_mode = #tpu.pipeline_mode<synchronous>, transform_indices = @transform_13, window_bounds = array<i64: 8, 20, 16>}, {pipeline_mode = #tpu.pipeline_mode<synchronous>, transform_indices = @transform_14, window_bounds = array<i64: 1, 16>}, {pipeline_mode = #tpu.pipeline_mode<synchronous>, transform_indices = @transform_15, window_bounds = array<i64: 16, 30>}, {pipeline_mode = #tpu.pipeline_mode<synchronous>, transform_indices = @transform_16, window_bounds = array<i64: 1, 30>}, {transform_indices = @transform_17, window_bounds = array<i64: 1, 1, 30>}]} {
    %c0 = arith.constant 0 : index
    %c0_0 = arith.constant 0 : index
    %0 = vector.load %arg1[%c0, %c0_0] : memref<320x8xf32, #tpu.memory_space<vmem>>, vector<320x8xf32>
    %1 = arith.truncf %0 : vector<320x8xf32> to vector<320x8xbf16>
    %cst = arith.constant 0.000000e+00 : f32
    %2 = vector.broadcast %cst : f32 to vector<80x4xf32>
    %c0_1 = arith.constant 0 : index
    %c0_2 = arith.constant 0 : index
    %3 = vector.load %arg4[%c0_1, %c0_2] : memref<1x4xf32, #tpu.memory_space<vmem>>, vector<1x4xf32>
    %4 = vector.broadcast %3 : vector<1x4xf32> to vector<80x4xf32>
    %5 = arith.addf %2, %4 : vector<80x4xf32>
    %c0_3 = arith.constant 0 : index
    %c0_4 = arith.constant 0 : index
    %c0_5 = arith.constant 0 : index
    %6 = vector.load %arg2[%c0_3, %c0_4, %c0_5] : memref<9x80x320xbf16, #tpu.memory_space<vmem>>, vector<1x80x320xbf16>
    %7 = vector.shape_cast %6 : vector<1x80x320xbf16> to vector<80x320xbf16>
    %cst_6 = arith.constant dense<0.000000e+00> : vector<80x8xf32>
    %8 = tpu.matmul %7, %1, %cst_6 {dimension_numbers = #tpu.dot_dimension_numbers<[1], [0], [0], [1], [0, 0, 1, 1], [], []>} : vector<80x320xbf16>, vector<320x8xbf16>, vector<80x8xf32> -> vector<80x8xf32>
    %9 = arith.truncf %8 : vector<80x8xf32> to vector<80x8xbf16>
    %c0_7 = arith.constant 0 : index
    %c0_8 = arith.constant 0 : index
    %c0_9 = arith.constant 0 : index
    %10 = vector.load %arg3[%c0_7, %c0_8, %c0_9] : memref<9x8x4xbf16, #tpu.memory_space<vmem>>, vector<1x8x4xbf16>
    %11 = vector.shape_cast %10 : vector<1x8x4xbf16> to vector<8x4xbf16>
    %cst_10 = arith.constant dense<0.000000e+00> : vector<80x4xf32>
    %12 = tpu.matmul %9, %11, %cst_10 {dimension_numbers = #tpu.dot_dimension_numbers<[1], [0], [0], [1], [0, 0, 1, 1], [], []>} : vector<80x8xbf16>, vector<8x4xbf16>, vector<80x4xf32> -> vector<80x4xf32>
    %13 = arith.addf %5, %12 : vector<80x4xf32>
    %c1 = arith.constant 1 : index
    %c0_11 = arith.constant 0 : index
    %c0_12 = arith.constant 0 : index
    %14 = vector.load %arg2[%c1, %c0_11, %c0_12] : memref<9x80x320xbf16, #tpu.memory_space<vmem>>, vector<1x80x320xbf16>
    %15 = vector.shape_cast %14 : vector<1x80x320xbf16> to vector<80x320xbf16>
    %cst_13 = arith.constant dense<0.000000e+00> : vector<80x8xf32>
    %16 = tpu.matmul %15, %1, %cst_13 {dimension_numbers = #tpu.dot_dimension_numbers<[1], [0], [0], [1], [0, 0, 1, 1], [], []>} : vector<80x320xbf16>, vector<320x8xbf16>, vector<80x8xf32> -> vector<80x8xf32>
    %17 = arith.truncf %16 : vector<80x8xf32> to vector<80x8xbf16>
    %c1_14 = arith.constant 1 : index
    %c0_15 = arith.constant 0 : index
    %c0_16 = arith.constant 0 : index
    %18 = vector.load %arg3[%c1_14, %c0_15, %c0_16] : memref<9x8x4xbf16, #tpu.memory_space<vmem>>, vector<1x8x4xbf16>
    %19 = vector.shape_cast %18 : vector<1x8x4xbf16> to vector<8x4xbf16>
    %cst_17 = arith.constant dense<0.000000e+00> : vector<80x4xf32>
    %20 = tpu.matmul %17, %19, %cst_17 {dimension_numbers = #tpu.dot_dimension_numbers<[1], [0], [0], [1], [0, 0, 1, 1], [], []>} : vector<80x8xbf16>, vector<8x4xbf16>, vector<80x4xf32> -> vector<80x4xf32>
    %21 = arith.addf %13, %20 : vector<80x4xf32>
    %c2 = arith.constant 2 : index
    %c0_18 = arith.constant 0 : index
    %c0_19 = arith.constant 0 : index
    %22 = vector.load %arg2[%c2, %c0_18, %c0_19] : memref<9x80x320xbf16, #tpu.memory_space<vmem>>, vector<1x80x320xbf16>
    %23 = vector.shape_cast %22 : vector<1x80x320xbf16> to vector<80x320xbf16>
    %cst_20 = arith.constant dense<0.000000e+00> : vector<80x8xf32>
    %24 = tpu.matmul %23, %1, %cst_20 {dimension_numbers = #tpu.dot_dimension_numbers<[1], [0], [0], [1], [0, 0, 1, 1], [], []>} : vector<80x320xbf16>, vector<320x8xbf16>, vector<80x8xf32> -> vector<80x8xf32>
    %25 = arith.truncf %24 : vector<80x8xf32> to vector<80x8xbf16>
    %c2_21 = arith.constant 2 : index
    %c0_22 = arith.constant 0 : index
    %c0_23 = arith.constant 0 : index
    %26 = vector.load %arg3[%c2_21, %c0_22, %c0_23] : memref<9x8x4xbf16, #tpu.memory_space<vmem>>, vector<1x8x4xbf16>
    %27 = vector.shape_cast %26 : vector<1x8x4xbf16> to vector<8x4xbf16>
    %cst_24 = arith.constant dense<0.000000e+00> : vector<80x4xf32>
    %28 = tpu.matmul %25, %27, %cst_24 {dimension_numbers = #tpu.dot_dimension_numbers<[1], [0], [0], [1], [0, 0, 1, 1], [], []>} : vector<80x8xbf16>, vector<8x4xbf16>, vector<80x4xf32> -> vector<80x4xf32>
    %29 = arith.addf %21, %28 : vector<80x4xf32>
    %c3 = arith.constant 3 : index
    %c0_25 = arith.constant 0 : index
    %c0_26 = arith.constant 0 : index
    %30 = vector.load %arg2[%c3, %c0_25, %c0_26] : memref<9x80x320xbf16, #tpu.memory_space<vmem>>, vector<1x80x320xbf16>
    %31 = vector.shape_cast %30 : vector<1x80x320xbf16> to vector<80x320xbf16>
    %cst_27 = arith.constant dense<0.000000e+00> : vector<80x8xf32>
    %32 = tpu.matmul %31, %1, %cst_27 {dimension_numbers = #tpu.dot_dimension_numbers<[1], [0], [0], [1], [0, 0, 1, 1], [], []>} : vector<80x320xbf16>, vector<320x8xbf16>, vector<80x8xf32> -> vector<80x8xf32>
    %33 = arith.truncf %32 : vector<80x8xf32> to vector<80x8xbf16>
    %c3_28 = arith.constant 3 : index
    %c0_29 = arith.constant 0 : index
    %c0_30 = arith.constant 0 : index
    %34 = vector.load %arg3[%c3_28, %c0_29, %c0_30] : memref<9x8x4xbf16, #tpu.memory_space<vmem>>, vector<1x8x4xbf16>
    %35 = vector.shape_cast %34 : vector<1x8x4xbf16> to vector<8x4xbf16>
    %cst_31 = arith.constant dense<0.000000e+00> : vector<80x4xf32>
    %36 = tpu.matmul %33, %35, %cst_31 {dimension_numbers = #tpu.dot_dimension_numbers<[1], [0], [0], [1], [0, 0, 1, 1], [], []>} : vector<80x8xbf16>, vector<8x4xbf16>, vector<80x4xf32> -> vector<80x4xf32>
    %37 = arith.addf %29, %36 : vector<80x4xf32>
    %c4 = arith.constant 4 : index
    %c0_32 = arith.constant 0 : index
    %c0_33 = arith.constant 0 : index
    %38 = vector.load %arg2[%c4, %c0_32, %c0_33] : memref<9x80x320xbf16, #tpu.memory_space<vmem>>, vector<1x80x320xbf16>
    %39 = vector.shape_cast %38 : vector<1x80x320xbf16> to vector<80x320xbf16>
    %cst_34 = arith.constant dense<0.000000e+00> : vector<80x8xf32>
    %40 = tpu.matmul %39, %1, %cst_34 {dimension_numbers = #tpu.dot_dimension_numbers<[1], [0], [0], [1], [0, 0, 1, 1], [], []>} : vector<80x320xbf16>, vector<320x8xbf16>, vector<80x8xf32> -> vector<80x8xf32>
    %41 = arith.truncf %40 : vector<80x8xf32> to vector<80x8xbf16>
    %c4_35 = arith.constant 4 : index
    %c0_36 = arith.constant 0 : index
    %c0_37 = arith.constant 0 : index
    %42 = vector.load %arg3[%c4_35, %c0_36, %c0_37] : memref<9x8x4xbf16, #tpu.memory_space<vmem>>, vector<1x8x4xbf16>
    %43 = vector.shape_cast %42 : vector<1x8x4xbf16> to vector<8x4xbf16>
    %cst_38 = arith.constant dense<0.000000e+00> : vector<80x4xf32>
    %44 = tpu.matmul %41, %43, %cst_38 {dimension_numbers = #tpu.dot_dimension_numbers<[1], [0], [0], [1], [0, 0, 1, 1], [], []>} : vector<80x8xbf16>, vector<8x4xbf16>, vector<80x4xf32> -> vector<80x4xf32>
    %45 = arith.addf %37, %44 : vector<80x4xf32>
    %c5 = arith.constant 5 : index
    %c0_39 = arith.constant 0 : index
    %c0_40 = arith.constant 0 : index
    %46 = vector.load %arg2[%c5, %c0_39, %c0_40] : memref<9x80x320xbf16, #tpu.memory_space<vmem>>, vector<1x80x320xbf16>
    %47 = vector.shape_cast %46 : vector<1x80x320xbf16> to vector<80x320xbf16>
    %cst_41 = arith.constant dense<0.000000e+00> : vector<80x8xf32>
    %48 = tpu.matmul %47, %1, %cst_41 {dimension_numbers = #tpu.dot_dimension_numbers<[1], [0], [0], [1], [0, 0, 1, 1], [], []>} : vector<80x320xbf16>, vector<320x8xbf16>, vector<80x8xf32> -> vector<80x8xf32>
    %49 = arith.truncf %48 : vector<80x8xf32> to vector<80x8xbf16>
    %c5_42 = arith.constant 5 : index
    %c0_43 = arith.constant 0 : index
    %c0_44 = arith.constant 0 : index
    %50 = vector.load %arg3[%c5_42, %c0_43, %c0_44] : memref<9x8x4xbf16, #tpu.memory_space<vmem>>, vector<1x8x4xbf16>
    %51 = vector.shape_cast %50 : vector<1x8x4xbf16> to vector<8x4xbf16>
    %cst_45 = arith.constant dense<0.000000e+00> : vector<80x4xf32>
    %52 = tpu.matmul %49, %51, %cst_45 {dimension_numbers = #tpu.dot_dimension_numbers<[1], [0], [0], [1], [0, 0, 1, 1], [], []>} : vector<80x8xbf16>, vector<8x4xbf16>, vector<80x4xf32> -> vector<80x4xf32>
    %53 = arith.addf %45, %52 : vector<80x4xf32>
    %c6 = arith.constant 6 : index
    %c0_46 = arith.constant 0 : index
    %c0_47 = arith.constant 0 : index
    %54 = vector.load %arg2[%c6, %c0_46, %c0_47] : memref<9x80x320xbf16, #tpu.memory_space<vmem>>, vector<1x80x320xbf16>
    %55 = vector.shape_cast %54 : vector<1x80x320xbf16> to vector<80x320xbf16>
    %cst_48 = arith.constant dense<0.000000e+00> : vector<80x8xf32>
    %56 = tpu.matmul %55, %1, %cst_48 {dimension_numbers = #tpu.dot_dimension_numbers<[1], [0], [0], [1], [0, 0, 1, 1], [], []>} : vector<80x320xbf16>, vector<320x8xbf16>, vector<80x8xf32> -> vector<80x8xf32>
    %57 = arith.truncf %56 : vector<80x8xf32> to vector<80x8xbf16>
    %c6_49 = arith.constant 6 : index
    %c0_50 = arith.constant 0 : index
    %c0_51 = arith.constant 0 : index
    %58 = vector.load %arg3[%c6_49, %c0_50, %c0_51] : memref<9x8x4xbf16, #tpu.memory_space<vmem>>, vector<1x8x4xbf16>
    %59 = vector.shape_cast %58 : vector<1x8x4xbf16> to vector<8x4xbf16>
    %cst_52 = arith.constant dense<0.000000e+00> : vector<80x4xf32>
    %60 = tpu.matmul %57, %59, %cst_52 {dimension_numbers = #tpu.dot_dimension_numbers<[1], [0], [0], [1], [0, 0, 1, 1], [], []>} : vector<80x8xbf16>, vector<8x4xbf16>, vector<80x4xf32> -> vector<80x4xf32>
    %61 = arith.addf %53, %60 : vector<80x4xf32>
    %c7 = arith.constant 7 : index
    %c0_53 = arith.constant 0 : index
    %c0_54 = arith.constant 0 : index
    %62 = vector.load %arg2[%c7, %c0_53, %c0_54] : memref<9x80x320xbf16, #tpu.memory_space<vmem>>, vector<1x80x320xbf16>
    %63 = vector.shape_cast %62 : vector<1x80x320xbf16> to vector<80x320xbf16>
    %cst_55 = arith.constant dense<0.000000e+00> : vector<80x8xf32>
    %64 = tpu.matmul %63, %1, %cst_55 {dimension_numbers = #tpu.dot_dimension_numbers<[1], [0], [0], [1], [0, 0, 1, 1], [], []>} : vector<80x320xbf16>, vector<320x8xbf16>, vector<80x8xf32> -> vector<80x8xf32>
    %65 = arith.truncf %64 : vector<80x8xf32> to vector<80x8xbf16>
    %c7_56 = arith.constant 7 : index
    %c0_57 = arith.constant 0 : index
    %c0_58 = arith.constant 0 : index
    %66 = vector.load %arg3[%c7_56, %c0_57, %c0_58] : memref<9x8x4xbf16, #tpu.memory_space<vmem>>, vector<1x8x4xbf16>
    %67 = vector.shape_cast %66 : vector<1x8x4xbf16> to vector<8x4xbf16>
    %cst_59 = arith.constant dense<0.000000e+00> : vector<80x4xf32>
    %68 = tpu.matmul %65, %67, %cst_59 {dimension_numbers = #tpu.dot_dimension_numbers<[1], [0], [0], [1], [0, 0, 1, 1], [], []>} : vector<80x8xbf16>, vector<8x4xbf16>, vector<80x4xf32> -> vector<80x4xf32>
    %69 = arith.addf %61, %68 : vector<80x4xf32>
    %c8 = arith.constant 8 : index
    %c0_60 = arith.constant 0 : index
    %c0_61 = arith.constant 0 : index
    %70 = vector.load %arg2[%c8, %c0_60, %c0_61] : memref<9x80x320xbf16, #tpu.memory_space<vmem>>, vector<1x80x320xbf16>
    %71 = vector.shape_cast %70 : vector<1x80x320xbf16> to vector<80x320xbf16>
    %cst_62 = arith.constant dense<0.000000e+00> : vector<80x8xf32>
    %72 = tpu.matmul %71, %1, %cst_62 {dimension_numbers = #tpu.dot_dimension_numbers<[1], [0], [0], [1], [0, 0, 1, 1], [], []>} : vector<80x320xbf16>, vector<320x8xbf16>, vector<80x8xf32> -> vector<80x8xf32>
    %73 = arith.truncf %72 : vector<80x8xf32> to vector<80x8xbf16>
    %c8_63 = arith.constant 8 : index
    %c0_64 = arith.constant 0 : index
    %c0_65 = arith.constant 0 : index
    %74 = vector.load %arg3[%c8_63, %c0_64, %c0_65] : memref<9x8x4xbf16, #tpu.memory_space<vmem>>, vector<1x8x4xbf16>
    %75 = vector.shape_cast %74 : vector<1x8x4xbf16> to vector<8x4xbf16>
    %cst_66 = arith.constant dense<0.000000e+00> : vector<80x4xf32>
    %76 = tpu.matmul %73, %75, %cst_66 {dimension_numbers = #tpu.dot_dimension_numbers<[1], [0], [0], [1], [0, 0, 1, 1], [], []>} : vector<80x8xbf16>, vector<8x4xbf16>, vector<80x4xf32> -> vector<80x4xf32>
    %77 = arith.addf %69, %76 : vector<80x4xf32>
    %cst_67 = arith.constant 0.000000e+00 : f32
    %78 = vector.broadcast %cst_67 : f32 to vector<80x4xf32>
    %79 = arith.maximumf %77, %78 : vector<80x4xf32>
    %80 = arith.truncf %79 : vector<80x4xf32> to vector<80x4xbf16>
    %cst_68 = arith.constant 0.000000e+00 : f32
    %81 = vector.broadcast %cst_68 : f32 to vector<80x4xf32>
    %c0_69 = arith.constant 0 : index
    %c0_70 = arith.constant 0 : index
    %82 = vector.load %arg7[%c0_69, %c0_70] : memref<1x4xf32, #tpu.memory_space<vmem>>, vector<1x4xf32>
    %83 = vector.broadcast %82 : vector<1x4xf32> to vector<80x4xf32>
    %84 = arith.addf %81, %83 : vector<80x4xf32>
    %c0_71 = arith.constant 0 : index
    %c0_72 = arith.constant 0 : index
    %c0_73 = arith.constant 0 : index
    %85 = vector.load %arg5[%c0_71, %c0_72, %c0_73] : memref<9x80x80xbf16, #tpu.memory_space<vmem>>, vector<1x80x80xbf16>
    %86 = vector.shape_cast %85 : vector<1x80x80xbf16> to vector<80x80xbf16>
    %cst_74 = arith.constant dense<0.000000e+00> : vector<80x4xf32>
    %87 = tpu.matmul %86, %80, %cst_74 {dimension_numbers = #tpu.dot_dimension_numbers<[1], [0], [0], [1], [0, 0, 1, 1], [], []>} : vector<80x80xbf16>, vector<80x4xbf16>, vector<80x4xf32> -> vector<80x4xf32>
    %88 = arith.truncf %87 : vector<80x4xf32> to vector<80x4xbf16>
    %c0_75 = arith.constant 0 : index
    %c0_76 = arith.constant 0 : index
    %c0_77 = arith.constant 0 : index
    %89 = vector.load %arg6[%c0_75, %c0_76, %c0_77] : memref<9x4x4xbf16, #tpu.memory_space<vmem>>, vector<1x4x4xbf16>
    %90 = vector.shape_cast %89 : vector<1x4x4xbf16> to vector<4x4xbf16>
    %cst_78 = arith.constant dense<0.000000e+00> : vector<80x4xf32>
    %91 = tpu.matmul %88, %90, %cst_78 {dimension_numbers = #tpu.dot_dimension_numbers<[1], [0], [0], [1], [0, 0, 1, 1], [], []>} : vector<80x4xbf16>, vector<4x4xbf16>, vector<80x4xf32> -> vector<80x4xf32>
    %92 = arith.addf %84, %91 : vector<80x4xf32>
    %c1_79 = arith.constant 1 : index
    %c0_80 = arith.constant 0 : index
    %c0_81 = arith.constant 0 : index
    %93 = vector.load %arg5[%c1_79, %c0_80, %c0_81] : memref<9x80x80xbf16, #tpu.memory_space<vmem>>, vector<1x80x80xbf16>
    %94 = vector.shape_cast %93 : vector<1x80x80xbf16> to vector<80x80xbf16>
    %cst_82 = arith.constant dense<0.000000e+00> : vector<80x4xf32>
    %95 = tpu.matmul %94, %80, %cst_82 {dimension_numbers = #tpu.dot_dimension_numbers<[1], [0], [0], [1], [0, 0, 1, 1], [], []>} : vector<80x80xbf16>, vector<80x4xbf16>, vector<80x4xf32> -> vector<80x4xf32>
    %96 = arith.truncf %95 : vector<80x4xf32> to vector<80x4xbf16>
    %c1_83 = arith.constant 1 : index
    %c0_84 = arith.constant 0 : index
    %c0_85 = arith.constant 0 : index
    %97 = vector.load %arg6[%c1_83, %c0_84, %c0_85] : memref<9x4x4xbf16, #tpu.memory_space<vmem>>, vector<1x4x4xbf16>
    %98 = vector.shape_cast %97 : vector<1x4x4xbf16> to vector<4x4xbf16>
    %cst_86 = arith.constant dense<0.000000e+00> : vector<80x4xf32>
    %99 = tpu.matmul %96, %98, %cst_86 {dimension_numbers = #tpu.dot_dimension_numbers<[1], [0], [0], [1], [0, 0, 1, 1], [], []>} : vector<80x4xbf16>, vector<4x4xbf16>, vector<80x4xf32> -> vector<80x4xf32>
    %100 = arith.addf %92, %99 : vector<80x4xf32>
    %c2_87 = arith.constant 2 : index
    %c0_88 = arith.constant 0 : index
    %c0_89 = arith.constant 0 : index
    %101 = vector.load %arg5[%c2_87, %c0_88, %c0_89] : memref<9x80x80xbf16, #tpu.memory_space<vmem>>, vector<1x80x80xbf16>
    %102 = vector.shape_cast %101 : vector<1x80x80xbf16> to vector<80x80xbf16>
    %cst_90 = arith.constant dense<0.000000e+00> : vector<80x4xf32>
    %103 = tpu.matmul %102, %80, %cst_90 {dimension_numbers = #tpu.dot_dimension_numbers<[1], [0], [0], [1], [0, 0, 1, 1], [], []>} : vector<80x80xbf16>, vector<80x4xbf16>, vector<80x4xf32> -> vector<80x4xf32>
    %104 = arith.truncf %103 : vector<80x4xf32> to vector<80x4xbf16>
    %c2_91 = arith.constant 2 : index
    %c0_92 = arith.constant 0 : index
    %c0_93 = arith.constant 0 : index
    %105 = vector.load %arg6[%c2_91, %c0_92, %c0_93] : memref<9x4x4xbf16, #tpu.memory_space<vmem>>, vector<1x4x4xbf16>
    %106 = vector.shape_cast %105 : vector<1x4x4xbf16> to vector<4x4xbf16>
    %cst_94 = arith.constant dense<0.000000e+00> : vector<80x4xf32>
    %107 = tpu.matmul %104, %106, %cst_94 {dimension_numbers = #tpu.dot_dimension_numbers<[1], [0], [0], [1], [0, 0, 1, 1], [], []>} : vector<80x4xbf16>, vector<4x4xbf16>, vector<80x4xf32> -> vector<80x4xf32>
    %108 = arith.addf %100, %107 : vector<80x4xf32>
    %c3_95 = arith.constant 3 : index
    %c0_96 = arith.constant 0 : index
    %c0_97 = arith.constant 0 : index
    %109 = vector.load %arg5[%c3_95, %c0_96, %c0_97] : memref<9x80x80xbf16, #tpu.memory_space<vmem>>, vector<1x80x80xbf16>
    %110 = vector.shape_cast %109 : vector<1x80x80xbf16> to vector<80x80xbf16>
    %cst_98 = arith.constant dense<0.000000e+00> : vector<80x4xf32>
    %111 = tpu.matmul %110, %80, %cst_98 {dimension_numbers = #tpu.dot_dimension_numbers<[1], [0], [0], [1], [0, 0, 1, 1], [], []>} : vector<80x80xbf16>, vector<80x4xbf16>, vector<80x4xf32> -> vector<80x4xf32>
    %112 = arith.truncf %111 : vector<80x4xf32> to vector<80x4xbf16>
    %c3_99 = arith.constant 3 : index
    %c0_100 = arith.constant 0 : index
    %c0_101 = arith.constant 0 : index
    %113 = vector.load %arg6[%c3_99, %c0_100, %c0_101] : memref<9x4x4xbf16, #tpu.memory_space<vmem>>, vector<1x4x4xbf16>
    %114 = vector.shape_cast %113 : vector<1x4x4xbf16> to vector<4x4xbf16>
    %cst_102 = arith.constant dense<0.000000e+00> : vector<80x4xf32>
    %115 = tpu.matmul %112, %114, %cst_102 {dimension_numbers = #tpu.dot_dimension_numbers<[1], [0], [0], [1], [0, 0, 1, 1], [], []>} : vector<80x4xbf16>, vector<4x4xbf16>, vector<80x4xf32> -> vector<80x4xf32>
    %116 = arith.addf %108, %115 : vector<80x4xf32>
    %c4_103 = arith.constant 4 : index
    %c0_104 = arith.constant 0 : index
    %c0_105 = arith.constant 0 : index
    %117 = vector.load %arg5[%c4_103, %c0_104, %c0_105] : memref<9x80x80xbf16, #tpu.memory_space<vmem>>, vector<1x80x80xbf16>
    %118 = vector.shape_cast %117 : vector<1x80x80xbf16> to vector<80x80xbf16>
    %cst_106 = arith.constant dense<0.000000e+00> : vector<80x4xf32>
    %119 = tpu.matmul %118, %80, %cst_106 {dimension_numbers = #tpu.dot_dimension_numbers<[1], [0], [0], [1], [0, 0, 1, 1], [], []>} : vector<80x80xbf16>, vector<80x4xbf16>, vector<80x4xf32> -> vector<80x4xf32>
    %120 = arith.truncf %119 : vector<80x4xf32> to vector<80x4xbf16>
    %c4_107 = arith.constant 4 : index
    %c0_108 = arith.constant 0 : index
    %c0_109 = arith.constant 0 : index
    %121 = vector.load %arg6[%c4_107, %c0_108, %c0_109] : memref<9x4x4xbf16, #tpu.memory_space<vmem>>, vector<1x4x4xbf16>
    %122 = vector.shape_cast %121 : vector<1x4x4xbf16> to vector<4x4xbf16>
    %cst_110 = arith.constant dense<0.000000e+00> : vector<80x4xf32>
    %123 = tpu.matmul %120, %122, %cst_110 {dimension_numbers = #tpu.dot_dimension_numbers<[1], [0], [0], [1], [0, 0, 1, 1], [], []>} : vector<80x4xbf16>, vector<4x4xbf16>, vector<80x4xf32> -> vector<80x4xf32>
    %124 = arith.addf %116, %123 : vector<80x4xf32>
    %c5_111 = arith.constant 5 : index
    %c0_112 = arith.constant 0 : index
    %c0_113 = arith.constant 0 : index
    %125 = vector.load %arg5[%c5_111, %c0_112, %c0_113] : memref<9x80x80xbf16, #tpu.memory_space<vmem>>, vector<1x80x80xbf16>
    %126 = vector.shape_cast %125 : vector<1x80x80xbf16> to vector<80x80xbf16>
    %cst_114 = arith.constant dense<0.000000e+00> : vector<80x4xf32>
    %127 = tpu.matmul %126, %80, %cst_114 {dimension_numbers = #tpu.dot_dimension_numbers<[1], [0], [0], [1], [0, 0, 1, 1], [], []>} : vector<80x80xbf16>, vector<80x4xbf16>, vector<80x4xf32> -> vector<80x4xf32>
    %128 = arith.truncf %127 : vector<80x4xf32> to vector<80x4xbf16>
    %c5_115 = arith.constant 5 : index
    %c0_116 = arith.constant 0 : index
    %c0_117 = arith.constant 0 : index
    %129 = vector.load %arg6[%c5_115, %c0_116, %c0_117] : memref<9x4x4xbf16, #tpu.memory_space<vmem>>, vector<1x4x4xbf16>
    %130 = vector.shape_cast %129 : vector<1x4x4xbf16> to vector<4x4xbf16>
    %cst_118 = arith.constant dense<0.000000e+00> : vector<80x4xf32>
    %131 = tpu.matmul %128, %130, %cst_118 {dimension_numbers = #tpu.dot_dimension_numbers<[1], [0], [0], [1], [0, 0, 1, 1], [], []>} : vector<80x4xbf16>, vector<4x4xbf16>, vector<80x4xf32> -> vector<80x4xf32>
    %132 = arith.addf %124, %131 : vector<80x4xf32>
    %c6_119 = arith.constant 6 : index
    %c0_120 = arith.constant 0 : index
    %c0_121 = arith.constant 0 : index
    %133 = vector.load %arg5[%c6_119, %c0_120, %c0_121] : memref<9x80x80xbf16, #tpu.memory_space<vmem>>, vector<1x80x80xbf16>
    %134 = vector.shape_cast %133 : vector<1x80x80xbf16> to vector<80x80xbf16>
    %cst_122 = arith.constant dense<0.000000e+00> : vector<80x4xf32>
    %135 = tpu.matmul %134, %80, %cst_122 {dimension_numbers = #tpu.dot_dimension_numbers<[1], [0], [0], [1], [0, 0, 1, 1], [], []>} : vector<80x80xbf16>, vector<80x4xbf16>, vector<80x4xf32> -> vector<80x4xf32>
    %136 = arith.truncf %135 : vector<80x4xf32> to vector<80x4xbf16>
    %c6_123 = arith.constant 6 : index
    %c0_124 = arith.constant 0 : index
    %c0_125 = arith.constant 0 : index
    %137 = vector.load %arg6[%c6_123, %c0_124, %c0_125] : memref<9x4x4xbf16, #tpu.memory_space<vmem>>, vector<1x4x4xbf16>
    %138 = vector.shape_cast %137 : vector<1x4x4xbf16> to vector<4x4xbf16>
    %cst_126 = arith.constant dense<0.000000e+00> : vector<80x4xf32>
    %139 = tpu.matmul %136, %138, %cst_126 {dimension_numbers = #tpu.dot_dimension_numbers<[1], [0], [0], [1], [0, 0, 1, 1], [], []>} : vector<80x4xbf16>, vector<4x4xbf16>, vector<80x4xf32> -> vector<80x4xf32>
    %140 = arith.addf %132, %139 : vector<80x4xf32>
    %c7_127 = arith.constant 7 : index
    %c0_128 = arith.constant 0 : index
    %c0_129 = arith.constant 0 : index
    %141 = vector.load %arg5[%c7_127, %c0_128, %c0_129] : memref<9x80x80xbf16, #tpu.memory_space<vmem>>, vector<1x80x80xbf16>
    %142 = vector.shape_cast %141 : vector<1x80x80xbf16> to vector<80x80xbf16>
    %cst_130 = arith.constant dense<0.000000e+00> : vector<80x4xf32>
    %143 = tpu.matmul %142, %80, %cst_130 {dimension_numbers = #tpu.dot_dimension_numbers<[1], [0], [0], [1], [0, 0, 1, 1], [], []>} : vector<80x80xbf16>, vector<80x4xbf16>, vector<80x4xf32> -> vector<80x4xf32>
    %144 = arith.truncf %143 : vector<80x4xf32> to vector<80x4xbf16>
    %c7_131 = arith.constant 7 : index
    %c0_132 = arith.constant 0 : index
    %c0_133 = arith.constant 0 : index
    %145 = vector.load %arg6[%c7_131, %c0_132, %c0_133] : memref<9x4x4xbf16, #tpu.memory_space<vmem>>, vector<1x4x4xbf16>
    %146 = vector.shape_cast %145 : vector<1x4x4xbf16> to vector<4x4xbf16>
    %cst_134 = arith.constant dense<0.000000e+00> : vector<80x4xf32>
    %147 = tpu.matmul %144, %146, %cst_134 {dimension_numbers = #tpu.dot_dimension_numbers<[1], [0], [0], [1], [0, 0, 1, 1], [], []>} : vector<80x4xbf16>, vector<4x4xbf16>, vector<80x4xf32> -> vector<80x4xf32>
    %148 = arith.addf %140, %147 : vector<80x4xf32>
    %c8_135 = arith.constant 8 : index
    %c0_136 = arith.constant 0 : index
    %c0_137 = arith.constant 0 : index
    %149 = vector.load %arg5[%c8_135, %c0_136, %c0_137] : memref<9x80x80xbf16, #tpu.memory_space<vmem>>, vector<1x80x80xbf16>
    %150 = vector.shape_cast %149 : vector<1x80x80xbf16> to vector<80x80xbf16>
    %cst_138 = arith.constant dense<0.000000e+00> : vector<80x4xf32>
    %151 = tpu.matmul %150, %80, %cst_138 {dimension_numbers = #tpu.dot_dimension_numbers<[1], [0], [0], [1], [0, 0, 1, 1], [], []>} : vector<80x80xbf16>, vector<80x4xbf16>, vector<80x4xf32> -> vector<80x4xf32>
    %152 = arith.truncf %151 : vector<80x4xf32> to vector<80x4xbf16>
    %c8_139 = arith.constant 8 : index
    %c0_140 = arith.constant 0 : index
    %c0_141 = arith.constant 0 : index
    %153 = vector.load %arg6[%c8_139, %c0_140, %c0_141] : memref<9x4x4xbf16, #tpu.memory_space<vmem>>, vector<1x4x4xbf16>
    %154 = vector.shape_cast %153 : vector<1x4x4xbf16> to vector<4x4xbf16>
    %cst_142 = arith.constant dense<0.000000e+00> : vector<80x4xf32>
    %155 = tpu.matmul %152, %154, %cst_142 {dimension_numbers = #tpu.dot_dimension_numbers<[1], [0], [0], [1], [0, 0, 1, 1], [], []>} : vector<80x4xbf16>, vector<4x4xbf16>, vector<80x4xf32> -> vector<80x4xf32>
    %156 = arith.addf %148, %155 : vector<80x4xf32>
    %cst_143 = arith.constant 0.000000e+00 : f32
    %157 = vector.broadcast %cst_143 : f32 to vector<80x4xf32>
    %158 = arith.maximumf %156, %157 : vector<80x4xf32>
    %159 = arith.truncf %158 : vector<80x4xf32> to vector<80x4xbf16>
    %cst_144 = arith.constant 0.000000e+00 : f32
    %160 = vector.broadcast %cst_144 : f32 to vector<20x8xf32>
    %c0_145 = arith.constant 0 : index
    %c0_146 = arith.constant 0 : index
    %161 = vector.load %arg10[%c0_145, %c0_146] : memref<1x8xf32, #tpu.memory_space<vmem>>, vector<1x8xf32>
    %162 = vector.broadcast %161 : vector<1x8xf32> to vector<20x8xf32>
    %163 = arith.addf %160, %162 : vector<20x8xf32>
    %c0_147 = arith.constant 0 : index
    %c0_148 = arith.constant 0 : index
    %c0_149 = arith.constant 0 : index
    %164 = vector.load %arg8[%c0_147, %c0_148, %c0_149] : memref<9x20x80xbf16, #tpu.memory_space<vmem>>, vector<1x20x80xbf16>
    %165 = vector.shape_cast %164 : vector<1x20x80xbf16> to vector<20x80xbf16>
    %cst_150 = arith.constant dense<0.000000e+00> : vector<20x4xf32>
    %166 = tpu.matmul %165, %159, %cst_150 {dimension_numbers = #tpu.dot_dimension_numbers<[1], [0], [0], [1], [0, 0, 1, 1], [], []>} : vector<20x80xbf16>, vector<80x4xbf16>, vector<20x4xf32> -> vector<20x4xf32>
    %167 = arith.truncf %166 : vector<20x4xf32> to vector<20x4xbf16>
    %c0_151 = arith.constant 0 : index
    %c0_152 = arith.constant 0 : index
    %c0_153 = arith.constant 0 : index
    %168 = vector.load %arg9[%c0_151, %c0_152, %c0_153] : memref<9x4x8xbf16, #tpu.memory_space<vmem>>, vector<1x4x8xbf16>
    %169 = vector.shape_cast %168 : vector<1x4x8xbf16> to vector<4x8xbf16>
    %cst_154 = arith.constant dense<0.000000e+00> : vector<20x8xf32>
    %170 = tpu.matmul %167, %169, %cst_154 {dimension_numbers = #tpu.dot_dimension_numbers<[1], [0], [0], [1], [0, 0, 1, 1], [], []>} : vector<20x4xbf16>, vector<4x8xbf16>, vector<20x8xf32> -> vector<20x8xf32>
    %171 = arith.addf %163, %170 : vector<20x8xf32>
    %c1_155 = arith.constant 1 : index
    %c0_156 = arith.constant 0 : index
    %c0_157 = arith.constant 0 : index
    %172 = vector.load %arg8[%c1_155, %c0_156, %c0_157] : memref<9x20x80xbf16, #tpu.memory_space<vmem>>, vector<1x20x80xbf16>
    %173 = vector.shape_cast %172 : vector<1x20x80xbf16> to vector<20x80xbf16>
    %cst_158 = arith.constant dense<0.000000e+00> : vector<20x4xf32>
    %174 = tpu.matmul %173, %159, %cst_158 {dimension_numbers = #tpu.dot_dimension_numbers<[1], [0], [0], [1], [0, 0, 1, 1], [], []>} : vector<20x80xbf16>, vector<80x4xbf16>, vector<20x4xf32> -> vector<20x4xf32>
    %175 = arith.truncf %174 : vector<20x4xf32> to vector<20x4xbf16>
    %c1_159 = arith.constant 1 : index
    %c0_160 = arith.constant 0 : index
    %c0_161 = arith.constant 0 : index
    %176 = vector.load %arg9[%c1_159, %c0_160, %c0_161] : memref<9x4x8xbf16, #tpu.memory_space<vmem>>, vector<1x4x8xbf16>
    %177 = vector.shape_cast %176 : vector<1x4x8xbf16> to vector<4x8xbf16>
    %cst_162 = arith.constant dense<0.000000e+00> : vector<20x8xf32>
    %178 = tpu.matmul %175, %177, %cst_162 {dimension_numbers = #tpu.dot_dimension_numbers<[1], [0], [0], [1], [0, 0, 1, 1], [], []>} : vector<20x4xbf16>, vector<4x8xbf16>, vector<20x8xf32> -> vector<20x8xf32>
    %179 = arith.addf %171, %178 : vector<20x8xf32>
    %c2_163 = arith.constant 2 : index
    %c0_164 = arith.constant 0 : index
    %c0_165 = arith.constant 0 : index
    %180 = vector.load %arg8[%c2_163, %c0_164, %c0_165] : memref<9x20x80xbf16, #tpu.memory_space<vmem>>, vector<1x20x80xbf16>
    %181 = vector.shape_cast %180 : vector<1x20x80xbf16> to vector<20x80xbf16>
    %cst_166 = arith.constant dense<0.000000e+00> : vector<20x4xf32>
    %182 = tpu.matmul %181, %159, %cst_166 {dimension_numbers = #tpu.dot_dimension_numbers<[1], [0], [0], [1], [0, 0, 1, 1], [], []>} : vector<20x80xbf16>, vector<80x4xbf16>, vector<20x4xf32> -> vector<20x4xf32>
    %183 = arith.truncf %182 : vector<20x4xf32> to vector<20x4xbf16>
    %c2_167 = arith.constant 2 : index
    %c0_168 = arith.constant 0 : index
    %c0_169 = arith.constant 0 : index
    %184 = vector.load %arg9[%c2_167, %c0_168, %c0_169] : memref<9x4x8xbf16, #tpu.memory_space<vmem>>, vector<1x4x8xbf16>
    %185 = vector.shape_cast %184 : vector<1x4x8xbf16> to vector<4x8xbf16>
    %cst_170 = arith.constant dense<0.000000e+00> : vector<20x8xf32>
    %186 = tpu.matmul %183, %185, %cst_170 {dimension_numbers = #tpu.dot_dimension_numbers<[1], [0], [0], [1], [0, 0, 1, 1], [], []>} : vector<20x4xbf16>, vector<4x8xbf16>, vector<20x8xf32> -> vector<20x8xf32>
    %187 = arith.addf %179, %186 : vector<20x8xf32>
    %c3_171 = arith.constant 3 : index
    %c0_172 = arith.constant 0 : index
    %c0_173 = arith.constant 0 : index
    %188 = vector.load %arg8[%c3_171, %c0_172, %c0_173] : memref<9x20x80xbf16, #tpu.memory_space<vmem>>, vector<1x20x80xbf16>
    %189 = vector.shape_cast %188 : vector<1x20x80xbf16> to vector<20x80xbf16>
    %cst_174 = arith.constant dense<0.000000e+00> : vector<20x4xf32>
    %190 = tpu.matmul %189, %159, %cst_174 {dimension_numbers = #tpu.dot_dimension_numbers<[1], [0], [0], [1], [0, 0, 1, 1], [], []>} : vector<20x80xbf16>, vector<80x4xbf16>, vector<20x4xf32> -> vector<20x4xf32>
    %191 = arith.truncf %190 : vector<20x4xf32> to vector<20x4xbf16>
    %c3_175 = arith.constant 3 : index
    %c0_176 = arith.constant 0 : index
    %c0_177 = arith.constant 0 : index
    %192 = vector.load %arg9[%c3_175, %c0_176, %c0_177] : memref<9x4x8xbf16, #tpu.memory_space<vmem>>, vector<1x4x8xbf16>
    %193 = vector.shape_cast %192 : vector<1x4x8xbf16> to vector<4x8xbf16>
    %cst_178 = arith.constant dense<0.000000e+00> : vector<20x8xf32>
    %194 = tpu.matmul %191, %193, %cst_178 {dimension_numbers = #tpu.dot_dimension_numbers<[1], [0], [0], [1], [0, 0, 1, 1], [], []>} : vector<20x4xbf16>, vector<4x8xbf16>, vector<20x8xf32> -> vector<20x8xf32>
    %195 = arith.addf %187, %194 : vector<20x8xf32>
    %c4_179 = arith.constant 4 : index
    %c0_180 = arith.constant 0 : index
    %c0_181 = arith.constant 0 : index
    %196 = vector.load %arg8[%c4_179, %c0_180, %c0_181] : memref<9x20x80xbf16, #tpu.memory_space<vmem>>, vector<1x20x80xbf16>
    %197 = vector.shape_cast %196 : vector<1x20x80xbf16> to vector<20x80xbf16>
    %cst_182 = arith.constant dense<0.000000e+00> : vector<20x4xf32>
    %198 = tpu.matmul %197, %159, %cst_182 {dimension_numbers = #tpu.dot_dimension_numbers<[1], [0], [0], [1], [0, 0, 1, 1], [], []>} : vector<20x80xbf16>, vector<80x4xbf16>, vector<20x4xf32> -> vector<20x4xf32>
    %199 = arith.truncf %198 : vector<20x4xf32> to vector<20x4xbf16>
    %c4_183 = arith.constant 4 : index
    %c0_184 = arith.constant 0 : index
    %c0_185 = arith.constant 0 : index
    %200 = vector.load %arg9[%c4_183, %c0_184, %c0_185] : memref<9x4x8xbf16, #tpu.memory_space<vmem>>, vector<1x4x8xbf16>
    %201 = vector.shape_cast %200 : vector<1x4x8xbf16> to vector<4x8xbf16>
    %cst_186 = arith.constant dense<0.000000e+00> : vector<20x8xf32>
    %202 = tpu.matmul %199, %201, %cst_186 {dimension_numbers = #tpu.dot_dimension_numbers<[1], [0], [0], [1], [0, 0, 1, 1], [], []>} : vector<20x4xbf16>, vector<4x8xbf16>, vector<20x8xf32> -> vector<20x8xf32>
    %203 = arith.addf %195, %202 : vector<20x8xf32>
    %c5_187 = arith.constant 5 : index
    %c0_188 = arith.constant 0 : index
    %c0_189 = arith.constant 0 : index
    %204 = vector.load %arg8[%c5_187, %c0_188, %c0_189] : memref<9x20x80xbf16, #tpu.memory_space<vmem>>, vector<1x20x80xbf16>
    %205 = vector.shape_cast %204 : vector<1x20x80xbf16> to vector<20x80xbf16>
    %cst_190 = arith.constant dense<0.000000e+00> : vector<20x4xf32>
    %206 = tpu.matmul %205, %159, %cst_190 {dimension_numbers = #tpu.dot_dimension_numbers<[1], [0], [0], [1], [0, 0, 1, 1], [], []>} : vector<20x80xbf16>, vector<80x4xbf16>, vector<20x4xf32> -> vector<20x4xf32>
    %207 = arith.truncf %206 : vector<20x4xf32> to vector<20x4xbf16>
    %c5_191 = arith.constant 5 : index
    %c0_192 = arith.constant 0 : index
    %c0_193 = arith.constant 0 : index
    %208 = vector.load %arg9[%c5_191, %c0_192, %c0_193] : memref<9x4x8xbf16, #tpu.memory_space<vmem>>, vector<1x4x8xbf16>
    %209 = vector.shape_cast %208 : vector<1x4x8xbf16> to vector<4x8xbf16>
    %cst_194 = arith.constant dense<0.000000e+00> : vector<20x8xf32>
    %210 = tpu.matmul %207, %209, %cst_194 {dimension_numbers = #tpu.dot_dimension_numbers<[1], [0], [0], [1], [0, 0, 1, 1], [], []>} : vector<20x4xbf16>, vector<4x8xbf16>, vector<20x8xf32> -> vector<20x8xf32>
    %211 = arith.addf %203, %210 : vector<20x8xf32>
    %c6_195 = arith.constant 6 : index
    %c0_196 = arith.constant 0 : index
    %c0_197 = arith.constant 0 : index
    %212 = vector.load %arg8[%c6_195, %c0_196, %c0_197] : memref<9x20x80xbf16, #tpu.memory_space<vmem>>, vector<1x20x80xbf16>
    %213 = vector.shape_cast %212 : vector<1x20x80xbf16> to vector<20x80xbf16>
    %cst_198 = arith.constant dense<0.000000e+00> : vector<20x4xf32>
    %214 = tpu.matmul %213, %159, %cst_198 {dimension_numbers = #tpu.dot_dimension_numbers<[1], [0], [0], [1], [0, 0, 1, 1], [], []>} : vector<20x80xbf16>, vector<80x4xbf16>, vector<20x4xf32> -> vector<20x4xf32>
    %215 = arith.truncf %214 : vector<20x4xf32> to vector<20x4xbf16>
    %c6_199 = arith.constant 6 : index
    %c0_200 = arith.constant 0 : index
    %c0_201 = arith.constant 0 : index
    %216 = vector.load %arg9[%c6_199, %c0_200, %c0_201] : memref<9x4x8xbf16, #tpu.memory_space<vmem>>, vector<1x4x8xbf16>
    %217 = vector.shape_cast %216 : vector<1x4x8xbf16> to vector<4x8xbf16>
    %cst_202 = arith.constant dense<0.000000e+00> : vector<20x8xf32>
    %218 = tpu.matmul %215, %217, %cst_202 {dimension_numbers = #tpu.dot_dimension_numbers<[1], [0], [0], [1], [0, 0, 1, 1], [], []>} : vector<20x4xbf16>, vector<4x8xbf16>, vector<20x8xf32> -> vector<20x8xf32>
    %219 = arith.addf %211, %218 : vector<20x8xf32>
    %c7_203 = arith.constant 7 : index
    %c0_204 = arith.constant 0 : index
    %c0_205 = arith.constant 0 : index
    %220 = vector.load %arg8[%c7_203, %c0_204, %c0_205] : memref<9x20x80xbf16, #tpu.memory_space<vmem>>, vector<1x20x80xbf16>
    %221 = vector.shape_cast %220 : vector<1x20x80xbf16> to vector<20x80xbf16>
    %cst_206 = arith.constant dense<0.000000e+00> : vector<20x4xf32>
    %222 = tpu.matmul %221, %159, %cst_206 {dimension_numbers = #tpu.dot_dimension_numbers<[1], [0], [0], [1], [0, 0, 1, 1], [], []>} : vector<20x80xbf16>, vector<80x4xbf16>, vector<20x4xf32> -> vector<20x4xf32>
    %223 = arith.truncf %222 : vector<20x4xf32> to vector<20x4xbf16>
    %c7_207 = arith.constant 7 : index
    %c0_208 = arith.constant 0 : index
    %c0_209 = arith.constant 0 : index
    %224 = vector.load %arg9[%c7_207, %c0_208, %c0_209] : memref<9x4x8xbf16, #tpu.memory_space<vmem>>, vector<1x4x8xbf16>
    %225 = vector.shape_cast %224 : vector<1x4x8xbf16> to vector<4x8xbf16>
    %cst_210 = arith.constant dense<0.000000e+00> : vector<20x8xf32>
    %226 = tpu.matmul %223, %225, %cst_210 {dimension_numbers = #tpu.dot_dimension_numbers<[1], [0], [0], [1], [0, 0, 1, 1], [], []>} : vector<20x4xbf16>, vector<4x8xbf16>, vector<20x8xf32> -> vector<20x8xf32>
    %227 = arith.addf %219, %226 : vector<20x8xf32>
    %c8_211 = arith.constant 8 : index
    %c0_212 = arith.constant 0 : index
    %c0_213 = arith.constant 0 : index
    %228 = vector.load %arg8[%c8_211, %c0_212, %c0_213] : memref<9x20x80xbf16, #tpu.memory_space<vmem>>, vector<1x20x80xbf16>
    %229 = vector.shape_cast %228 : vector<1x20x80xbf16> to vector<20x80xbf16>
    %cst_214 = arith.constant dense<0.000000e+00> : vector<20x4xf32>
    %230 = tpu.matmul %229, %159, %cst_214 {dimension_numbers = #tpu.dot_dimension_numbers<[1], [0], [0], [1], [0, 0, 1, 1], [], []>} : vector<20x80xbf16>, vector<80x4xbf16>, vector<20x4xf32> -> vector<20x4xf32>
    %231 = arith.truncf %230 : vector<20x4xf32> to vector<20x4xbf16>
    %c8_215 = arith.constant 8 : index
    %c0_216 = arith.constant 0 : index
    %c0_217 = arith.constant 0 : index
    %232 = vector.load %arg9[%c8_215, %c0_216, %c0_217] : memref<9x4x8xbf16, #tpu.memory_space<vmem>>, vector<1x4x8xbf16>
    %233 = vector.shape_cast %232 : vector<1x4x8xbf16> to vector<4x8xbf16>
    %cst_218 = arith.constant dense<0.000000e+00> : vector<20x8xf32>
    %234 = tpu.matmul %231, %233, %cst_218 {dimension_numbers = #tpu.dot_dimension_numbers<[1], [0], [0], [1], [0, 0, 1, 1], [], []>} : vector<20x4xbf16>, vector<4x8xbf16>, vector<20x8xf32> -> vector<20x8xf32>
    %235 = arith.addf %227, %234 : vector<20x8xf32>
    %cst_219 = arith.constant 0.000000e+00 : f32
    %236 = vector.broadcast %cst_219 : f32 to vector<20x8xf32>
    %237 = arith.maximumf %235, %236 : vector<20x8xf32>
    %238 = arith.truncf %237 : vector<20x8xf32> to vector<20x8xbf16>
    %cst_220 = arith.constant 0.000000e+00 : f32
    %239 = vector.broadcast %cst_220 : f32 to vector<20x8xf32>
    %c0_221 = arith.constant 0 : index
    %c0_222 = arith.constant 0 : index
    %240 = vector.load %arg13[%c0_221, %c0_222] : memref<1x8xf32, #tpu.memory_space<vmem>>, vector<1x8xf32>
    %241 = vector.broadcast %240 : vector<1x8xf32> to vector<20x8xf32>
    %242 = arith.addf %239, %241 : vector<20x8xf32>
    %c0_223 = arith.constant 0 : index
    %c0_224 = arith.constant 0 : index
    %c0_225 = arith.constant 0 : index
    %243 = vector.load %arg11[%c0_223, %c0_224, %c0_225] : memref<9x20x20xbf16, #tpu.memory_space<vmem>>, vector<1x20x20xbf16>
    %244 = vector.shape_cast %243 : vector<1x20x20xbf16> to vector<20x20xbf16>
    %cst_226 = arith.constant dense<0.000000e+00> : vector<20x8xf32>
    %245 = tpu.matmul %244, %238, %cst_226 {dimension_numbers = #tpu.dot_dimension_numbers<[1], [0], [0], [1], [0, 0, 1, 1], [], []>} : vector<20x20xbf16>, vector<20x8xbf16>, vector<20x8xf32> -> vector<20x8xf32>
    %246 = arith.truncf %245 : vector<20x8xf32> to vector<20x8xbf16>
    %c0_227 = arith.constant 0 : index
    %c0_228 = arith.constant 0 : index
    %c0_229 = arith.constant 0 : index
    %247 = vector.load %arg12[%c0_227, %c0_228, %c0_229] : memref<9x8x8xbf16, #tpu.memory_space<vmem>>, vector<1x8x8xbf16>
    %248 = vector.shape_cast %247 : vector<1x8x8xbf16> to vector<8x8xbf16>
    %cst_230 = arith.constant dense<0.000000e+00> : vector<20x8xf32>
    %249 = tpu.matmul %246, %248, %cst_230 {dimension_numbers = #tpu.dot_dimension_numbers<[1], [0], [0], [1], [0, 0, 1, 1], [], []>} : vector<20x8xbf16>, vector<8x8xbf16>, vector<20x8xf32> -> vector<20x8xf32>
    %250 = arith.addf %242, %249 : vector<20x8xf32>
    %c1_231 = arith.constant 1 : index
    %c0_232 = arith.constant 0 : index
    %c0_233 = arith.constant 0 : index
    %251 = vector.load %arg11[%c1_231, %c0_232, %c0_233] : memref<9x20x20xbf16, #tpu.memory_space<vmem>>, vector<1x20x20xbf16>
    %252 = vector.shape_cast %251 : vector<1x20x20xbf16> to vector<20x20xbf16>
    %cst_234 = arith.constant dense<0.000000e+00> : vector<20x8xf32>
    %253 = tpu.matmul %252, %238, %cst_234 {dimension_numbers = #tpu.dot_dimension_numbers<[1], [0], [0], [1], [0, 0, 1, 1], [], []>} : vector<20x20xbf16>, vector<20x8xbf16>, vector<20x8xf32> -> vector<20x8xf32>
    %254 = arith.truncf %253 : vector<20x8xf32> to vector<20x8xbf16>
    %c1_235 = arith.constant 1 : index
    %c0_236 = arith.constant 0 : index
    %c0_237 = arith.constant 0 : index
    %255 = vector.load %arg12[%c1_235, %c0_236, %c0_237] : memref<9x8x8xbf16, #tpu.memory_space<vmem>>, vector<1x8x8xbf16>
    %256 = vector.shape_cast %255 : vector<1x8x8xbf16> to vector<8x8xbf16>
    %cst_238 = arith.constant dense<0.000000e+00> : vector<20x8xf32>
    %257 = tpu.matmul %254, %256, %cst_238 {dimension_numbers = #tpu.dot_dimension_numbers<[1], [0], [0], [1], [0, 0, 1, 1], [], []>} : vector<20x8xbf16>, vector<8x8xbf16>, vector<20x8xf32> -> vector<20x8xf32>
    %258 = arith.addf %250, %257 : vector<20x8xf32>
    %c2_239 = arith.constant 2 : index
    %c0_240 = arith.constant 0 : index
    %c0_241 = arith.constant 0 : index
    %259 = vector.load %arg11[%c2_239, %c0_240, %c0_241] : memref<9x20x20xbf16, #tpu.memory_space<vmem>>, vector<1x20x20xbf16>
    %260 = vector.shape_cast %259 : vector<1x20x20xbf16> to vector<20x20xbf16>
    %cst_242 = arith.constant dense<0.000000e+00> : vector<20x8xf32>
    %261 = tpu.matmul %260, %238, %cst_242 {dimension_numbers = #tpu.dot_dimension_numbers<[1], [0], [0], [1], [0, 0, 1, 1], [], []>} : vector<20x20xbf16>, vector<20x8xbf16>, vector<20x8xf32> -> vector<20x8xf32>
    %262 = arith.truncf %261 : vector<20x8xf32> to vector<20x8xbf16>
    %c2_243 = arith.constant 2 : index
    %c0_244 = arith.constant 0 : index
    %c0_245 = arith.constant 0 : index
    %263 = vector.load %arg12[%c2_243, %c0_244, %c0_245] : memref<9x8x8xbf16, #tpu.memory_space<vmem>>, vector<1x8x8xbf16>
    %264 = vector.shape_cast %263 : vector<1x8x8xbf16> to vector<8x8xbf16>
    %cst_246 = arith.constant dense<0.000000e+00> : vector<20x8xf32>
    %265 = tpu.matmul %262, %264, %cst_246 {dimension_numbers = #tpu.dot_dimension_numbers<[1], [0], [0], [1], [0, 0, 1, 1], [], []>} : vector<20x8xbf16>, vector<8x8xbf16>, vector<20x8xf32> -> vector<20x8xf32>
    %266 = arith.addf %258, %265 : vector<20x8xf32>
    %c3_247 = arith.constant 3 : index
    %c0_248 = arith.constant 0 : index
    %c0_249 = arith.constant 0 : index
    %267 = vector.load %arg11[%c3_247, %c0_248, %c0_249] : memref<9x20x20xbf16, #tpu.memory_space<vmem>>, vector<1x20x20xbf16>
    %268 = vector.shape_cast %267 : vector<1x20x20xbf16> to vector<20x20xbf16>
    %cst_250 = arith.constant dense<0.000000e+00> : vector<20x8xf32>
    %269 = tpu.matmul %268, %238, %cst_250 {dimension_numbers = #tpu.dot_dimension_numbers<[1], [0], [0], [1], [0, 0, 1, 1], [], []>} : vector<20x20xbf16>, vector<20x8xbf16>, vector<20x8xf32> -> vector<20x8xf32>
    %270 = arith.truncf %269 : vector<20x8xf32> to vector<20x8xbf16>
    %c3_251 = arith.constant 3 : index
    %c0_252 = arith.constant 0 : index
    %c0_253 = arith.constant 0 : index
    %271 = vector.load %arg12[%c3_251, %c0_252, %c0_253] : memref<9x8x8xbf16, #tpu.memory_space<vmem>>, vector<1x8x8xbf16>
    %272 = vector.shape_cast %271 : vector<1x8x8xbf16> to vector<8x8xbf16>
    %cst_254 = arith.constant dense<0.000000e+00> : vector<20x8xf32>
    %273 = tpu.matmul %270, %272, %cst_254 {dimension_numbers = #tpu.dot_dimension_numbers<[1], [0], [0], [1], [0, 0, 1, 1], [], []>} : vector<20x8xbf16>, vector<8x8xbf16>, vector<20x8xf32> -> vector<20x8xf32>
    %274 = arith.addf %266, %273 : vector<20x8xf32>
    %c4_255 = arith.constant 4 : index
    %c0_256 = arith.constant 0 : index
    %c0_257 = arith.constant 0 : index
    %275 = vector.load %arg11[%c4_255, %c0_256, %c0_257] : memref<9x20x20xbf16, #tpu.memory_space<vmem>>, vector<1x20x20xbf16>
    %276 = vector.shape_cast %275 : vector<1x20x20xbf16> to vector<20x20xbf16>
    %cst_258 = arith.constant dense<0.000000e+00> : vector<20x8xf32>
    %277 = tpu.matmul %276, %238, %cst_258 {dimension_numbers = #tpu.dot_dimension_numbers<[1], [0], [0], [1], [0, 0, 1, 1], [], []>} : vector<20x20xbf16>, vector<20x8xbf16>, vector<20x8xf32> -> vector<20x8xf32>
    %278 = arith.truncf %277 : vector<20x8xf32> to vector<20x8xbf16>
    %c4_259 = arith.constant 4 : index
    %c0_260 = arith.constant 0 : index
    %c0_261 = arith.constant 0 : index
    %279 = vector.load %arg12[%c4_259, %c0_260, %c0_261] : memref<9x8x8xbf16, #tpu.memory_space<vmem>>, vector<1x8x8xbf16>
    %280 = vector.shape_cast %279 : vector<1x8x8xbf16> to vector<8x8xbf16>
    %cst_262 = arith.constant dense<0.000000e+00> : vector<20x8xf32>
    %281 = tpu.matmul %278, %280, %cst_262 {dimension_numbers = #tpu.dot_dimension_numbers<[1], [0], [0], [1], [0, 0, 1, 1], [], []>} : vector<20x8xbf16>, vector<8x8xbf16>, vector<20x8xf32> -> vector<20x8xf32>
    %282 = arith.addf %274, %281 : vector<20x8xf32>
    %c5_263 = arith.constant 5 : index
    %c0_264 = arith.constant 0 : index
    %c0_265 = arith.constant 0 : index
    %283 = vector.load %arg11[%c5_263, %c0_264, %c0_265] : memref<9x20x20xbf16, #tpu.memory_space<vmem>>, vector<1x20x20xbf16>
    %284 = vector.shape_cast %283 : vector<1x20x20xbf16> to vector<20x20xbf16>
    %cst_266 = arith.constant dense<0.000000e+00> : vector<20x8xf32>
    %285 = tpu.matmul %284, %238, %cst_266 {dimension_numbers = #tpu.dot_dimension_numbers<[1], [0], [0], [1], [0, 0, 1, 1], [], []>} : vector<20x20xbf16>, vector<20x8xbf16>, vector<20x8xf32> -> vector<20x8xf32>
    %286 = arith.truncf %285 : vector<20x8xf32> to vector<20x8xbf16>
    %c5_267 = arith.constant 5 : index
    %c0_268 = arith.constant 0 : index
    %c0_269 = arith.constant 0 : index
    %287 = vector.load %arg12[%c5_267, %c0_268, %c0_269] : memref<9x8x8xbf16, #tpu.memory_space<vmem>>, vector<1x8x8xbf16>
    %288 = vector.shape_cast %287 : vector<1x8x8xbf16> to vector<8x8xbf16>
    %cst_270 = arith.constant dense<0.000000e+00> : vector<20x8xf32>
    %289 = tpu.matmul %286, %288, %cst_270 {dimension_numbers = #tpu.dot_dimension_numbers<[1], [0], [0], [1], [0, 0, 1, 1], [], []>} : vector<20x8xbf16>, vector<8x8xbf16>, vector<20x8xf32> -> vector<20x8xf32>
    %290 = arith.addf %282, %289 : vector<20x8xf32>
    %c6_271 = arith.constant 6 : index
    %c0_272 = arith.constant 0 : index
    %c0_273 = arith.constant 0 : index
    %291 = vector.load %arg11[%c6_271, %c0_272, %c0_273] : memref<9x20x20xbf16, #tpu.memory_space<vmem>>, vector<1x20x20xbf16>
    %292 = vector.shape_cast %291 : vector<1x20x20xbf16> to vector<20x20xbf16>
    %cst_274 = arith.constant dense<0.000000e+00> : vector<20x8xf32>
    %293 = tpu.matmul %292, %238, %cst_274 {dimension_numbers = #tpu.dot_dimension_numbers<[1], [0], [0], [1], [0, 0, 1, 1], [], []>} : vector<20x20xbf16>, vector<20x8xbf16>, vector<20x8xf32> -> vector<20x8xf32>
    %294 = arith.truncf %293 : vector<20x8xf32> to vector<20x8xbf16>
    %c6_275 = arith.constant 6 : index
    %c0_276 = arith.constant 0 : index
    %c0_277 = arith.constant 0 : index
    %295 = vector.load %arg12[%c6_275, %c0_276, %c0_277] : memref<9x8x8xbf16, #tpu.memory_space<vmem>>, vector<1x8x8xbf16>
    %296 = vector.shape_cast %295 : vector<1x8x8xbf16> to vector<8x8xbf16>
    %cst_278 = arith.constant dense<0.000000e+00> : vector<20x8xf32>
    %297 = tpu.matmul %294, %296, %cst_278 {dimension_numbers = #tpu.dot_dimension_numbers<[1], [0], [0], [1], [0, 0, 1, 1], [], []>} : vector<20x8xbf16>, vector<8x8xbf16>, vector<20x8xf32> -> vector<20x8xf32>
    %298 = arith.addf %290, %297 : vector<20x8xf32>
    %c7_279 = arith.constant 7 : index
    %c0_280 = arith.constant 0 : index
    %c0_281 = arith.constant 0 : index
    %299 = vector.load %arg11[%c7_279, %c0_280, %c0_281] : memref<9x20x20xbf16, #tpu.memory_space<vmem>>, vector<1x20x20xbf16>
    %300 = vector.shape_cast %299 : vector<1x20x20xbf16> to vector<20x20xbf16>
    %cst_282 = arith.constant dense<0.000000e+00> : vector<20x8xf32>
    %301 = tpu.matmul %300, %238, %cst_282 {dimension_numbers = #tpu.dot_dimension_numbers<[1], [0], [0], [1], [0, 0, 1, 1], [], []>} : vector<20x20xbf16>, vector<20x8xbf16>, vector<20x8xf32> -> vector<20x8xf32>
    %302 = arith.truncf %301 : vector<20x8xf32> to vector<20x8xbf16>
    %c7_283 = arith.constant 7 : index
    %c0_284 = arith.constant 0 : index
    %c0_285 = arith.constant 0 : index
    %303 = vector.load %arg12[%c7_283, %c0_284, %c0_285] : memref<9x8x8xbf16, #tpu.memory_space<vmem>>, vector<1x8x8xbf16>
    %304 = vector.shape_cast %303 : vector<1x8x8xbf16> to vector<8x8xbf16>
    %cst_286 = arith.constant dense<0.000000e+00> : vector<20x8xf32>
    %305 = tpu.matmul %302, %304, %cst_286 {dimension_numbers = #tpu.dot_dimension_numbers<[1], [0], [0], [1], [0, 0, 1, 1], [], []>} : vector<20x8xbf16>, vector<8x8xbf16>, vector<20x8xf32> -> vector<20x8xf32>
    %306 = arith.addf %298, %305 : vector<20x8xf32>
    %c8_287 = arith.constant 8 : index
    %c0_288 = arith.constant 0 : index
    %c0_289 = arith.constant 0 : index
    %307 = vector.load %arg11[%c8_287, %c0_288, %c0_289] : memref<9x20x20xbf16, #tpu.memory_space<vmem>>, vector<1x20x20xbf16>
    %308 = vector.shape_cast %307 : vector<1x20x20xbf16> to vector<20x20xbf16>
    %cst_290 = arith.constant dense<0.000000e+00> : vector<20x8xf32>
    %309 = tpu.matmul %308, %238, %cst_290 {dimension_numbers = #tpu.dot_dimension_numbers<[1], [0], [0], [1], [0, 0, 1, 1], [], []>} : vector<20x20xbf16>, vector<20x8xbf16>, vector<20x8xf32> -> vector<20x8xf32>
    %310 = arith.truncf %309 : vector<20x8xf32> to vector<20x8xbf16>
    %c8_291 = arith.constant 8 : index
    %c0_292 = arith.constant 0 : index
    %c0_293 = arith.constant 0 : index
    %311 = vector.load %arg12[%c8_291, %c0_292, %c0_293] : memref<9x8x8xbf16, #tpu.memory_space<vmem>>, vector<1x8x8xbf16>
    %312 = vector.shape_cast %311 : vector<1x8x8xbf16> to vector<8x8xbf16>
    %cst_294 = arith.constant dense<0.000000e+00> : vector<20x8xf32>
    %313 = tpu.matmul %310, %312, %cst_294 {dimension_numbers = #tpu.dot_dimension_numbers<[1], [0], [0], [1], [0, 0, 1, 1], [], []>} : vector<20x8xbf16>, vector<8x8xbf16>, vector<20x8xf32> -> vector<20x8xf32>
    %314 = arith.addf %306, %313 : vector<20x8xf32>
    %cst_295 = arith.constant 0.000000e+00 : f32
    %315 = vector.broadcast %cst_295 : f32 to vector<20x8xf32>
    %316 = arith.maximumf %314, %315 : vector<20x8xf32>
    %cst_296 = arith.constant 0.000000e+00 : f32
    %317 = vector.broadcast %cst_296 : f32 to vector<20x16xf32>
    %318 = vector.extract_strided_slice %316 {offsets = [0, 0], sizes = [20, 1], strides = [1, 1]} : vector<20x8xf32> to vector<20x1xf32>
    %c0_297 = arith.constant 0 : index
    %c0_298 = arith.constant 0 : index
    %c0_299 = arith.constant 0 : index
    %319 = vector.load %arg14[%c0_297, %c0_298, %c0_299] : memref<8x20x16xf32, #tpu.memory_space<vmem>>, vector<1x20x16xf32>
    %320 = vector.shape_cast %319 : vector<1x20x16xf32> to vector<20x16xf32>
    %321 = vector.broadcast %318 : vector<20x1xf32> to vector<20x16xf32>
    %322 = arith.mulf %321, %320 : vector<20x16xf32>
    %323 = arith.addf %317, %322 : vector<20x16xf32>
    %324 = vector.extract_strided_slice %316 {offsets = [0, 1], sizes = [20, 1], strides = [1, 1]} : vector<20x8xf32> to vector<20x1xf32>
    %c1_300 = arith.constant 1 : index
    %c0_301 = arith.constant 0 : index
    %c0_302 = arith.constant 0 : index
    %325 = vector.load %arg14[%c1_300, %c0_301, %c0_302] : memref<8x20x16xf32, #tpu.memory_space<vmem>>, vector<1x20x16xf32>
    %326 = vector.shape_cast %325 : vector<1x20x16xf32> to vector<20x16xf32>
    %327 = vector.broadcast %324 : vector<20x1xf32> to vector<20x16xf32>
    %328 = arith.mulf %327, %326 : vector<20x16xf32>
    %329 = arith.addf %323, %328 : vector<20x16xf32>
    %330 = vector.extract_strided_slice %316 {offsets = [0, 2], sizes = [20, 1], strides = [1, 1]} : vector<20x8xf32> to vector<20x1xf32>
    %c2_303 = arith.constant 2 : index
    %c0_304 = arith.constant 0 : index
    %c0_305 = arith.constant 0 : index
    %331 = vector.load %arg14[%c2_303, %c0_304, %c0_305] : memref<8x20x16xf32, #tpu.memory_space<vmem>>, vector<1x20x16xf32>
    %332 = vector.shape_cast %331 : vector<1x20x16xf32> to vector<20x16xf32>
    %333 = vector.broadcast %330 : vector<20x1xf32> to vector<20x16xf32>
    %334 = arith.mulf %333, %332 : vector<20x16xf32>
    %335 = arith.addf %329, %334 : vector<20x16xf32>
    %336 = vector.extract_strided_slice %316 {offsets = [0, 3], sizes = [20, 1], strides = [1, 1]} : vector<20x8xf32> to vector<20x1xf32>
    %c3_306 = arith.constant 3 : index
    %c0_307 = arith.constant 0 : index
    %c0_308 = arith.constant 0 : index
    %337 = vector.load %arg14[%c3_306, %c0_307, %c0_308] : memref<8x20x16xf32, #tpu.memory_space<vmem>>, vector<1x20x16xf32>
    %338 = vector.shape_cast %337 : vector<1x20x16xf32> to vector<20x16xf32>
    %339 = vector.broadcast %336 : vector<20x1xf32> to vector<20x16xf32>
    %340 = arith.mulf %339, %338 : vector<20x16xf32>
    %341 = arith.addf %335, %340 : vector<20x16xf32>
    %342 = vector.extract_strided_slice %316 {offsets = [0, 4], sizes = [20, 1], strides = [1, 1]} : vector<20x8xf32> to vector<20x1xf32>
    %c4_309 = arith.constant 4 : index
    %c0_310 = arith.constant 0 : index
    %c0_311 = arith.constant 0 : index
    %343 = vector.load %arg14[%c4_309, %c0_310, %c0_311] : memref<8x20x16xf32, #tpu.memory_space<vmem>>, vector<1x20x16xf32>
    %344 = vector.shape_cast %343 : vector<1x20x16xf32> to vector<20x16xf32>
    %345 = vector.broadcast %342 : vector<20x1xf32> to vector<20x16xf32>
    %346 = arith.mulf %345, %344 : vector<20x16xf32>
    %347 = arith.addf %341, %346 : vector<20x16xf32>
    %348 = vector.extract_strided_slice %316 {offsets = [0, 5], sizes = [20, 1], strides = [1, 1]} : vector<20x8xf32> to vector<20x1xf32>
    %c5_312 = arith.constant 5 : index
    %c0_313 = arith.constant 0 : index
    %c0_314 = arith.constant 0 : index
    %349 = vector.load %arg14[%c5_312, %c0_313, %c0_314] : memref<8x20x16xf32, #tpu.memory_space<vmem>>, vector<1x20x16xf32>
    %350 = vector.shape_cast %349 : vector<1x20x16xf32> to vector<20x16xf32>
    %351 = vector.broadcast %348 : vector<20x1xf32> to vector<20x16xf32>
    %352 = arith.mulf %351, %350 : vector<20x16xf32>
    %353 = arith.addf %347, %352 : vector<20x16xf32>
    %354 = vector.extract_strided_slice %316 {offsets = [0, 6], sizes = [20, 1], strides = [1, 1]} : vector<20x8xf32> to vector<20x1xf32>
    %c6_315 = arith.constant 6 : index
    %c0_316 = arith.constant 0 : index
    %c0_317 = arith.constant 0 : index
    %355 = vector.load %arg14[%c6_315, %c0_316, %c0_317] : memref<8x20x16xf32, #tpu.memory_space<vmem>>, vector<1x20x16xf32>
    %356 = vector.shape_cast %355 : vector<1x20x16xf32> to vector<20x16xf32>
    %357 = vector.broadcast %354 : vector<20x1xf32> to vector<20x16xf32>
    %358 = arith.mulf %357, %356 : vector<20x16xf32>
    %359 = arith.addf %353, %358 : vector<20x16xf32>
    %360 = vector.extract_strided_slice %316 {offsets = [0, 7], sizes = [20, 1], strides = [1, 1]} : vector<20x8xf32> to vector<20x1xf32>
    %c7_318 = arith.constant 7 : index
    %c0_319 = arith.constant 0 : index
    %c0_320 = arith.constant 0 : index
    %361 = vector.load %arg14[%c7_318, %c0_319, %c0_320] : memref<8x20x16xf32, #tpu.memory_space<vmem>>, vector<1x20x16xf32>
    %362 = vector.shape_cast %361 : vector<1x20x16xf32> to vector<20x16xf32>
    %363 = vector.broadcast %360 : vector<20x1xf32> to vector<20x16xf32>
    %364 = arith.mulf %363, %362 : vector<20x16xf32>
    %365 = arith.addf %359, %364 : vector<20x16xf32>
    %cst_321 = arith.constant dense<0.000000e+00> : vector<16xf32>
    %366 = vector.multi_reduction <add>, %365, %cst_321 [0] : vector<20x16xf32> to vector<16xf32>
    %367 = vector.shape_cast %366 : vector<16xf32> to vector<1x16xf32>
    %c0_322 = arith.constant 0 : index
    %c0_323 = arith.constant 0 : index
    %368 = vector.load %arg15[%c0_322, %c0_323] : memref<1x16xf32, #tpu.memory_space<vmem>>, vector<1x16xf32>
    %369 = arith.addf %367, %368 : vector<1x16xf32>
    %370 = arith.truncf %369 : vector<1x16xf32> to vector<1x16xbf16>
    %c0_324 = arith.constant 0 : index
    %c0_325 = arith.constant 0 : index
    %371 = vector.load %arg16[%c0_324, %c0_325] : memref<16x30xbf16, #tpu.memory_space<vmem>>, vector<16x30xbf16>
    %cst_326 = arith.constant dense<0.000000e+00> : vector<1x30xf32>
    %372 = tpu.matmul %370, %371, %cst_326 {dimension_numbers = #tpu.dot_dimension_numbers<[1], [0], [0], [1], [0, 0, 1, 1], [], []>} : vector<1x16xbf16>, vector<16x30xbf16>, vector<1x30xf32> -> vector<1x30xf32>
    %c0_327 = arith.constant 0 : index
    %c0_328 = arith.constant 0 : index
    %373 = vector.load %arg17[%c0_327, %c0_328] : memref<1x30xf32, #tpu.memory_space<vmem>>, vector<1x30xf32>
    %374 = arith.addf %372, %373 : vector<1x30xf32>
    %c0_329 = arith.constant 0 : index
    %c0_330 = arith.constant 0 : index
    %c0_331 = arith.constant 0 : index
    %375 = vector.load %arg18[%c0_329, %c0_330, %c0_331] : memref<1x1x30xf32, #tpu.memory_space<vmem>>, vector<1x1x30xf32>
    %376 = vector.shape_cast %375 : vector<1x1x30xf32> to vector<1x30xf32>
    %377 = vector.shape_cast %374 : vector<1x30xf32> to vector<1x1x30xf32>
    tpu.vector_store %arg18[%c0_329, %c0_330, %c0_331], %377 {strides = array<i32>} : memref<1x1x30xf32, #tpu.memory_space<vmem>>, vector<1x1x30xf32>,
    return
  }
  func.func @transform_0(%arg0: i32) -> (i32, i32) {
    %c0_i32 = arith.constant 0 : i32
    %c0_i32_0 = arith.constant 0 : i32
    return %arg0, %c0_i32 : i32, i32
  }
  func.func @transform_1(%arg0: i32) -> (i32, i32, i32) {
    %c0_i32 = arith.constant 0 : i32
    %c0_i32_0 = arith.constant 0 : i32
    %c0_i32_1 = arith.constant 0 : i32
    %c0_i32_2 = arith.constant 0 : i32
    return %c0_i32, %c0_i32_0, %c0_i32_1 : i32, i32, i32
  }
  func.func @transform_2(%arg0: i32) -> (i32, i32, i32) {
    %c0_i32 = arith.constant 0 : i32
    %c0_i32_0 = arith.constant 0 : i32
    %c0_i32_1 = arith.constant 0 : i32
    %c0_i32_2 = arith.constant 0 : i32
    return %c0_i32, %c0_i32_0, %c0_i32_1 : i32, i32, i32
  }
  func.func @transform_3(%arg0: i32) -> (i32, i32) {
    %c0_i32 = arith.constant 0 : i32
    %c0_i32_0 = arith.constant 0 : i32
    %c0_i32_1 = arith.constant 0 : i32
    return %c0_i32, %c0_i32_0 : i32, i32
  }
  func.func @transform_4(%arg0: i32) -> (i32, i32, i32) {
    %c0_i32 = arith.constant 0 : i32
    %c0_i32_0 = arith.constant 0 : i32
    %c0_i32_1 = arith.constant 0 : i32
    %c0_i32_2 = arith.constant 0 : i32
    return %c0_i32, %c0_i32_0, %c0_i32_1 : i32, i32, i32
  }
  func.func @transform_5(%arg0: i32) -> (i32, i32, i32) {
    %c0_i32 = arith.constant 0 : i32
    %c0_i32_0 = arith.constant 0 : i32
    %c0_i32_1 = arith.constant 0 : i32
    %c0_i32_2 = arith.constant 0 : i32
    return %c0_i32, %c0_i32_0, %c0_i32_1 : i32, i32, i32
  }
  func.func @transform_6(%arg0: i32) -> (i32, i32) {
    %c0_i32 = arith.constant 0 : i32
    %c0_i32_0 = arith.constant 0 : i32
    %c0_i32_1 = arith.constant 0 : i32
    return %c0_i32, %c0_i32_0 : i32, i32
  }
  func.func @transform_7(%arg0: i32) -> (i32, i32, i32) {
    %c0_i32 = arith.constant 0 : i32
    %c0_i32_0 = arith.constant 0 : i32
    %c0_i32_1 = arith.constant 0 : i32
    %c0_i32_2 = arith.constant 0 : i32
    return %c0_i32, %c0_i32_0, %c0_i32_1 : i32, i32, i32
  }
  func.func @transform_8(%arg0: i32) -> (i32, i32, i32) {
    %c0_i32 = arith.constant 0 : i32
    %c0_i32_0 = arith.constant 0 : i32
    %c0_i32_1 = arith.constant 0 : i32
    %c0_i32_2 = arith.constant 0 : i32
    return %c0_i32, %c0_i32_0, %c0_i32_1 : i32, i32, i32
  }
  func.func @transform_9(%arg0: i32) -> (i32, i32) {
    %c0_i32 = arith.constant 0 : i32
    %c0_i32_0 = arith.constant 0 : i32
    %c0_i32_1 = arith.constant 0 : i32
    return %c0_i32, %c0_i32_0 : i32, i32
  }
  func.func @transform_10(%arg0: i32) -> (i32, i32, i32) {
    %c0_i32 = arith.constant 0 : i32
    %c0_i32_0 = arith.constant 0 : i32
    %c0_i32_1 = arith.constant 0 : i32
    %c0_i32_2 = arith.constant 0 : i32
    return %c0_i32, %c0_i32_0, %c0_i32_1 : i32, i32, i32
  }
  func.func @transform_11(%arg0: i32) -> (i32, i32, i32) {
    %c0_i32 = arith.constant 0 : i32
    %c0_i32_0 = arith.constant 0 : i32
    %c0_i32_1 = arith.constant 0 : i32
    %c0_i32_2 = arith.constant 0 : i32
    return %c0_i32, %c0_i32_0, %c0_i32_1 : i32, i32, i32
  }
  func.func @transform_12(%arg0: i32) -> (i32, i32) {
    %c0_i32 = arith.constant 0 : i32
    %c0_i32_0 = arith.constant 0 : i32
    %c0_i32_1 = arith.constant 0 : i32
    return %c0_i32, %c0_i32_0 : i32, i32
  }
  func.func @transform_13(%arg0: i32) -> (i32, i32, i32) {
    %c0_i32 = arith.constant 0 : i32
    %c0_i32_0 = arith.constant 0 : i32
    %c0_i32_1 = arith.constant 0 : i32
    %c0_i32_2 = arith.constant 0 : i32
    return %c0_i32, %c0_i32_0, %c0_i32_1 : i32, i32, i32
  }
  func.func @transform_14(%arg0: i32) -> (i32, i32) {
    %c0_i32 = arith.constant 0 : i32
    %c0_i32_0 = arith.constant 0 : i32
    %c0_i32_1 = arith.constant 0 : i32
    return %c0_i32, %c0_i32_0 : i32, i32
  }
  func.func @transform_15(%arg0: i32) -> (i32, i32) {
    %c0_i32 = arith.constant 0 : i32
    %c0_i32_0 = arith.constant 0 : i32
    %c0_i32_1 = arith.constant 0 : i32
    return %c0_i32, %c0_i32_0 : i32, i32
  }
  func.func @transform_16(%arg0: i32) -> (i32, i32) {
    %c0_i32 = arith.constant 0 : i32
    %c0_i32_0 = arith.constant 0 : i32
    %c0_i32_1 = arith.constant 0 : i32
    return %c0_i32, %c0_i32_0 : i32, i32
  }
  func.func @transform_17(%arg0: i32) -> (i32, i32, i32) {
    %c0_i32 = arith.constant 0 : i32
    %c0_i32_0 = arith.constant 0 : i32
    %c0_i32_1 = arith.constant 0 : i32
    return %arg0, %c0_i32, %c0_i32_0 : i32, i32, i32
  }
}

</mosaic_0001>

<bundles_post_ra>
// kernel: tpu_custom_call.1
= control target key start
LH: loop header
LB: loop body
LE: loop exit
PB: predicated region body
PF: predicated region fallthrough
CT: control target
= control target key end

     0   :  { %s14993_s0 = inlined_call_operand.vmem [shape: f32[640,8], index: 0, kind: input, shape index: {}]   ;;  %s14994_s1 = inlined_call_operand.vmem [shape: bf16[9,80,320], index: 1, kind: input, shape index: {}]   ;;  %s14995_s2 = inlined_call_operand.vmem [shape: bf16[9,8,4], index: 2, kind: input, shape index: {}]   ;;  %s14996_s3 = inlined_call_operand.vmem [shape: f32[1,4], index: 3, kind: input, shape index: {}]   ;;  %s14997_s4 = inlined_call_operand.hbm [shape: bf16[9,80,80], index: 4, kind: input, shape index: {}]   ;;  %s14998_s5 = inlined_call_operand.vmem [shape: bf16[9,4,4], index: 5, kind: input, shape index: {}]   ;;  %s14999_s6 = inlined_call_operand.vmem [shape: f32[1,4], index: 6, kind: input, shape index: {}]   ;;  %s15000_s7 = inlined_call_operand.hbm [shape: bf16[9,20,80], index: 7, kind: input, shape index: {}]   ;;  %s15001_s8 = inlined_call_operand.vmem [shape: bf16[9,4,8], index: 8, kind: input, shape index: {}]   ;;  %s15002_s9 = inlined_call_operand.vmem [shape: f32[1,8], index: 9, kind: input, shape index: {}]   ;;  %s15003_s10 = inlined_call_operand.hbm [shape: bf16[9,20,20], index: 10, kind: input, shape index: {}]   ;;  %s15004_s11 = inlined_call_operand.vmem [shape: bf16[9,8,8], index: 11, kind: input, shape index: {}]   ;;  %s15005_s12 = inlined_call_operand.vmem [shape: f32[1,8], index: 12, kind: input, shape index: {}]   ;;  %s15006_s13 = inlined_call_operand.vmem [shape: f32[8,20,16], index: 13, kind: input, shape index: {}]   ;;  %s15007_s14 = inlined_call_operand.vmem [shape: f32[1,16], index: 14, kind: input, shape index: {}]   ;;  %s15008_s15 = inlined_call_operand.vmem [shape: bf16[16,30], index: 15, kind: input, shape index: {}]   ;;  %s15009_s16 = inlined_call_operand.vmem [shape: f32[1,30], index: 16, kind: input, shape index: {}]   ;;  %s15010_s17 = inlined_call_operand.hbm [shape: f32[2,1,30], index: 17, kind: output, shape index: {}]  }
   0x1   :  { %15025 = sst [smem:[#allocation20_spill]] %s14993_s0 }
   0x2   :  { %15026 = sst [smem:[#allocation21_spill]] %s14994_s1 }
   0x3   :  { %15027 = sst [smem:[#allocation22_spill]] %s15007_s14 }
   0x4   :  { %15028 = sst [smem:[#allocation23_spill]] %s15009_s16 }
   0x5   :  { %15029 = sst [smem:[#allocation24_spill]] %s15010_s17 }
   0x6   :  { %22 = vsyncpa [#allocation3], 0 }
   0x7   :  { %23 = vsyncpa [#allocation6], 0 }
   0x8   :  { %24 = vsyncpa [#allocation4], 0 }
   0x9   :  { %26 = vsyncpa [#allocation4 + $0x1], 0  ;;  %s12629_s24 = smov 0   ;;  %s12631_s25 = smov 0  }
   0xa   :  { %s12633_s26 = smov 0   ;;  %s12635_s27 = smov 0  }
   0xb LB: > { %15030 = sst [smem:[#allocation12_spill]] %s12509_s24  ;;  %s12650_s28 = sadd.s32 4294967295, %s12521_s27   ;;  %s12521_s27 = sphi %s12635_s27, %s15060_s27   ;;  %s12517_s26 = sphi %s12633_s26, %s15063_s26   ;;  %s12513_s25 = sphi %s12631_s25, %s15062_s25   ;;  %s12509_s24 = sphi %s12629_s24, %s15061_s24  }
   0xc   : > { %15031 = sst [smem:[#allocation13_spill]] %s12513_s25  ;;  %s8785_s29 = sadd.s32 4294967294, %s12521_s27  }
   0xd   : > { %15032 = sst [smem:[#allocation14_spill]] %s12517_s26  ;;  %s12654_s0 = sadd.s32 1, %s12521_s27  }
   0xe   : > { %15033 = sst [smem:[#allocation15_spill]] %s12521_s27  ;;  %s401_s30 = sadd.s32 1, %s12517_s26 }
   0xf   : > { %15034 = sst [smem:[#allocation16_spill]] %s12654_s0  ;;  %s398_s18 = ssub.s32 %s12521_s27, %s12654_s0 }
  0x10   : > { %p411_p0 = scmp.ne.s32.totalorder %s12517_s26, %s12513_s25  ;;  %p399_p1 = scmp.eq.s32.totalorder %s398_s18, 0 }
  0x11   : > { %p412_p2 = scmp.eq.s32.totalorder %s12650_s28, 1  ;;  %p417_p3 = scmp.ne.s32.totalorder %s12513_s25, %s12509_s24 }
  0x12   : > { %p418_p4 = scmp.eq.s32.totalorder %s8785_s29, 1  ;;  %p8786_p7 = scmp.ge.s32.totalorder %s12521_s27, 1 }
  0x13   : > { %s12665_s19 = scalar_select %p399_p1, %s12517_s26, %s401_s30  }
  0x14   : > { %p12667_p5 = por %p412_p2, %p411_p0  ;;  %p12671_p6 = por %p418_p4, %p417_p3 }
  0x15   : > { %15035 = sst [smem:[#allocation17_spill]] %s12665_s19  ;;  %p425_p8 = scmp.lt.s32.totalorder %s12521_s27, 3 }
  0x16   : > { %s15036_s1 = scalar_select %p12667_p5, 1, 0 }
  0x17   : > { %s15038_s20 = scalar_select %p12671_p6, 1, 0 }
  0x18   : > { %15037 = sst [smem:[#allocation18_spill]] %s15036_s1  ;;  %p15019_p9 = scmp.eq.s32.totalorder %s12650_s28, 0 }
  0x19   : > { %15039 = sst [smem:[#allocation19_spill]] %s15038_s20  ;;  %p12678_p10 = pnand %p8786_p7, %p425_p8 }
  0x1a   : > { %s12523_s22 = smov [#allocation5]   ;;  %s12524_s30 = smov [#allocation2]  }
  0x1b   : > { %s15040_s21 = scalar_select %p12678_p10, 1, 0 }
  0x1c   : > { %p12015_p11 = pneg %p12678_p10  ;;  %s465_s23 = sshll.u32 %s12523_s22, 4  ;;  %s12684_s23 = int_to_ptr.vmem [resolvable:$true] %s465_s23 }
  0x1d   : > { %s446_s18 = sshll.u32 %s12524_s30, 4  ;;  %s12525_s19 = smov [#allocation7]   ;;  %s12692_s18 = int_to_ptr.vmem [resolvable:$true] %s446_s18 }
  0x1e   : > { %p12688_p12 = pnand %p15019_p9, %p12015_p11  ;;  %s12694_s26 = sshll.u32 %s12525_s19, 4  ;;  %s485_s26 = int_to_ptr.vmem [resolvable:$true] %s12694_s26 }
  0x1f   : > { %s12367_s24 = scalar_lea.hbm %s15000_s7, 1728 }
  0x20   : > { %p12368_p13 = scmp.ne.s32.totalorder %s15000_s7, %s12367_s24  ;;  %p12704_p0 = pneg %p12688_p12 }
  0x21   : > { %p12374_p3 = scmp.lt.u32.totalorder %s12367_s24, %s15000_s7 }
  0x22   : > { %p12370_p1 = pnand %p12704_p0, %p12368_p13 }
  0x24   : > { %p12371_p2 = pneg %p12370_p1 }
  0x26   : > { %p12376_p4 = pnand %p12374_p3, %p12371_p2 }
  0x28   : > { %12379 = shalt.err (!%p12376_p4)
}
  0x29   : > { %s12380_s27 = scalar_lea.vmem %s12684_s23, 1728  ;;  %p12388_p9 = scmp.lt.s32.totalorder %s12684_s23, %s12684_s23 }
  0x2a   : > { %p12381_p7 = scmp.ne.s32.totalorder %s12684_s23, %s12380_s27  ;;  %p12389_p6 = scmp.lt.s32.totalorder %s12380_s27, %s12380_s27 }
  0x2c   : > { %p12383_p8 = pnand %p12381_p7, %p12704_p0  ;;  %p12390_p13 = por %p12389_p6, %p12388_p9 }
  0x2e   : > { %p12384_p11 = pneg %p12383_p8 }
  0x30   : > { %p12391_p1 = pnand %p12390_p13, %p12384_p11 }
  0x32   : > { %12394 = shalt.err (!%p12391_p1)
}
  0x33   : > { %s12526_s0 = smov 64   ;;  %s12527_s24 = smov 4  }
  0x34   : > { %12021 = dma.hbm_to_vmem [thread:$0]  (!%p12688_p12), %s15000_s7, 1728, %s12684_s23, [#allocation6], %s12526_s0, %s12526_s0, %s12527_s24  }
  0x35   : > { %s12395_s27 = scalar_lea.hbm %s14997_s4, 5760 }
  0x36   : > { %p12396_p6 = scmp.ne.s32.totalorder %s14997_s4, %s12395_s27  ;;  %p12402_p3 = scmp.lt.u32.totalorder %s12395_s27, %s14997_s4 }
  0x38   : > { %p12398_p9 = pnand %p12396_p6, %p12704_p0 }
  0x3a   : > { %p12399_p2 = pneg %p12398_p9 }
  0x3c   : > { %p12404_p4 = pnand %p12402_p3, %p12399_p2 }
  0x3e   : > { %12407 = shalt.err (!%p12404_p4)
}
  0x3f   : > { %s12408_s23 = scalar_lea.vmem %s12692_s18, 5760  ;;  %p12416_p13 = scmp.lt.s32.totalorder %s12692_s18, %s12692_s18 }
  0x40   : > { %p12409_p7 = scmp.ne.s32.totalorder %s12692_s18, %s12408_s23  ;;  %p12417_p1 = scmp.lt.s32.totalorder %s12408_s23, %s12408_s23 }
  0x42   : > { %p12411_p8 = pnand %p12409_p7, %p12704_p0  ;;  %p12418_p6 = por %p12417_p1, %p12416_p13 }
  0x44   : > { %p12412_p11 = pneg %p12411_p8 }
  0x46   : > { %p12419_p9 = pnand %p12418_p6, %p12412_p11 }
  0x48   : > { %12422 = shalt.err (!%p12419_p9)
}
  0x49   : > { %12018 = dma.hbm_to_vmem [thread:$0]  (!%p12688_p12), %s14997_s4, 5760, %s12692_s18, [#allocation3], %s12526_s0, %s12526_s0, %s12527_s24  }
  0x4a   : > { %s12423_s20 = scalar_lea.hbm %s15003_s10, 1728 }
  0x4b   : > { %p12424_p2 = scmp.ne.s32.totalorder %s15003_s10, %s12423_s20  ;;  %p12430_p7 = scmp.lt.u32.totalorder %s12423_s20, %s15003_s10 }
  0x4d   : > { %p12426_p3 = pnand %p12424_p2, %p12704_p0 }
  0x4f   : > { %p12427_p4 = pneg %p12426_p3 }
  0x51   : > { %p12432_p8 = pnand %p12430_p7, %p12427_p4 }
  0x53   : > { %12435 = shalt.err (!%p12432_p8)
}
  0x54   : > { %s12436_s23 = scalar_lea.vmem %s485_s26, 1728  ;;  %p12444_p6 = scmp.lt.s32.totalorder %s485_s26, %s485_s26 }
  0x55   : > { %p12437_p11 = scmp.ne.s32.totalorder %s485_s26, %s12436_s23  ;;  %p12445_p9 = scmp.lt.s32.totalorder %s12436_s23, %s12436_s23 }
  0x57   : > { %p12439_p13 = pnand %p12437_p11, %p12704_p0  ;;  %p12446_p5 = por %p12445_p9, %p12444_p6 }
  0x59   : > { %p12440_p1 = pneg %p12439_p13 }
  0x5b   : > { %p12447_p10 = pnand %p12446_p5, %p12440_p1 }
  0x5d   : > { %12450 = shalt.err (!%p12447_p10)
}
  0x5e   : > { %12024 = dma.hbm_to_vmem [thread:$0]  (!%p12688_p12), %s15003_s10, 1728, %s485_s26, [#allocation6], %s12526_s0, %s12526_s0, %s12527_s24  }
  0x5f   : > { %p15043_p2 = scmp.ne.s32.totalorder %s15040_s21, 0 }
  0x60   : > { %p15044_p0 = scmp.eq.s32.totalorder (!%p15043_p2), %s12650_s28, 0 }
  0x61   : > { %527 = sbr.rel (%p15043_p2) target bundleno = 5023 (0x139f), region = 88 }
  0x68   : > { %12496 = dma.done.wait (%p15044_p0), [#allocation3], 5760   ;;  %p15045_p3 = pmov %p15044_p0 }
  0x69   : > { %p15046_p5 = pmov %p15044_p0 }
  0x6a   : > { %12498 = vsyncadd (%p15045_p3), [#allocation3], 4294961536 }
  0x6b   : > { %12500 = dma.done.wait (%p15046_p5), [#allocation6], 3456   ;;  %p15047_p10 = pmov %p15044_p0 }
  0x6c   : > { %s586_s17 = smul.u32 40, %s12650_s28  ;;  %v12528_v0 = vmov 0.0   ;;  %vm12529_vm0 = vmmov 0   ;;  %s15048_s0 = sld [smem:[#allocation20_spill]]  ;;  %vm756_vm1 = vcmask 523264   ;;  %vm940_vm2 = vcmask 1043456  }
  0x6d   : > { %12502 = vsyncadd (%p15047_p10), [#allocation6], 4294963840  ;;  %10334 = vmatprep.subr.bf16.mxu1 %v12528_v0  ;;  %10342 = vmatprep.mubr.msk.bf16.mxu1 %vm12529_vm0, %v12528_v0  ;;  %s15049_s1 = sld [smem:[#allocation21_spill]]  ;;  %v923_v62 = vld [vmem:[%s14995_s2] sm:$0xf]  ;;  %vm924_vm3 = vcmask 64512  }
  0x6e   : > { %p587_p12 = scmp.lt.s32.totalorder %s586_s17, 79  ;;  %v942_v63 = vsel %vm940_vm2, %v923_v62, 0  ;;  %vm4005_vm4 = vcmask 654336   ;;  %vm4116_vm5 = vcmask 1041408   ;;  %vm4100_vm6 = vcmask 31744   ;;  %s15050_s16 = sld [smem:[#allocation13_spill]] }
  0x6f   : > { %vm7274_vm7 = vcmask 162816   ;;  %vm8616_vm8 = vcmask 130048   ;;  %vm8620_vm9 = vcmask 125952   ;;  %s15051_s22 = sld [smem:[#allocation22_spill]]  ;;  %s15052_s23 = sld [smem:[#allocation23_spill]]  ;;  %vm8684_vm10 = vcmask 237568  }
  0x70   : > { %s15065_s17 = smov (!%p587_p12, %s586_s17), 79  ;;  %s15053_s18 = sld [smem:[#allocation18_spill]] }
  0x71   : > { %s8795_s26 = sshll.u32 %s15065_s17, 3  ;;  %s9483_s14 = sshll.u32 %s12650_s28, 4 }
  0x72   : > { %s12793_s24 = scalar_lea.vmem %s15048_s0, %s8795_s26  ;;  %s15054_s0 = sld [smem:[#allocation24_spill]] }
  0x73   : > { %v609_v1 = vld [vmem:[%s12793_s24 + $0x80] sm:$0xff]  ;;  %v610_v2 = vld [vmem:[%s12793_s24 + $0x88] sm:$0xff]  ;;  %v611_v6 = vld [vmem:[%s12793_s24 + $0x90] sm:$0xff]  ;;  %s12538_s25 = smov [#allocation8]  }
  0x74   : > { %v593_v3 = vld [vmem:[%s12793_s24] sm:$0xff]  ;;  %v12798_v4 = vpack.c.bf16 %v610_v2, %v609_v1  ;;  %v594_v5 = vld [vmem:[%s12793_s24 + $0x8] sm:$0xff]  ;;  %v612_v7 = vld [vmem:[%s12793_s24 + $0x98] sm:$0xff]  ;;  %s584_s30 = sand.u32 1, %s15050_s16   ;;  %s12455_s20 = sshll.u32 %s12538_s25, 4  ;;  %s12456_s20 = int_to_ptr.vmem [resolvable:$false] %s12455_s20 }
  0x75   : > { %v12803_v8 = vpack.c.bf16 %v594_v5, %v593_v3  ;;  %v12805_v9 = vpack.c.bf16 %v612_v7, %v611_v6  ;;  %v595_v10 = vld [vmem:[%s12793_s24 + $0x10] sm:$0xff]  ;;  %v596_v11 = vld [vmem:[%s12793_s24 + $0x18] sm:$0xff]  ;;  %v613_v12 = vld [vmem:[%s12793_s24 + $0xa0] sm:$0xff]  ;;  %s585_s17 = scalar_lea.vmem [#allocation8], %s584_s30  ;;  %s8687_s28 = scalar_lea.sflag [#allocation4], %s584_s30 }
  0x76   : > { %9486 = vmatprep.subr.bf16.mxu0 %v12798_v4  ;;  %v614_v13 = vld [vmem:[%s12793_s24 + $0xa8] sm:$0xff]  ;;  %v12813_v14 = vpack.c.bf16 %v596_v11, %v595_v10  ;;  %v597_v16 = vld [vmem:[%s12793_s24 + $0x20] sm:$0xff]  ;;  %v615_v18 = vld [vmem:[%s12793_s24 + $0xb0] sm:$0xff]  ;;  %s8699_s26 = sshll.u32 %s585_s17, 4  ;;  %p15055_p7 = scmp.ne.s32.totalorder %s15053_s18, 0  ;;  %s14953_s26 = int_to_ptr.vmem [resolvable:$true] %s8699_s26 }
  0x77   : > { %9487 = vmatpush3.bf16.msra.mxu0 %v12803_v8  ;;  %v12816_v15 = vpack.c.bf16 %v614_v13, %v613_v12  ;;  %v598_v17 = vld [vmem:[%s12793_s24 + $0x28] sm:$0xff]  ;;  %v616_v19 = vld [vmem:[%s12793_s24 + $0xb8] sm:$0xff]  ;;  %v625_v20 = vld [vmem:[%s12793_s24 + $0x100] sm:$0xff]  ;;  %s12451_s16 = scalar_lea.vmem %s14953_s26, 16  ;;  %p12458_p13 = scmp.lt.s32.totalorder %s14953_s26, %s12456_s20 }
  0x78   : > { %9488 = vmatprep.subr.bf16.mxu0 %v12805_v9  ;;  %v626_v21 = vld [vmem:[%s12793_s24 + $0x108] sm:$0xff]  ;;  %v12825_v22 = vpack.c.bf16 %v598_v17, %v597_v16  ;;  %v627_v24 = vld [vmem:[%s12793_s24 + $0x110] sm:$0xff]  ;;  %v12831_v25 = vpack.c.bf16 %v616_v19, %v615_v18  ;;  %v600_v27 = vld [vmem:[%s12793_s24 + $0x38] sm:$0xff]  ;;  %p12452_p4 = scmp.ne.s32.totalorder %s14953_s26, %s12451_s16 }
  0x79   : > { %v12827_v23 = vpack.c.bf16 %v626_v21, %v625_v20  ;;  %v599_v26 = vld [vmem:[%s12793_s24 + $0x30] sm:$0xff]  ;;  %v628_v28 = vld [vmem:[%s12793_s24 + $0x118] sm:$0xff]  ;;  %v617_v29 = vld [vmem:[%s12793_s24 + $0xc0] sm:$0xff] }
  0x7a   : > { %v618_v30 = vld [vmem:[%s12793_s24 + $0xc8] sm:$0xff]  ;;  %v12839_v31 = vpack.c.bf16 %v628_v28, %v627_v24  ;;  %v629_v32 = vld [vmem:[%s12793_s24 + $0x120] sm:$0xff]  ;;  %v12845_v34 = vpack.c.bf16 %v600_v27, %v599_v26  ;;  %v619_v38 = vld [vmem:[%s12793_s24 + $0xd0] sm:$0xff]  ;;  %p12453_p8 = pnand %p12452_p4, %p15055_p7 }
  0x7b   : > { %9489 = vmatpush3.bf16.msra.mxu0 %v12813_v14  ;;  %10335 = vmatpush3.bf16.msra.mxu1 %v12827_v23  ;;  %v630_v33 = vld [vmem:[%s12793_s24 + $0x128] sm:$0xff]  ;;  %v601_v35 = vld [vmem:[%s12793_s24 + $0x40] sm:$0xff]  ;;  %v12850_v37 = vpack.c.bf16 %v618_v30, %v617_v29  ;;  %v620_v40 = vld [vmem:[%s12793_s24 + $0xd8] sm:$0xff] }
  0x7c   : > { %9490 = vmatprep.subr.bf16.mxu0 %v12816_v15  ;;  %10336 = vmatprep.subr.bf16.mxu1 %v12528_v0  ;;  %v602_v36 = vld [vmem:[%s12793_s24 + $0x48] sm:$0xff]  ;;  %v12107_v39 = vld [vmem:[%s15049_s1 + $0x4] ss:$12 sps:$4 sm:$0xff]   ;;  %v12858_v41 = vpack.c.bf16 %v630_v33, %v629_v32  ;;  %v632_v44 = vld [vmem:[%s12793_s24 + $0x138] sm:$0xff]  ;;  %v12869_v47 = vpack.c.bf16 %v620_v40, %v619_v38  ;;  %p12454_p11 = pneg %p12453_p8 }
  0x7d   : > { %v603_v42 = vld [vmem:[%s12793_s24 + $0x50] sm:$0xff]  ;;  %804 = vmatprep.mubr.bf16.mxu0 %v12107_v39  ;;  %v12865_v45 = vpack.c.bf16 %v602_v36, %v601_v35  ;;  %v604_v46 = vld [vmem:[%s12793_s24 + $0x58] sm:$0xff]  ;;  %v621_v48 = vld [vmem:[%s12793_s24 + $0xe0] sm:$0xff] }
  0x7e   : > { %v631_v43 = vld [vmem:[%s12793_s24 + $0x130] sm:$0xff]  ;;  %v622_v49 = vld [vmem:[%s12793_s24 + $0xe8] sm:$0xff]  ;;  %v12878_v51 = vpack.c.bf16 %v604_v46, %v603_v42  ;;  %v605_v52 = vld [vmem:[%s12793_s24 + $0x60] sm:$0xff] }
  0x7f   : > { %9491 = vmatpush3.bf16.msra.mxu0 %v12825_v22  ;;  %10337 = vmatpush3.bf16.msra.mxu1 %v12839_v31  ;;  %v12874_v50 = vpack.c.bf16 %v632_v44, %v631_v43  ;;  %v606_v53 = vld [vmem:[%s12793_s24 + $0x68] sm:$0xff]  ;;  %v12883_v54 = vpack.c.bf16 %v622_v49, %v621_v48  ;;  %v623_v56 = vld [vmem:[%s12793_s24 + $0xf0] sm:$0xff]  ;;  %v624_v57 = vld [vmem:[%s12793_s24 + $0xf8] sm:$0xff] }
  0x80   : > { %9492 = vmatprep.subr.bf16.mxu0 %v12831_v25  ;;  %10338 = vmatprep.subr.bf16.mxu1 %v12528_v0  ;;  %v12108_v55 = vld [vmem:[%s15049_s1 + $0x8] ss:$12 sps:$4 sm:$0xff]   ;;  %v12893_v58 = vpack.c.bf16 %v606_v53, %v605_v52  ;;  %v12897_v60 = vpack.c.bf16 %v624_v57, %v623_v56  ;;  %v608_v61 = vld [vmem:[%s12793_s24 + $0x78] sm:$0xff]  ;;  %v12105_v2 = vld [vmem:[%s15049_s1] ss:$12 sps:$4 sm:$0xff]  }
  0x81   : > { %v607_v59 = vld [vmem:[%s12793_s24 + $0x70] sm:$0xff]  ;;  %v12112_v3 = vld [vmem:[%s15049_s1 + $0x20] ss:$12 sps:$4 sm:$0xff]   ;;  %v12109_v5 = vld [vmem:[%s15049_s1 + $0x1c] ss:$12 sps:$4 sm:$0xff]   ;;  %s14951_s24 = scalar_lea.hbm %s15054_s0, %s9483_s14 }
  0x82   : > { %v12908_v1 = vpack.c.bf16 %v608_v61, %v607_v59  ;;  %v12116_v6 = vld [vmem:[%s15049_s1 + $0x38] ss:$12 sps:$4 sm:$0xff]   ;;  %v12113_v10 = vld [vmem:[%s15049_s1 + $0x34] ss:$12 sps:$4 sm:$0xff]   ;;  %v12120_v11 = vld [vmem:[%s15049_s1 + $0x50] ss:$12 sps:$4 sm:$0xff]  }
  0x83   : > { %9493 = vmatpush3.bf16.msra.mxu0 %v12845_v34  ;;  %10339 = vmatpush3.bf16.msra.mxu1 %v12858_v41  ;;  %v12111_v7 = vld [vmem:[%s15049_s1 + $0x18] ss:$12 sps:$4 sm:$0xff]   ;;  %v12115_v12 = vld [vmem:[%s15049_s1 + $0x30] ss:$12 sps:$4 sm:$0xff]   ;;  %v12124_v16 = vld [vmem:[%s15049_s1 + $0x68] ss:$12 sps:$4 sm:$0xff]  }
  0x84   : > { %9494 = vmatprep.subr.bf16.mxu0 %v12850_v37  ;;  %10340 = vmatprep.subr.bf16.mxu1 %v12528_v0  ;;  %v12117_v13 = vld [vmem:[%s15049_s1 + $0x4c] ss:$12 sps:$4 sm:$0xff]   ;;  %v12119_v17 = vld [vmem:[%s15049_s1 + $0x48] ss:$12 sps:$4 sm:$0xff]   ;;  %v12121_v18 = vld [vmem:[%s15049_s1 + $0x64] ss:$12 sps:$4 sm:$0xff]  }
  0x85   : > { %v12123_v19 = vld [vmem:[%s15049_s1 + $0x60] ss:$12 sps:$4 sm:$0xff]   ;;  %v12127_v20 = vld [vmem:[%s15049_s1 + $0x7c] ss:$12 sps:$4 sm:$0xff]   ;;  %v12125_v21 = vld [vmem:[%s15049_s1 + $0x78] ss:$12 sps:$4 sm:$0xff]  }
  0x86   : > { %v12128_v24 = vld [vmem:[%s15049_s1 + $0x94] ss:$12 sps:$4 sm:$0xff]   ;;  %v12130_v26 = vld [vmem:[%s15049_s1 + $0x90] ss:$12 sps:$4 sm:$0xff]   ;;  %v12131_v27 = vld [vmem:[%s15049_s1 + $0xac] ss:$12 sps:$4 sm:$0xff]  }
  0x87   : > { %9495 = vmatpush3.bf16.msra.mxu0 %v12865_v45  ;;  %10341 = vmatpush3.bf16.msra.mxu1 %v12874_v50  ;;  %v12133_v28 = vld [vmem:[%s15049_s1 + $0xa8] ss:$12 sps:$4 sm:$0xff]   ;;  %v12134_v29 = vld [vmem:[%s15049_s1 + $0xc4] ss:$12 sps:$4 sm:$0xff]   ;;  %v12136_v30 = vld [vmem:[%s15049_s1 + $0xc0] ss:$12 sps:$4 sm:$0xff]  }
  0x88   : > { %9496 = vmatprep.subr.bf16.mxu0 %v12869_v47  ;;  %10362 = vmatprep.subr.bf16.mxu1 %v12528_v0  ;;  %v12137_v32 = vld [vmem:[%s15049_s1 + $0xdc] ss:$12 sps:$4 sm:$0xff]   ;;  %v12139_v33 = vld [vmem:[%s15049_s1 + $0xd8] ss:$12 sps:$4 sm:$0xff]   ;;  %v12142_v35 = vld [vmem:[%s15049_s1 + $0xf4] ss:$12 sps:$4 sm:$0xff]  }
  0x89   : > { %v12140_v36 = vld [vmem:[%s15049_s1 + $0xf0] ss:$12 sps:$4 sm:$0xff]   ;;  %v12143_v38 = vld [vmem:[%s15049_s1 + $0x10c] ss:$12 sps:$4 sm:$0xff]   ;;  %v12145_v39 = vld [vmem:[%s15049_s1 + $0x108] ss:$12 sps:$4 sm:$0xff]  }
  0x8a   : > { %10343 = vmatmul.mubr.msk.bf16.vlgmr.msra.gmra.mrb[0].mxu1 %vm756_vm1, %v12108_v55  ;;  %v12146_v40 = vld [vmem:[%s15049_s1 + $0x124] ss:$12 sps:$4 sm:$0xff]   ;;  %v12148_v42 = vld [vmem:[%s15049_s1 + $0x120] ss:$12 sps:$4 sm:$0xff]   ;;  %v12149_v43 = vld [vmem:[%s15049_s1 + $0x13c] ss:$12 sps:$4 sm:$0xff]  }
  0x8b   : > { %9497 = vmatpush3.bf16.msra.mxu0 %v12878_v51  ;;  %10346 = vmatprep.mubr.msk.bf16.mxu1 %vm12529_vm0, %v12528_v0  ;;  %v12151_v44 = vld [vmem:[%s15049_s1 + $0x138] ss:$12 sps:$4 sm:$0xff]   ;;  %v12152_v46 = vld [vmem:[%s15049_s1 + $0x154] ss:$12 sps:$4 sm:$0xff]   ;;  %v12154_v48 = vld [vmem:[%s15049_s1 + $0x150] ss:$12 sps:$4 sm:$0xff]  }
  0x8c   : > { %9498 = vmatprep.subr.bf16.mxu0 %v12883_v54  ;;  %10363 = vmatpush3.bf16.msra.mxu1 %v942_v63  ;;  %v12156_v49 = vld [vmem:[%s15049_s1 + $0xf8] ss:$12 sps:$4 sm:$0xff]   ;;  %v12158_v52 = vld [vmem:[%s15049_s1 + $0x110] ss:$12 sps:$4 sm:$0xff]   ;;  %v12160_v53 = vld [vmem:[%s15049_s1 + $0x128] ss:$12 sps:$4 sm:$0xff]  }
  0x8d   : > { %10384 = vmatprep.subr.bf16.mxu1 %v12528_v0  ;;  %v12162_v55 = vld [vmem:[%s15049_s1 + $0x140] ss:$12 sps:$4 sm:$0xff]   ;;  %v12164_v56 = vld [vmem:[%s15049_s1 + $0x158] ss:$12 sps:$4 sm:$0xff]  }
  0x8f   : > { %9499 = vmatpush3.bf16.msra.mxu0 %v12893_v58 }
  0x90   : > { %9500 = vmatprep.subr.bf16.mxu0 %v12897_v60 }
  0x92   : > { %10347 = vmatmul.mubr.msk.bf16.gmra.mrb[4].mxu1 %vm756_vm1, %v12112_v3 }
  0x93   : > { %9501 = vmatpush3.bf16.msra.mxu0 %v12908_v1  ;;  %10350 = vmatprep.mubr.msk.bf16.mxu1 %vm12529_vm0, %v12528_v0 }
  0x94   : > { %9547 = vmatprep.subr.bf16.mxu0 %v12798_v4 }
  0x96   : > { %805 = vmatmul.mubr.bf16.vlgmr.msra.gmra.mrb[0].mxu0 %v12105_v2 }
  0x97   : > { %812 = vmatprep.mubr.bf16.mxu0 %v12109_v5  ;;  %9548 = vmatpush3.bf16.msra.mxu0 %v12803_v8 }
  0x98   : > { %9549 = vmatprep.subr.bf16.mxu0 %v12805_v9 }
  0x9a   : > { %10351 = vmatmul.mubr.msk.bf16.gmra.mrb[8].mxu1 %vm756_vm1, %v12116_v6 }
  0x9b   : > { %9550 = vmatpush3.bf16.msra.mxu0 %v12813_v14  ;;  %10354 = vmatprep.mubr.msk.bf16.mxu1 %vm12529_vm0, %v12528_v0 }
  0x9c   : > { %9551 = vmatprep.subr.bf16.mxu0 %v12816_v15 }
  0x9e   : > { %813 = vmatmul.mubr.bf16.gmra.mrb[4].mxu0 %v12111_v7 }
  0x9f   : > { %820 = vmatprep.mubr.bf16.mxu0 %v12113_v10  ;;  %9552 = vmatpush3.bf16.msra.mxu0 %v12825_v22 }
  0xa0   : > { %9553 = vmatprep.subr.bf16.mxu0 %v12831_v25 }
  0xa2   : > { %10355 = vmatmul.mubr.msk.bf16.gmra.mrb[12].mxu1 %vm756_vm1, %v12120_v11 }
  0xa3   : > { %9554 = vmatpush3.bf16.msra.mxu0 %v12845_v34  ;;  %10358 = vmatprep.mubr.msk.bf16.mxu1 %vm12529_vm0, %v12528_v0 }
  0xa4   : > { %9555 = vmatprep.subr.bf16.mxu0 %v12850_v37 }
  0xa6   : > { %821 = vmatmul.mubr.bf16.gmra.mrb[8].mxu0 %v12115_v12 }
  0xa7   : > { %828 = vmatprep.mubr.bf16.mxu0 %v12117_v13  ;;  %9556 = vmatpush3.bf16.msra.mxu0 %v12865_v45 }
  0xa8   : > { %9557 = vmatprep.subr.bf16.mxu0 %v12869_v47 }
  0xaa   : > { %10359 = vmatmul.mubr.msk.bf16.gmra.mrb[16].mxu1 %vm756_vm1, %v12124_v16 }
  0xab   : > { %9558 = vmatpush3.bf16.msra.mxu0 %v12878_v51  ;;  %10364 = vmatprep.mubr.msk.bf16.mxu1 %vm12529_vm0, %v12528_v0 }
  0xac   : > { %9559 = vmatprep.subr.bf16.mxu0 %v12883_v54 }
  0xae   : > { %829 = vmatmul.mubr.bf16.gmra.mrb[12].mxu0 %v12119_v17 }
  0xaf   : > { %836 = vmatprep.mubr.bf16.mxu0 %v12121_v18  ;;  %9560 = vmatpush3.bf16.msra.mxu0 %v12893_v58 }
  0xb0   : > { %9561 = vmatprep.subr.bf16.mxu0 %v12897_v60 }
  0xb3   : > { %9562 = vmatpush3.bf16.msra.mxu0 %v12908_v1 }
  0xb4   : > { %9608 = vmatprep.subr.bf16.mxu0 %v12798_v4 }
  0xb6   : > { %837 = vmatmul.mubr.bf16.gmra.mrb[16].mxu0 %v12123_v19 }
  0xb7   : > { %1170 = vmatprep.mubr.bf16.mxu0 %v12127_v20 }
  0xbe   : > { %1171 = vmatmul.mubr.bf16.vlgmr.msra.gmra.mrb[20].mxu0 %v12125_v21 }
  0xbf   : > { %1178 = vmatprep.mubr.bf16.mxu0 %v12128_v24  ;;  %9609 = vmatpush3.bf16.msra.mxu0 %v12803_v8 }
  0xc0   : > { %9610 = vmatprep.subr.bf16.mxu0 %v12805_v9 }
  0xc3   : > { %9611 = vmatpush3.bf16.msra.mxu0 %v12813_v14 }
  0xc4   : > { %9612 = vmatprep.subr.bf16.mxu0 %v12816_v15 }
  0xc6   : > { %1179 = vmatmul.mubr.bf16.gmra.mrb[24].mxu0 %v12130_v26 }
  0xc7   : > { %1186 = vmatprep.mubr.bf16.mxu0 %v12131_v27  ;;  %9613 = vmatpush3.bf16.msra.mxu0 %v12825_v22 }
  0xc8   : > { %9614 = vmatprep.subr.bf16.mxu0 %v12831_v25 }
  0xcb   : > { %9615 = vmatpush3.bf16.msra.mxu0 %v12845_v34 }
  0xcc   : > { %9616 = vmatprep.subr.bf16.mxu0 %v12850_v37 }
  0xce   : > { %1187 = vmatmul.mubr.bf16.gmra.mrb[28].mxu0 %v12133_v28 }
  0xcf   : > { %1194 = vmatprep.mubr.bf16.mxu0 %v12134_v29  ;;  %9617 = vmatpush3.bf16.msra.mxu0 %v12865_v45 }
  0xd0   : > { %9618 = vmatprep.subr.bf16.mxu0 %v12869_v47 }
  0xd3   : > { %9619 = vmatpush3.bf16.msra.mxu0 %v12878_v51 }
  0xd4   : > { %9620 = vmatprep.subr.bf16.mxu0 %v12883_v54 }
  0xd6   : > { %1195 = vmatmul.mubr.bf16.gmra.mrb[32].mxu0 %v12136_v30 }
  0xd7   : > { %9621 = vmatpush3.bf16.msra.mxu0 %v12893_v58  ;;  %1202 = vmatprep.mubr.bf16.mxu0 %v12137_v32 }
  0xd8   : > { %9622 = vmatprep.subr.bf16.mxu0 %v12897_v60 }
  0xdb   : > { %9623 = vmatpush3.bf16.msra.mxu0 %v12908_v1 }
  0xdc   : > { %10434 = vmatprep.subr.bf16.mxu0 %v12528_v0 }
  0xde   : > { %1203 = vmatmul.mubr.bf16.gmra.mrb[36].mxu0 %v12139_v33 }
  0xdf   : > { %1535 = vmatprep.mubr.bf16.mxu0 %v12142_v35 }
  0xe6   : > { %1536 = vmatmul.mubr.bf16.vlgmr.msra.gmra.mrb[40].mxu0 %v12140_v36 }
  0xe7   : > { %10435 = vmatpush3.bf16.msra.mxu0 %v12827_v23  ;;  %1543 = vmatprep.mubr.bf16.mxu0 %v12143_v38 }
  0xe8   : > { %10436 = vmatprep.subr.bf16.mxu0 %v12528_v0 }
  0xeb   : > { %10437 = vmatpush3.bf16.msra.mxu0 %v12839_v31 }
  0xec   : > { %10438 = vmatprep.subr.bf16.mxu0 %v12528_v0 }
  0xee   : > { %1544 = vmatmul.mubr.bf16.gmra.mrb[44].mxu0 %v12145_v39 }
  0xef   : > { %10439 = vmatpush3.bf16.msra.mxu0 %v12858_v41  ;;  %1551 = vmatprep.mubr.bf16.mxu0 %v12146_v40 }
  0xf0   : > { %10440 = vmatprep.subr.bf16.mxu0 %v12528_v0 }
  0xf3   : > { %10441 = vmatpush3.bf16.msra.mxu0 %v12874_v50 }
  0xf4   : > { %9669 = vmatprep.subr.bf16.mxu0 %v12798_v4 }
  0xf6   : > { %1552 = vmatmul.mubr.bf16.gmra.mrb[48].mxu0 %v12148_v42 }
  0xf7   : > { %1559 = vmatprep.mubr.bf16.mxu0 %v12149_v43 }
  0xfe   : > { %1560 = vmatmul.mubr.bf16.gmra.mrb[52].mxu0 %v12151_v44 }
  0xff   : > { %1567 = vmatprep.mubr.bf16.mxu0 %v12152_v46 }
 0x106   : > { %1568 = vmatmul.mubr.bf16.gmra.mrb[56].mxu0 %v12154_v48 }
 0x107   : > { %10442 = vmatprep.mubr.msk.bf16.mxu0 %vm12529_vm0, %v12528_v0 }
 0x10e   : > { %10443 = vmatmul.mubr.msk.bf16.vlgmr.msra.gmra.mrb[60].mxu0 %vm756_vm1, %v12156_v49 }
 0x10f   : > { %10446 = vmatprep.mubr.msk.bf16.mxu0 %vm12529_vm0, %v12528_v0  ;;  %9670 = vmatpush3.bf16.msra.mxu0 %v12803_v8 }
 0x110   : > { %9671 = vmatprep.subr.bf16.mxu0 %v12805_v9 }
 0x113   : > { %9672 = vmatpush3.bf16.msra.mxu0 %v12813_v14 }
 0x114   : > { %9673 = vmatprep.subr.bf16.mxu0 %v12816_v15 }
 0x116   : > { %10447 = vmatmul.mubr.msk.bf16.gmra.mrb[64].mxu0 %vm756_vm1, %v12158_v52 }
 0x117   : > { %10450 = vmatprep.mubr.msk.bf16.mxu0 %vm12529_vm0, %v12528_v0  ;;  %9674 = vmatpush3.bf16.msra.mxu0 %v12825_v22 }
 0x118   : > { %9675 = vmatprep.subr.bf16.mxu0 %v12831_v25 }
 0x11b   : > { %9676 = vmatpush3.bf16.msra.mxu0 %v12845_v34 }
 0x11c   : > { %9677 = vmatprep.subr.bf16.mxu0 %v12850_v37 }
 0x11e   : > { %10451 = vmatmul.mubr.msk.bf16.gmra.mrb[68].mxu0 %vm756_vm1, %v12160_v53 }
 0x11f   : > { %10454 = vmatprep.mubr.msk.bf16.mxu0 %vm12529_vm0, %v12528_v0  ;;  %9678 = vmatpush3.bf16.msra.mxu0 %v12865_v45 }
 0x120   : > { %9679 = vmatprep.subr.bf16.mxu0 %v12869_v47 }
 0x123   : > { %9680 = vmatpush3.bf16.msra.mxu0 %v12878_v51 }
 0x124   : > { %9681 = vmatprep.subr.bf16.mxu0 %v12883_v54 }
 0x126   : > { %10455 = vmatmul.mubr.msk.bf16.gmra.mrb[72].mxu0 %vm756_vm1, %v12162_v55 }
 0x127   : > { %10458 = vmatprep.mubr.msk.bf16.mxu0 %vm12529_vm0, %v12528_v0  ;;  %9682 = vmatpush3.bf16.msra.mxu0 %v12893_v58 }
 0x128   : > { %9683 = vmatprep.subr.bf16.mxu0 %v12897_v60 }
 0x12b   : > { %9684 = vmatpush3.bf16.msra.mxu0 %v12908_v1 }
 0x12c   : > { %9730 = vmatprep.subr.bf16.mxu0 %v12798_v4 }
 0x12e   : > { %10459 = vmatmul.mubr.msk.bf16.gmra.mrb[76].mxu0 %vm756_vm1, %v12164_v56 }
 0x15d   : > { %v879_v57 = vpop.f32.mrb[0].mxu1 }
 0x15e   : > { %v10344_v59 = vpop.f32.mrb[1].mxu1 }
 0x15f   : > { %v882_v61 = vpop.f32.mrb[2].mxu1 }
 0x160   : > { %v10345_v62 = vpop.f32.mrb[3].mxu1 }
 0x165   : > { %v887_v63 = vpop.f32.mrb[4].mxu1 }
 0x166   : > { %v10348_v2 = vpop.f32.mrb[5].mxu1 }
 0x167   : > { %v890_v5 = vpop.f32.mrb[6].mxu1 }
 0x168   : > { %v10349_v7 = vpop.f32.mrb[7].mxu1 }
 0x169   : > { %v9502_v3 = vpop.f32.mrb[0].mxu0 }
 0x16a   : > { %v9503_v6 = vpop.f32.mrb[1].mxu0 }
 0x16b   : > { %v9504_v10 = vadd.f32 %v9503_v6, %v9502_v3  ;;  %v9505_v11 = vpop.f32.mrb[2].mxu0 }
 0x16c   : > { %v9506_v12 = vpop.f32.mrb[3].mxu0 }
 0x16d   : > { %v880_v13 = vadd.f32 %v9504_v10, %v879_v57  ;;  %v9507_v16 = vadd.f32 %v9506_v12, %v9505_v11  ;;  %v895_v18 = vpop.f32.mrb[8].mxu1 }
 0x16e   : > { %v10352_v19 = vpop.f32.mrb[9].mxu1 }
 0x16f   : > { %v883_v17 = vadd.f32 %v9507_v16, %v882_v61  ;;  %v898_v24 = vpop.f32.mrb[10].mxu1 }
 0x170   : > { %v10353_v27 = vpop.f32.mrb[11].mxu1 }
 0x171   : > { %v918_v20 = vpack.c.bf16 %v883_v17, %v880_v13  ;;  %v9508_v21 = vpop.f32.mrb[4].mxu0 }
 0x172   : > { %v9509_v26 = vpop.f32.mrb[5].mxu0 }
 0x173   : > { %v9510_v28 = vadd.f32 %v9509_v26, %v9508_v21  ;;  %v9511_v29 = vpop.f32.mrb[6].mxu0  ;;  %10365 = vmatmul.mubr.msk.bf16.vlgmr.msra.gmra.mrb[20].mxu1 %vm924_vm3, %v918_v20 }
 0x174   : > { %v9512_v30 = vpop.f32.mrb[7].mxu0  ;;  %10385 = vmatpush3.bf16.msra.mxu1 %v12827_v23  ;;  %10368 = vmatprep.mubr.msk.bf16.mxu1 %vm12529_vm0, %v12528_v0 }
 0x175   : > { %v888_v32 = vadd.f32 %v9510_v28, %v887_v63  ;;  %v9513_v33 = vadd.f32 %v9512_v30, %v9511_v29  ;;  %10386 = vmatprep.subr.bf16.mxu1 %v12528_v0  ;;  %v903_v36 = vpop.f32.mrb[12].mxu1 }
 0x176   : > { %v10356_v38 = vpop.f32.mrb[13].mxu1 }
 0x177   : > { %v891_v35 = vadd.f32 %v9513_v33, %v890_v5  ;;  %v906_v42 = vpop.f32.mrb[14].mxu1  ;;  %v8862_v33 = vld [vmem:[%s14995_s2 + $0x4] sm:$0xf] }
 0x178   : > { %10387 = vmatpush3.bf16.msra.mxu1 %v12839_v31  ;;  %v10357_v44 = vpop.f32.mrb[15].mxu1  ;;  %v1307_v38 = vsel %vm940_vm2, %v8862_v33, 0 }
 0x179   : > { %v9514_v39 = vpop.f32.mrb[8].mxu0  ;;  %v919_v40 = vpack.c.bf16 %v891_v35, %v888_v32  ;;  %10388 = vmatprep.subr.bf16.mxu1 %v12528_v0  ;;  %v12155_v35 = vld [vmem:[%s15049_s1 + $0x80] ss:$12 sps:$4 sm:$0xff]  }
 0x17a   : > { %v9515_v43 = vpop.f32.mrb[9].mxu0 }
 0x17b   : > { %v9516_v46 = vadd.f32 %v9515_v43, %v9514_v39  ;;  %v9517_v48 = vpop.f32.mrb[10].mxu0  ;;  %10369 = vmatmul.mubr.msk.bf16.gmra.mrb[24].mxu1 %vm924_vm3, %v919_v40  ;;  %v12157_v43 = vld [vmem:[%s15049_s1 + $0x98] ss:$12 sps:$4 sm:$0xff]  }
 0x17c   : > { %v9518_v49 = vpop.f32.mrb[11].mxu0  ;;  %10372 = vmatprep.mubr.msk.bf16.mxu1 %vm12529_vm0, %v12528_v0  ;;  %10389 = vmatpush3.bf16.msra.mxu1 %v12858_v41 }
 0x17d   : > { %v896_v52 = vadd.f32 %v9516_v46, %v895_v18  ;;  %v9519_v53 = vadd.f32 %v9518_v49, %v9517_v48  ;;  %10390 = vmatprep.subr.bf16.mxu1 %v12528_v0  ;;  %v911_v56 = vpop.f32.mrb[16].mxu1 }
 0x17e   : > { %v10360_v57 = vpop.f32.mrb[17].mxu1 }
 0x17f   : > { %v899_v55 = vadd.f32 %v9519_v53, %v898_v24  ;;  %v914_v62 = vpop.f32.mrb[18].mxu1 }
 0x180   : > { %10391 = vmatpush3.bf16.msra.mxu1 %v12874_v50  ;;  %v10361_v2 = vpop.f32.mrb[19].mxu1 }
 0x181   : > { %v9520_v59 = vpop.f32.mrb[12].mxu0  ;;  %v920_v61 = vpack.c.bf16 %v899_v55, %v896_v52  ;;  %10412 = vmatprep.subr.bf16.mxu1 %v12528_v0  ;;  %v12159_v52 = vld [vmem:[%s15049_s1 + $0xb0] ss:$12 sps:$4 sm:$0xff]  }
 0x182   : > { %v9521_v63 = vpop.f32.mrb[13].mxu0 }
 0x183   : > { %v9522_v3 = vadd.f32 %v9521_v63, %v9520_v59  ;;  %v9523_v5 = vpop.f32.mrb[14].mxu0  ;;  %10373 = vmatmul.mubr.msk.bf16.gmra.mrb[28].mxu1 %vm924_vm3, %v920_v61  ;;  %v12161_v59 = vld [vmem:[%s15049_s1 + $0xc8] ss:$12 sps:$4 sm:$0xff]   ;;  %v12163_v61 = vld [vmem:[%s15049_s1 + $0xe0] ss:$12 sps:$4 sm:$0xff]  }
 0x184   : > { %v9524_v6 = vpop.f32.mrb[15].mxu0  ;;  %10376 = vmatprep.mubr.msk.bf16.mxu1 %vm12529_vm0, %v12528_v0 }
 0x185   : > { %v904_v7 = vadd.f32 %v9522_v3, %v903_v36  ;;  %v9525_v10 = vadd.f32 %v9524_v6, %v9523_v5 }
 0x187   : > { %v907_v11 = vadd.f32 %v9525_v10, %v906_v42 }
 0x189   : > { %v9526_v12 = vpop.f32.mrb[16].mxu0  ;;  %v921_v13 = vpack.c.bf16 %v907_v11, %v904_v7 }
 0x18a   : > { %v9527_v16 = vpop.f32.mrb[17].mxu0 }
 0x18b   : > { %v9528_v17 = vadd.f32 %v9527_v16, %v9526_v12  ;;  %v9529_v18 = vpop.f32.mrb[18].mxu0  ;;  %10377 = vmatmul.mubr.msk.bf16.gmra.mrb[32].mxu1 %vm924_vm3, %v921_v13 }
 0x18c   : > { %v9530_v19 = vpop.f32.mrb[19].mxu0  ;;  %10380 = vmatprep.mubr.msk.bf16.mxu1 %vm12529_vm0, %v12528_v0 }
 0x18d   : > { %v912_v20 = vadd.f32 %v9528_v17, %v911_v56  ;;  %v9531_v21 = vadd.f32 %v9530_v19, %v9529_v18 }
 0x18f   : > { %v915_v24 = vadd.f32 %v9531_v21, %v914_v62 }
 0x191   : > { %v922_v26 = vpack.c.bf16 %v915_v24, %v912_v20  ;;  %v9563_v27 = vpop.f32.mrb[20].mxu0 }
 0x192   : > { %v9564_v28 = vpop.f32.mrb[21].mxu0 }
 0x193   : > { %10381 = vmatmul.mubr.msk.bf16.gmra.mrb[36].mxu1 %vm924_vm3, %v922_v26  ;;  %v9566_v29 = vpop.f32.mrb[22].mxu0  ;;  %v13132_v30 = vadd.f32 %v9564_v28, %v9563_v27 }
 0x194   : > { %10392 = vmatprep.mubr.msk.bf16.mxu1 %vm12529_vm0, %v12528_v0  ;;  %v9567_v32 = vpop.f32.mrb[23].mxu0 }
 0x195   : > { %v13171_v7 = vadd.f32 %v9567_v32, %v9566_v29 }
 0x199   : > { %v9569_v36 = vpop.f32.mrb[24].mxu0 }
 0x19a   : > { %v9570_v39 = vpop.f32.mrb[25].mxu0 }
 0x19b   : > { %10393 = vmatmul.mubr.msk.bf16.vlgmr.msra.gmra.mrb[40].mxu1 %vm756_vm1, %v12155_v35  ;;  %v9572_v40 = vpop.f32.mrb[26].mxu0  ;;  %v13173_v18 = vadd.f32 %v9570_v39, %v9569_v36 }
 0x19c   : > { %10396 = vmatprep.mubr.msk.bf16.mxu1 %vm12529_vm0, %v12528_v0  ;;  %v9573_v42 = vpop.f32.mrb[27].mxu0  ;;  %10413 = vmatpush3.bf16.msra.mxu1 %v1307_v38 }
 0x19d   : > { %10462 = vmatprep.subr.bf16.mxu1 %v12528_v0  ;;  %v13175_v19 = vadd.f32 %v9573_v42, %v9572_v40 }
 0x1a1   : > { %v9575_v44 = vpop.f32.mrb[28].mxu0 }
 0x1a2   : > { %v9576_v46 = vpop.f32.mrb[29].mxu0 }
 0x1a3   : > { %10397 = vmatmul.mubr.msk.bf16.gmra.mrb[44].mxu1 %vm756_vm1, %v12157_v43  ;;  %v9578_v48 = vpop.f32.mrb[30].mxu0  ;;  %v13177_v33 = vadd.f32 %v9576_v46, %v9575_v44 }
 0x1a4   : > { %10400 = vmatprep.mubr.msk.bf16.mxu1 %vm12529_vm0, %v12528_v0  ;;  %v9579_v49 = vpop.f32.mrb[31].mxu0 }
 0x1a5   : > { %v13179_v29 = vadd.f32 %v9579_v49, %v9578_v48 }
 0x1a9   : > { %v9581_v53 = vpop.f32.mrb[32].mxu0 }
 0x1aa   : > { %v9582_v55 = vpop.f32.mrb[33].mxu0 }
 0x1ab   : > { %10401 = vmatmul.mubr.msk.bf16.gmra.mrb[48].mxu1 %vm756_vm1, %v12159_v52  ;;  %v9584_v56 = vpop.f32.mrb[34].mxu0  ;;  %v13181_v36 = vadd.f32 %v9582_v55, %v9581_v53 }
 0x1ac   : > { %10404 = vmatprep.mubr.msk.bf16.mxu1 %vm12529_vm0, %v12528_v0  ;;  %v9585_v57 = vpop.f32.mrb[35].mxu0 }
 0x1ad   : > { %v13183_v39 = vadd.f32 %v9585_v57, %v9584_v56 }
 0x1b1   : > { %v9587_v62 = vpop.f32.mrb[36].mxu0 }
 0x1b2   : > { %v9588_v63 = vpop.f32.mrb[37].mxu0 }
 0x1b3   : > { %10405 = vmatmul.mubr.msk.bf16.gmra.mrb[52].mxu1 %vm756_vm1, %v12161_v59  ;;  %v9590_v2 = vpop.f32.mrb[38].mxu0  ;;  %v13185_v44 = vadd.f32 %v9588_v63, %v9587_v62  ;;  %v12167_v62 = vld [vmem:[%s15049_s1 + $0x16c] ss:$12 sps:$4 sm:$0xff]  }
 0x1b4   : > { %10408 = vmatprep.mubr.msk.bf16.mxu1 %vm12529_vm0, %v12528_v0  ;;  %v9591_v3 = vpop.f32.mrb[39].mxu0  ;;  %1900 = vmatprep.mubr.bf16.mxu0 %v12167_v62  ;;  %v12174_v62 = vld [vmem:[%s15049_s1 + $0x1b4] ss:$12 sps:$4 sm:$0xff]  }
 0x1b5   : > { %v13187_v46 = vadd.f32 %v9591_v3, %v9590_v2  ;;  %v12165_v2 = vld [vmem:[%s15049_s1 + $0x168] ss:$12 sps:$4 sm:$0xff]  }
 0x1b6   : > { %1901 = vmatmul.mubr.bf16.vlgmr.msra.gmra.mrb[80].mxu0 %v12165_v2 }
 0x1b7   : > { %9731 = vmatpush3.bf16.msra.mxu0 %v12803_v8 }
 0x1b8   : > { %9732 = vmatprep.subr.bf16.mxu0 %v12805_v9 }
 0x1b9   : > { %v9624_v5 = vpop.f32.mrb[40].mxu0 }
 0x1ba   : > { %v9625_v6 = vpop.f32.mrb[41].mxu0 }
 0x1bb   : > { %10409 = vmatmul.mubr.msk.bf16.gmra.mrb[56].mxu1 %vm756_vm1, %v12163_v61  ;;  %v9626_v10 = vadd.f32 %v9625_v6, %v9624_v5  ;;  %v9627_v11 = vpop.f32.mrb[42].mxu0  ;;  %9733 = vmatpush3.bf16.msra.mxu0 %v12813_v14 }
 0x1bc   : > { %10414 = vmatprep.mubr.msk.bf16.mxu1 %vm12529_vm0, %v12528_v0  ;;  %v9628_v12 = vpop.f32.mrb[43].mxu0  ;;  %9734 = vmatprep.subr.bf16.mxu0 %v12816_v15 }
 0x1bd   : > { %v9629_v13 = vadd.f32 %v9628_v12, %v9627_v11 }
 0x1bf   : > { %9735 = vmatpush3.bf16.msra.mxu0 %v12825_v22 }
 0x1c0   : > { %9736 = vmatprep.subr.bf16.mxu0 %v12831_v25 }
 0x1c1   : > { %v9630_v16 = vpop.f32.mrb[44].mxu0 }
 0x1c2   : > { %v9631_v17 = vpop.f32.mrb[45].mxu0 }
 0x1c3   : > { %v9632_v20 = vadd.f32 %v9631_v17, %v9630_v16  ;;  %v9633_v21 = vpop.f32.mrb[46].mxu0  ;;  %9737 = vmatpush3.bf16.msra.mxu0 %v12845_v34 }
 0x1c4   : > { %v9634_v24 = vpop.f32.mrb[47].mxu0  ;;  %9738 = vmatprep.subr.bf16.mxu0 %v12850_v37 }
 0x1c5   : > { %v9635_v26 = vadd.f32 %v9634_v24, %v9633_v21 }
 0x1c7   : > { %9739 = vmatpush3.bf16.msra.mxu0 %v12865_v45 }
 0x1c8   : > { %9740 = vmatprep.subr.bf16.mxu0 %v12869_v47 }
 0x1c9   : > { %v9636_v27 = vpop.f32.mrb[48].mxu0 }
 0x1ca   : > { %v9637_v28 = vpop.f32.mrb[49].mxu0 }
 0x1cb   : > { %v9638_v32 = vadd.f32 %v9637_v28, %v9636_v27  ;;  %v9639_v35 = vpop.f32.mrb[50].mxu0  ;;  %9741 = vmatpush3.bf16.msra.mxu0 %v12878_v51 }
 0x1cc   : > { %v9640_v38 = vpop.f32.mrb[51].mxu0  ;;  %9742 = vmatprep.subr.bf16.mxu0 %v12883_v54 }
 0x1cd   : > { %v9641_v43 = vadd.f32 %v9640_v38, %v9639_v35  ;;  %v12168_v35 = vld [vmem:[%s15049_s1 + $0x184] ss:$12 sps:$4 sm:$0xff]  }
 0x1ce   : > { %1908 = vmatprep.mubr.bf16.mxu0 %v12168_v35 }
 0x1cf   : > { %9743 = vmatpush3.bf16.msra.mxu0 %v12893_v58 }
 0x1d0   : > { %9744 = vmatprep.subr.bf16.mxu0 %v12897_v60 }
 0x1d1   : > { %v9642_v52 = vpop.f32.mrb[52].mxu0 }
 0x1d2   : > { %v9643_v59 = vpop.f32.mrb[53].mxu0 }
 0x1d3   : > { %v9644_v40 = vadd.f32 %v9643_v59, %v9642_v52  ;;  %v9645_v42 = vpop.f32.mrb[54].mxu0  ;;  %9745 = vmatpush3.bf16.msra.mxu0 %v12908_v1 }
 0x1d4   : > { %v9646_v61 = vpop.f32.mrb[55].mxu0  ;;  %10534 = vmatprep.subr.bf16.mxu0 %v12528_v0 }
 0x1d5   : > { %v9647_v5 = vadd.f32 %v9646_v61, %v9645_v42 }
 0x1d9   : > { %v9648_v6 = vpop.f32.mrb[56].mxu0 }
 0x1da   : > { %v9649_v11 = vpop.f32.mrb[57].mxu0 }
 0x1db   : > { %v9650_v48 = vadd.f32 %v9649_v11, %v9648_v6  ;;  %v9651_v49 = vpop.f32.mrb[58].mxu0  ;;  %v12171_v11 = vld [vmem:[%s15049_s1 + $0x19c] ss:$12 sps:$4 sm:$0xff]  }
 0x1dc   : > { %v9652_v12 = vpop.f32.mrb[59].mxu0 }
 0x1dd   : > { %v13189_v16 = vadd.f32 %v9652_v12, %v9651_v49 }
 0x1e1   : > { %v1610_v17 = vpop.f32.mrb[60].mxu0 }
 0x1e2   : > { %v13191_v53 = vadd.f32 %v9626_v10, %v1610_v17  ;;  %v10444_v55 = vpop.f32.mrb[61].mxu0 }
 0x1e3   : > { %v1613_v56 = vpop.f32.mrb[62].mxu0 }
 0x1e4   : > { %v13193_v57 = vadd.f32 %v9629_v13, %v1613_v56  ;;  %v10445_v21 = vpop.f32.mrb[63].mxu0 }
 0x1e6   : > { %v1649_v63 = vpack.c.bf16 %v13193_v57, %v13191_v53  ;;  %v12197_v57 = vld [vmem:[%s15049_s1 + $0x188] ss:$12 sps:$4 sm:$0xff]  }
 0x1e9   : > { %v1618_v3 = vpop.f32.mrb[64].mxu0 }
 0x1ea   : > { %v13204_v10 = vadd.f32 %v9632_v20, %v1618_v3  ;;  %v10448_v13 = vpop.f32.mrb[65].mxu0  ;;  %v12170_v20 = vld [vmem:[%s15049_s1 + $0x180] ss:$12 sps:$4 sm:$0xff]  }
 0x1eb   : > { %v1621_v24 = vpop.f32.mrb[66].mxu0  ;;  %1909 = vmatmul.mubr.bf16.gmra.mrb[84].mxu0 %v12170_v20  ;;  %v12177_v20 = vld [vmem:[%s15049_s1 + $0x1cc] ss:$12 sps:$4 sm:$0xff]  }
 0x1ec   : > { %v13207_v27 = vadd.f32 %v9635_v26, %v1621_v24  ;;  %v10449_v28 = vpop.f32.mrb[67].mxu0  ;;  %1916 = vmatprep.mubr.bf16.mxu0 %v12171_v11  ;;  %v12186_v11 = vld [vmem:[%s15049_s1 + $0x214] ss:$12 sps:$4 sm:$0xff]  }
 0x1ee   : > { %v1650_v38 = vpack.c.bf16 %v13207_v27, %v13204_v10 }
 0x1f1   : > { %v1626_v26 = vpop.f32.mrb[68].mxu0 }
 0x1f2   : > { %v13220_v52 = vadd.f32 %v9638_v32, %v1626_v26  ;;  %v10452_v59 = vpop.f32.mrb[69].mxu0  ;;  %v12173_v32 = vld [vmem:[%s15049_s1 + $0x198] ss:$12 sps:$4 sm:$0xff]  }
 0x1f3   : > { %v1629_v42 = vpop.f32.mrb[70].mxu0  ;;  %1917 = vmatmul.mubr.bf16.gmra.mrb[88].mxu0 %v12173_v32  ;;  %v12180_v59 = vld [vmem:[%s15049_s1 + $0x1e0] ss:$12 sps:$4 sm:$0xff]   ;;  %v12188_v32 = vld [vmem:[%s15049_s1 + $0x210] ss:$12 sps:$4 sm:$0xff]  }
 0x1f4   : > { %v13223_v61 = vadd.f32 %v9641_v43, %v1629_v42  ;;  %v10453_v6 = vpop.f32.mrb[71].mxu0  ;;  %1924 = vmatprep.mubr.bf16.mxu0 %v12174_v62  ;;  %v12183_v42 = vld [vmem:[%s15049_s1 + $0x1fc] ss:$12 sps:$4 sm:$0xff]  }
 0x1f5   : > { %v12185_v6 = vld [vmem:[%s15049_s1 + $0x1f8] ss:$12 sps:$4 sm:$0xff]   ;;  %v12196_v62 = vld [vmem:[%s15049_s1 + $0x1e8] ss:$12 sps:$4 sm:$0xff]  }
 0x1f6   : > { %v1651_v49 = vpack.c.bf16 %v13223_v61, %v13220_v52  ;;  %v12199_v61 = vld [vmem:[%s15049_s1 + $0x1a0] ss:$12 sps:$4 sm:$0xff]  }
 0x1f9   : > { %v1634_v43 = vpop.f32.mrb[72].mxu0 }
 0x1fa   : > { %v13236_v12 = vadd.f32 %v9644_v40, %v1634_v43  ;;  %v10456_v17 = vpop.f32.mrb[73].mxu0  ;;  %v12176_v40 = vld [vmem:[%s15049_s1 + $0x1b0] ss:$12 sps:$4 sm:$0xff]   ;;  %v12189_v43 = vld [vmem:[%s15049_s1 + $0x22c] ss:$12 sps:$4 sm:$0xff]  }
 0x1fb   : > { %v1637_v55 = vpop.f32.mrb[74].mxu0  ;;  %1925 = vmatmul.mubr.bf16.gmra.mrb[92].mxu0 %v12176_v40  ;;  %v12191_v17 = vld [vmem:[%s15049_s1 + $0x228] ss:$12 sps:$4 sm:$0xff]   ;;  %v12198_v40 = vld [vmem:[%s15049_s1 + $0x200] ss:$12 sps:$4 sm:$0xff]  }
 0x1fc   : > { %v13239_v56 = vadd.f32 %v9647_v5, %v1637_v55  ;;  %v10457_v21 = vpop.f32.mrb[75].mxu0  ;;  %1932 = vmatprep.mubr.bf16.mxu0 %v12177_v20  ;;  %v12192_v55 = vld [vmem:[%s15049_s1 + $0x244] ss:$12 sps:$4 sm:$0xff]  }
 0x1fd   : > { %v12194_v21 = vld [vmem:[%s15049_s1 + $0x240] ss:$12 sps:$4 sm:$0xff]  }
 0x1fe   : > { %v1652_v2 = vpack.c.bf16 %v13239_v56, %v13236_v12 }
 0x201   : > { %v1642_v5 = vpop.f32.mrb[76].mxu0 }
 0x202   : > { %v13252_v3 = vadd.f32 %v9650_v48, %v1642_v5  ;;  %v10460_v13 = vpop.f32.mrb[77].mxu0  ;;  %v12179_v48 = vld [vmem:[%s15049_s1 + $0x1c8] ss:$12 sps:$4 sm:$0xff]   ;;  %v12200_v5 = vld [vmem:[%s15049_s1 + $0x218] ss:$12 sps:$4 sm:$0xff]  }
 0x203   : > { %v1645_v24 = vpop.f32.mrb[78].mxu0  ;;  %1933 = vmatmul.mubr.bf16.gmra.mrb[96].mxu0 %v12179_v48  ;;  %v12202_v13 = vld [vmem:[%s15049_s1 + $0x230] ss:$12 sps:$4 sm:$0xff]  }
 0x204   : > { %v13256_v28 = vadd.f32 %v13189_v16, %v1645_v24  ;;  %v10461_v35 = vpop.f32.mrb[79].mxu0  ;;  %v12182_v16 = vld [vmem:[%s15049_s1 + $0x1e4] ss:$12 sps:$4 sm:$0xff]   ;;  %v12204_v24 = vld [vmem:[%s15049_s1 + $0x248] ss:$12 sps:$4 sm:$0xff]  }
 0x205   : > { %2265 = vmatprep.mubr.bf16.mxu0 %v12182_v16 }
 0x206   : > { %v1653_v26 = vpack.c.bf16 %v13256_v28, %v13252_v3  ;;  %v12201_v3 = vld [vmem:[%s15049_s1 + $0x1b8] ss:$12 sps:$4 sm:$0xff]  }
 0x20b   : > { %2266 = vmatmul.mubr.bf16.vlgmr.msra.gmra.mrb[100].mxu0 %v12180_v59  ;;  %v8908_v59 = vld [vmem:[%s14995_s2 + $0x8] sm:$0xf] }
 0x20c   : > { %10535 = vmatpush3.bf16.msra.mxu0 %v12827_v23  ;;  %2273 = vmatprep.mubr.bf16.mxu0 %v12183_v42 }
 0x20d   : > { %10536 = vmatprep.subr.bf16.mxu0 %v12528_v0 }
 0x210   : > { %10537 = vmatpush3.bf16.msra.mxu0 %v12839_v31 }
 0x211   : > { %10538 = vmatprep.subr.bf16.mxu0 %v12528_v0 }
 0x213   : > { %2274 = vmatmul.mubr.bf16.gmra.mrb[104].mxu0 %v12185_v6 }
 0x214   : > { %10539 = vmatpush3.bf16.msra.mxu0 %v12858_v41  ;;  %2281 = vmatprep.mubr.bf16.mxu0 %v12186_v11 }
 0x215   : > { %10540 = vmatprep.subr.bf16.mxu0 %v12528_v0 }
 0x218   : > { %10541 = vmatpush3.bf16.msra.mxu0 %v12874_v50 }
 0x219   : > { %9791 = vmatprep.subr.bf16.mxu0 %v12798_v4 }
 0x21b   : > { %2282 = vmatmul.mubr.bf16.gmra.mrb[108].mxu0 %v12188_v32  ;;  %v1672_v32 = vsel %vm940_vm2, %v8908_v59, 0 }
 0x21c   : > { %2289 = vmatprep.mubr.bf16.mxu0 %v12189_v43 }
 0x223   : > { %2290 = vmatmul.mubr.bf16.gmra.mrb[112].mxu0 %v12191_v17 }
 0x224   : > { %2297 = vmatprep.mubr.bf16.mxu0 %v12192_v55 }
 0x22b   : > { %2298 = vmatmul.mubr.bf16.gmra.mrb[116].mxu0 %v12194_v21 }
 0x22c   : > { %10542 = vmatprep.mubr.msk.bf16.mxu0 %vm12529_vm0, %v12528_v0 }
 0x233   : > { %10543 = vmatmul.mubr.msk.bf16.vlgmr.msra.gmra.mrb[120].mxu0 %vm756_vm1, %v12196_v62 }
 0x234   : > { %10546 = vmatprep.mubr.msk.bf16.mxu0 %vm12529_vm0, %v12528_v0  ;;  %9792 = vmatpush3.bf16.msra.mxu0 %v12803_v8 }
 0x235   : > { %9793 = vmatprep.subr.bf16.mxu0 %v12805_v9 }
 0x238   : > { %9794 = vmatpush3.bf16.msra.mxu0 %v12813_v14 }
 0x239   : > { %9795 = vmatprep.subr.bf16.mxu0 %v12816_v15 }
 0x23b   : > { %10547 = vmatmul.mubr.msk.bf16.gmra.mrb[124].mxu0 %vm756_vm1, %v12198_v40 }
 0x23c   : > { %10550 = vmatprep.mubr.msk.bf16.mxu0 %vm12529_vm0, %v12528_v0  ;;  %9796 = vmatpush3.bf16.msra.mxu0 %v12825_v22 }
 0x23d   : > { %9797 = vmatprep.subr.bf16.mxu0 %v12831_v25 }
 0x240   : > { %9798 = vmatpush3.bf16.msra.mxu0 %v12845_v34 }
 0x241   : > { %9799 = vmatprep.subr.bf16.mxu0 %v12850_v37 }
 0x243   : > { %10551 = vmatmul.mubr.msk.bf16.gmra.mrb[128].mxu0 %vm756_vm1, %v12200_v5 }
 0x244   : > { %10554 = vmatprep.mubr.msk.bf16.mxu0 %vm12529_vm0, %v12528_v0  ;;  %9800 = vmatpush3.bf16.msra.mxu0 %v12865_v45 }
 0x245   : > { %9801 = vmatprep.subr.bf16.mxu0 %v12869_v47 }
 0x248   : > { %9802 = vmatpush3.bf16.msra.mxu0 %v12878_v51 }
 0x249   : > { %9803 = vmatprep.subr.bf16.mxu0 %v12883_v54 }
 0x24b   : > { %10555 = vmatmul.mubr.msk.bf16.gmra.mrb[132].mxu0 %vm756_vm1, %v12202_v13 }
 0x24c   : > { %10558 = vmatprep.mubr.msk.bf16.mxu0 %vm12529_vm0, %v12528_v0  ;;  %9804 = vmatpush3.bf16.msra.mxu0 %v12893_v58 }
 0x24d   : > { %9805 = vmatprep.subr.bf16.mxu0 %v12897_v60 }
 0x250   : > { %9806 = vmatpush3.bf16.msra.mxu0 %v12908_v1 }
 0x251   : > { %9852 = vmatprep.subr.bf16.mxu0 %v12798_v4 }
 0x253   : > { %10559 = vmatmul.mubr.msk.bf16.gmra.mrb[136].mxu0 %vm756_vm1, %v12204_v24 }
 0x26e   : > { %v1245_v35 = vpop.f32.mrb[40].mxu1 }
 0x26f   : > { %v1246_v20 = vadd.f32 %v13132_v30, %v1245_v35  ;;  %v10394_v48 = vpop.f32.mrb[41].mxu1 }
 0x270   : > { %v1248_v16 = vpop.f32.mrb[42].mxu1 }
 0x271   : > { %v1249_v42 = vadd.f32 %v13171_v7, %v1248_v16  ;;  %v10395_v6 = vpop.f32.mrb[43].mxu1 }
 0x273   : > { %v1284_v11 = vpack.c.bf16 %v1249_v42, %v1246_v20 }
 0x275   : > { %10415 = vmatmul.mubr.msk.bf16.vlgmr.msra.gmra.mrb[20].mxu1 %vm924_vm3, %v1284_v11 }
 0x276   : > { %v1253_v43 = vpop.f32.mrb[44].mxu1  ;;  %10463 = vmatpush3.bf16.msra.mxu1 %v1672_v32  ;;  %10418 = vmatprep.mubr.msk.bf16.mxu1 %vm12529_vm0, %v12528_v0 }
 0x277   : > { %v1254_v30 = vadd.f32 %v13173_v18, %v1253_v43  ;;  %v10398_v17 = vpop.f32.mrb[45].mxu1  ;;  %10484 = vmatprep.subr.bf16.mxu1 %v12528_v0 }
 0x278   : > { %v1256_v55 = vpop.f32.mrb[46].mxu1 }
 0x279   : > { %v1257_v21 = vadd.f32 %v13175_v19, %v1256_v55  ;;  %v10399_v7 = vpop.f32.mrb[47].mxu1 }
 0x27a   : > { %v12203_v7 = vld [vmem:[%s15049_s1 + $0x1d0] ss:$12 sps:$4 sm:$0xff]  }
 0x27b   : > { %v1285_v62 = vpack.c.bf16 %v1257_v21, %v1254_v30 }
 0x27d   : > { %10419 = vmatmul.mubr.msk.bf16.gmra.mrb[24].mxu1 %vm924_vm3, %v1285_v62 }
 0x27e   : > { %v1261_v40 = vpop.f32.mrb[48].mxu1  ;;  %10422 = vmatprep.mubr.msk.bf16.mxu1 %vm12529_vm0, %v12528_v0 }
 0x27f   : > { %v1262_v5 = vadd.f32 %v13177_v33, %v1261_v40  ;;  %v10402_v13 = vpop.f32.mrb[49].mxu1 }
 0x280   : > { %v1264_v24 = vpop.f32.mrb[50].mxu1 }
 0x281   : > { %v1265_v18 = vadd.f32 %v13179_v29, %v1264_v24  ;;  %v10403_v35 = vpop.f32.mrb[51].mxu1 }
 0x283   : > { %v1286_v20 = vpack.c.bf16 %v1265_v18, %v1262_v5 }
 0x285   : > { %10423 = vmatmul.mubr.msk.bf16.gmra.mrb[28].mxu1 %vm924_vm3, %v1286_v20 }
 0x286   : > { %v1269_v48 = vpop.f32.mrb[52].mxu1  ;;  %10426 = vmatprep.mubr.msk.bf16.mxu1 %vm12529_vm0, %v12528_v0 }
 0x287   : > { %v1270_v19 = vadd.f32 %v13181_v36, %v1269_v48  ;;  %v10406_v16 = vpop.f32.mrb[53].mxu1 }
 0x288   : > { %v1272_v59 = vpop.f32.mrb[54].mxu1 }
 0x289   : > { %v1273_v42 = vadd.f32 %v13183_v39, %v1272_v59  ;;  %v10407_v6 = vpop.f32.mrb[55].mxu1  ;;  %v8954_v39 = vld [vmem:[%s14995_s2 + $0xc] sm:$0xf]  ;;  %v9685_v53 = vpop.f32.mrb[80].mxu0 }
 0x28b   : > { %v1287_v33 = vpack.c.bf16 %v1273_v42, %v1270_v19 }
 0x28d   : > { %10427 = vmatmul.mubr.msk.bf16.gmra.mrb[32].mxu1 %vm924_vm3, %v1287_v33 }
 0x28e   : > { %v1277_v11 = vpop.f32.mrb[56].mxu1  ;;  %10430 = vmatprep.mubr.msk.bf16.mxu1 %vm12529_vm0, %v12528_v0 }
 0x28f   : > { %v1278_v29 = vadd.f32 %v13185_v44, %v1277_v11  ;;  %v10410_v32 = vpop.f32.mrb[57].mxu1  ;;  %v12195_v44 = vld [vmem:[%s15049_s1 + $0x170] ss:$12 sps:$4 sm:$0xff]  }
 0x290   : > { %v1280_v43 = vpop.f32.mrb[58].mxu1 }
 0x291   : > { %v1281_v30 = vadd.f32 %v13187_v46, %v1280_v43  ;;  %v10411_v17 = vpop.f32.mrb[59].mxu1  ;;  %v2037_v46 = vsel %vm940_vm2, %v8954_v39, 0 }
 0x293   : > { %v1288_v36 = vpack.c.bf16 %v1281_v30, %v1278_v29 }
 0x295   : > { %10431 = vmatmul.mubr.msk.bf16.gmra.mrb[36].mxu1 %vm924_vm3, %v1288_v36 }
 0x296   : > { %10464 = vmatprep.mubr.msk.bf16.mxu1 %vm12529_vm0, %v12528_v0 }
 0x29d   : > { %10465 = vmatmul.mubr.msk.bf16.vlgmr.msra.gmra.mrb[20].mxu1 %vm924_vm3, %v1649_v63  ;;  %v9686_v63 = vpop.f32.mrb[81].mxu0 }
 0x29e   : > { %10485 = vmatpush3.bf16.msra.mxu1 %v12827_v23  ;;  %10468 = vmatprep.mubr.msk.bf16.mxu1 %vm12529_vm0, %v12528_v0  ;;  %v9688_v10 = vpop.f32.mrb[82].mxu0  ;;  %v13434_v27 = vadd.f32 %v9686_v63, %v9685_v53 }
 0x29f   : > { %10486 = vmatprep.subr.bf16.mxu1 %v12528_v0 }
 0x2a2   : > { %10487 = vmatpush3.bf16.msra.mxu1 %v12839_v31 }
 0x2a3   : > { %10488 = vmatprep.subr.bf16.mxu1 %v12528_v0 }
 0x2a5   : > { %10469 = vmatmul.mubr.msk.bf16.gmra.mrb[24].mxu1 %vm924_vm3, %v1650_v38  ;;  %v9689_v38 = vpop.f32.mrb[83].mxu0 }
 0x2a6   : > { %10472 = vmatprep.mubr.msk.bf16.mxu1 %vm12529_vm0, %v12528_v0  ;;  %10489 = vmatpush3.bf16.msra.mxu1 %v12858_v41  ;;  %v13457_v19 = vadd.f32 %v9689_v38, %v9688_v10 }
 0x2a7   : > { %10490 = vmatprep.subr.bf16.mxu1 %v12528_v0 }
 0x2aa   : > { %10491 = vmatpush3.bf16.msra.mxu1 %v12874_v50 }
 0x2ab   : > { %10512 = vmatprep.subr.bf16.mxu1 %v12528_v0 }
 0x2ad   : > { %10473 = vmatmul.mubr.msk.bf16.gmra.mrb[28].mxu1 %vm924_vm3, %v1651_v49 }
 0x2ae   : > { %10476 = vmatprep.mubr.msk.bf16.mxu1 %vm12529_vm0, %v12528_v0 }
 0x2b5   : > { %10477 = vmatmul.mubr.msk.bf16.gmra.mrb[32].mxu1 %vm924_vm3, %v1652_v2 }
 0x2b6   : > { %10480 = vmatprep.mubr.msk.bf16.mxu1 %vm12529_vm0, %v12528_v0 }
 0x2bd   : > { %10481 = vmatmul.mubr.msk.bf16.gmra.mrb[36].mxu1 %vm924_vm3, %v1653_v26 }
 0x2be   : > { %10492 = vmatprep.mubr.msk.bf16.mxu1 %vm12529_vm0, %v12528_v0  ;;  %v9691_v52 = vpop.f32.mrb[84].mxu0 }
 0x2bf   : > { %v9692_v49 = vpop.f32.mrb[85].mxu0 }
 0x2c0   : > { %v9694_v12 = vpop.f32.mrb[86].mxu0  ;;  %v13459_v29 = vadd.f32 %v9692_v49, %v9691_v52 }
 0x2c1   : > { %v9695_v56 = vpop.f32.mrb[87].mxu0 }
 0x2c2   : > { %v13461_v32 = vadd.f32 %v9695_v56, %v9694_v12 }
 0x2c5   : > { %10493 = vmatmul.mubr.msk.bf16.vlgmr.msra.gmra.mrb[60].mxu1 %vm756_vm1, %v12195_v44 }
 0x2c6   : > { %10496 = vmatprep.mubr.msk.bf16.mxu1 %vm12529_vm0, %v12528_v0  ;;  %10513 = vmatpush3.bf16.msra.mxu1 %v2037_v46  ;;  %v9697_v2 = vpop.f32.mrb[88].mxu0 }
 0x2c7   : > { %10562 = vmatprep.subr.bf16.mxu1 %v12528_v0  ;;  %v9698_v28 = vpop.f32.mrb[89].mxu0 }
 0x2c8   : > { %v9700_v26 = vpop.f32.mrb[90].mxu0  ;;  %v13463_v46 = vadd.f32 %v9698_v28, %v9697_v2 }
 0x2c9   : > { %v9701_v55 = vpop.f32.mrb[91].mxu0 }
 0x2ca   : > { %v13465_v53 = vadd.f32 %v9701_v55, %v9700_v26 }
 0x2cd   : > { %10497 = vmatmul.mubr.msk.bf16.gmra.mrb[64].mxu1 %vm756_vm1, %v12197_v57 }
 0x2ce   : > { %10500 = vmatprep.mubr.msk.bf16.mxu1 %vm12529_vm0, %v12528_v0  ;;  %v9703_v21 = vpop.f32.mrb[92].mxu0 }
 0x2cf   : > { %v9704_v62 = vpop.f32.mrb[93].mxu0 }
 0x2d0   : > { %v9706_v40 = vpop.f32.mrb[94].mxu0  ;;  %v13467_v52 = vadd.f32 %v9704_v62, %v9703_v21 }
 0x2d1   : > { %v9707_v5 = vpop.f32.mrb[95].mxu0 }
 0x2d2   : > { %v13469_v49 = vadd.f32 %v9707_v5, %v9706_v40 }
 0x2d5   : > { %10501 = vmatmul.mubr.msk.bf16.gmra.mrb[68].mxu1 %vm756_vm1, %v12199_v61 }
 0x2d6   : > { %10504 = vmatprep.mubr.msk.bf16.mxu1 %vm12529_vm0, %v12528_v0  ;;  %v9709_v13 = vpop.f32.mrb[96].mxu0 }
 0x2d7   : > { %v9710_v24 = vpop.f32.mrb[97].mxu0 }
 0x2d8   : > { %v9712_v18 = vpop.f32.mrb[98].mxu0  ;;  %v13471_v2 = vadd.f32 %v9710_v24, %v9709_v13  ;;  %v12207_v13 = vld [vmem:[%s15049_s1 + $0x25c] ss:$12 sps:$4 sm:$0xff]  }
 0x2d9   : > { %v9713_v35 = vpop.f32.mrb[99].mxu0  ;;  %2630 = vmatprep.mubr.bf16.mxu0 %v12207_v13  ;;  %v12214_v13 = vld [vmem:[%s15049_s1 + $0x2a4] ss:$12 sps:$4 sm:$0xff]  }
 0x2da   : > { %v13473_v28 = vadd.f32 %v9713_v35, %v9712_v18  ;;  %v12205_v18 = vld [vmem:[%s15049_s1 + $0x258] ss:$12 sps:$4 sm:$0xff]  }
 0x2db   : > { %2631 = vmatmul.mubr.bf16.vlgmr.msra.gmra.mrb[140].mxu0 %v12205_v18 }
 0x2dc   : > { %9853 = vmatpush3.bf16.msra.mxu0 %v12803_v8 }
 0x2dd   : > { %10505 = vmatmul.mubr.msk.bf16.gmra.mrb[72].mxu1 %vm756_vm1, %v12201_v3  ;;  %9854 = vmatprep.subr.bf16.mxu0 %v12805_v9 }
 0x2de   : > { %10508 = vmatprep.mubr.msk.bf16.mxu1 %vm12529_vm0, %v12528_v0  ;;  %v9746_v20 = vpop.f32.mrb[100].mxu0 }
 0x2df   : > { %v9747_v48 = vpop.f32.mrb[101].mxu0 }
 0x2e0   : > { %v9748_v16 = vadd.f32 %v9747_v48, %v9746_v20  ;;  %v9749_v59 = vpop.f32.mrb[102].mxu0  ;;  %9855 = vmatpush3.bf16.msra.mxu0 %v12813_v14 }
 0x2e1   : > { %v9750_v42 = vpop.f32.mrb[103].mxu0  ;;  %9856 = vmatprep.subr.bf16.mxu0 %v12816_v15 }
 0x2e2   : > { %v9751_v6 = vadd.f32 %v9750_v42, %v9749_v59 }
 0x2e4   : > { %9857 = vmatpush3.bf16.msra.mxu0 %v12825_v22 }
 0x2e5   : > { %10509 = vmatmul.mubr.msk.bf16.gmra.mrb[76].mxu1 %vm756_vm1, %v12203_v7  ;;  %9858 = vmatprep.subr.bf16.mxu0 %v12831_v25 }
 0x2e6   : > { %10514 = vmatprep.mubr.msk.bf16.mxu1 %vm12529_vm0, %v12528_v0  ;;  %v9752_v33 = vpop.f32.mrb[104].mxu0 }
 0x2e7   : > { %v9753_v11 = vpop.f32.mrb[105].mxu0 }
 0x2e8   : > { %v9754_v43 = vadd.f32 %v9753_v11, %v9752_v33  ;;  %v9755_v30 = vpop.f32.mrb[106].mxu0  ;;  %9859 = vmatpush3.bf16.msra.mxu0 %v12845_v34 }
 0x2e9   : > { %v9756_v17 = vpop.f32.mrb[107].mxu0  ;;  %9860 = vmatprep.subr.bf16.mxu0 %v12850_v37 }
 0x2ea   : > { %v9757_v36 = vadd.f32 %v9756_v17, %v9755_v30 }
 0x2ec   : > { %9861 = vmatpush3.bf16.msra.mxu0 %v12865_v45 }
 0x2ed   : > { %9862 = vmatprep.subr.bf16.mxu0 %v12869_v47 }
 0x2ee   : > { %v9758_v39 = vpop.f32.mrb[108].mxu0 }
 0x2ef   : > { %v9759_v44 = vpop.f32.mrb[109].mxu0 }
 0x2f0   : > { %v9760_v57 = vadd.f32 %v9759_v44, %v9758_v39  ;;  %v9761_v63 = vpop.f32.mrb[110].mxu0  ;;  %9863 = vmatpush3.bf16.msra.mxu0 %v12878_v51 }
 0x2f1   : > { %v9762_v10 = vpop.f32.mrb[111].mxu0  ;;  %9864 = vmatprep.subr.bf16.mxu0 %v12883_v54 }
 0x2f2   : > { %v9763_v38 = vadd.f32 %v9762_v10, %v9761_v63  ;;  %v12208_v63 = vld [vmem:[%s15049_s1 + $0x274] ss:$12 sps:$4 sm:$0xff]  }
 0x2f3   : > { %2638 = vmatprep.mubr.bf16.mxu0 %v12208_v63 }
 0x2f4   : > { %9865 = vmatpush3.bf16.msra.mxu0 %v12893_v58 }
 0x2f5   : > { %9866 = vmatprep.subr.bf16.mxu0 %v12897_v60 }
 0x2f6   : > { %v9764_v61 = vpop.f32.mrb[112].mxu0 }
 0x2f7   : > { %v9765_v3 = vpop.f32.mrb[113].mxu0 }
 0x2f8   : > { %v9766_v12 = vadd.f32 %v9765_v3, %v9764_v61  ;;  %v9767_v56 = vpop.f32.mrb[114].mxu0  ;;  %9867 = vmatpush3.bf16.msra.mxu0 %v12908_v1 }
 0x2f9   : > { %v9768_v7 = vpop.f32.mrb[115].mxu0  ;;  %10634 = vmatprep.subr.bf16.mxu0 %v12528_v0 }
 0x2fa   : > { %v9769_v20 = vadd.f32 %v9768_v7, %v9767_v56 }
 0x2fe   : > { %v9770_v48 = vpop.f32.mrb[116].mxu0 }
 0x2ff   : > { %v9771_v59 = vpop.f32.mrb[117].mxu0 }
 0x300   : > { %v9772_v26 = vadd.f32 %v9771_v59, %v9770_v48  ;;  %v9773_v55 = vpop.f32.mrb[118].mxu0  ;;  %v12211_v59 = vld [vmem:[%s15049_s1 + $0x28c] ss:$12 sps:$4 sm:$0xff]  }
 0x301   : > { %v9774_v42 = vpop.f32.mrb[119].mxu0 }
 0x302   : > { %v13475_v33 = vadd.f32 %v9774_v42, %v9773_v55 }
 0x306   : > { %v2340_v11 = vpop.f32.mrb[120].mxu0 }
 0x307   : > { %v13477_v21 = vadd.f32 %v9748_v16, %v2340_v11  ;;  %v10544_v62 = vpop.f32.mrb[121].mxu0 }
 0x308   : > { %v2343_v40 = vpop.f32.mrb[122].mxu0 }
 0x309   : > { %v13479_v5 = vadd.f32 %v9751_v6, %v2343_v40  ;;  %v10545_v30 = vpop.f32.mrb[123].mxu0 }
 0x30b   : > { %v2379_v24 = vpack.c.bf16 %v13479_v5, %v13477_v21  ;;  %v12237_v5 = vld [vmem:[%s15049_s1 + $0x278] ss:$12 sps:$4 sm:$0xff]  }
 0x30e   : > { %v2348_v35 = vpop.f32.mrb[124].mxu0 }
 0x30f   : > { %v13490_v16 = vadd.f32 %v9754_v43, %v2348_v35  ;;  %v10548_v6 = vpop.f32.mrb[125].mxu0  ;;  %v12210_v43 = vld [vmem:[%s15049_s1 + $0x270] ss:$12 sps:$4 sm:$0xff]  }
 0x310   : > { %v2351_v17 = vpop.f32.mrb[126].mxu0  ;;  %2639 = vmatmul.mubr.bf16.gmra.mrb[144].mxu0 %v12210_v43  ;;  %v12217_v43 = vld [vmem:[%s15049_s1 + $0x2bc] ss:$12 sps:$4 sm:$0xff]  }
 0x311   : > { %v13493_v39 = vadd.f32 %v9757_v36, %v2351_v17  ;;  %v10549_v44 = vpop.f32.mrb[127].mxu0  ;;  %2646 = vmatprep.mubr.bf16.mxu0 %v12211_v59  ;;  %v12226_v59 = vld [vmem:[%s15049_s1 + $0x304] ss:$12 sps:$4 sm:$0xff]  }
 0x313   : > { %v2380_v10 = vpack.c.bf16 %v13493_v39, %v13490_v16 }
 0x316   : > { %v2356_v36 = vpop.f32.mrb[128].mxu0 }
 0x317   : > { %v13506_v61 = vadd.f32 %v9760_v57, %v2356_v36  ;;  %v10552_v3 = vpop.f32.mrb[129].mxu0  ;;  %v12213_v57 = vld [vmem:[%s15049_s1 + $0x288] ss:$12 sps:$4 sm:$0xff]  }
 0x318   : > { %v2359_v56 = vpop.f32.mrb[130].mxu0  ;;  %2647 = vmatmul.mubr.bf16.gmra.mrb[148].mxu0 %v12213_v57  ;;  %v12220_v3 = vld [vmem:[%s15049_s1 + $0x2d0] ss:$12 sps:$4 sm:$0xff]   ;;  %v12228_v57 = vld [vmem:[%s15049_s1 + $0x300] ss:$12 sps:$4 sm:$0xff]  }
 0x319   : > { %v13509_v7 = vadd.f32 %v9763_v38, %v2359_v56  ;;  %v10553_v48 = vpop.f32.mrb[131].mxu0  ;;  %2654 = vmatprep.mubr.bf16.mxu0 %v12214_v13  ;;  %v12223_v56 = vld [vmem:[%s15049_s1 + $0x2ec] ss:$12 sps:$4 sm:$0xff]  }
 0x31a   : > { %v12225_v48 = vld [vmem:[%s15049_s1 + $0x2e8] ss:$12 sps:$4 sm:$0xff]   ;;  %v12236_v13 = vld [vmem:[%s15049_s1 + $0x2d8] ss:$12 sps:$4 sm:$0xff]  }
 0x31b   : > { %v2381_v55 = vpack.c.bf16 %v13509_v7, %v13506_v61  ;;  %v12239_v7 = vld [vmem:[%s15049_s1 + $0x290] ss:$12 sps:$4 sm:$0xff]  }
 0x31e   : > { %v2364_v38 = vpop.f32.mrb[132].mxu0 }
 0x31f   : > { %v13522_v42 = vadd.f32 %v9766_v12, %v2364_v38  ;;  %v10556_v11 = vpop.f32.mrb[133].mxu0  ;;  %v12216_v12 = vld [vmem:[%s15049_s1 + $0x2a0] ss:$12 sps:$4 sm:$0xff]   ;;  %v12229_v38 = vld [vmem:[%s15049_s1 + $0x31c] ss:$12 sps:$4 sm:$0xff]  }
 0x320   : > { %v2367_v62 = vpop.f32.mrb[134].mxu0  ;;  %2655 = vmatmul.mubr.bf16.gmra.mrb[152].mxu0 %v12216_v12  ;;  %v12231_v11 = vld [vmem:[%s15049_s1 + $0x318] ss:$12 sps:$4 sm:$0xff]   ;;  %v12238_v12 = vld [vmem:[%s15049_s1 + $0x2f0] ss:$12 sps:$4 sm:$0xff]  }
 0x321   : > { %v13525_v40 = vadd.f32 %v9769_v20, %v2367_v62  ;;  %v10557_v30 = vpop.f32.mrb[135].mxu0  ;;  %2662 = vmatprep.mubr.bf16.mxu0 %v12217_v43  ;;  %v12232_v62 = vld [vmem:[%s15049_s1 + $0x334] ss:$12 sps:$4 sm:$0xff]  }
 0x322   : > { %v12234_v30 = vld [vmem:[%s15049_s1 + $0x330] ss:$12 sps:$4 sm:$0xff]  }
 0x323   : > { %v2382_v18 = vpack.c.bf16 %v13525_v40, %v13522_v42 }
 0x326   : > { %v2372_v20 = vpop.f32.mrb[136].mxu0 }
 0x327   : > { %v13538_v35 = vadd.f32 %v9772_v26, %v2372_v20  ;;  %v10560_v6 = vpop.f32.mrb[137].mxu0  ;;  %v12219_v26 = vld [vmem:[%s15049_s1 + $0x2b8] ss:$12 sps:$4 sm:$0xff]   ;;  %v12240_v20 = vld [vmem:[%s15049_s1 + $0x308] ss:$12 sps:$4 sm:$0xff]  }
 0x328   : > { %v2375_v17 = vpop.f32.mrb[138].mxu0  ;;  %2663 = vmatmul.mubr.bf16.gmra.mrb[156].mxu0 %v12219_v26  ;;  %v12242_v6 = vld [vmem:[%s15049_s1 + $0x320] ss:$12 sps:$4 sm:$0xff]  }
 0x329   : > { %v13542_v44 = vadd.f32 %v13475_v33, %v2375_v17  ;;  %v10561_v63 = vpop.f32.mrb[139].mxu0  ;;  %v12222_v33 = vld [vmem:[%s15049_s1 + $0x2d4] ss:$12 sps:$4 sm:$0xff]   ;;  %v12244_v17 = vld [vmem:[%s15049_s1 + $0x338] ss:$12 sps:$4 sm:$0xff]  }
 0x32a   : > { %2995 = vmatprep.mubr.bf16.mxu0 %v12222_v33 }
 0x32b   : > { %v2383_v36 = vpack.c.bf16 %v13542_v44, %v13538_v35  ;;  %v12241_v35 = vld [vmem:[%s15049_s1 + $0x2a8] ss:$12 sps:$4 sm:$0xff]  }
 0x330   : > { %2996 = vmatmul.mubr.bf16.vlgmr.msra.gmra.mrb[160].mxu0 %v12220_v3  ;;  %v9000_v3 = vld [vmem:[%s14995_s2 + $0x10] sm:$0xf] }
 0x331   : > { %10635 = vmatpush3.bf16.msra.mxu0 %v12827_v23  ;;  %3003 = vmatprep.mubr.bf16.mxu0 %v12223_v56 }
 0x332   : > { %10636 = vmatprep.subr.bf16.mxu0 %v12528_v0 }
 0x335   : > { %10637 = vmatpush3.bf16.msra.mxu0 %v12839_v31 }
 0x336   : > { %10638 = vmatprep.subr.bf16.mxu0 %v12528_v0 }
 0x338   : > { %3004 = vmatmul.mubr.bf16.gmra.mrb[164].mxu0 %v12225_v48 }
 0x339   : > { %10639 = vmatpush3.bf16.msra.mxu0 %v12858_v41  ;;  %3011 = vmatprep.mubr.bf16.mxu0 %v12226_v59 }
 0x33a   : > { %10640 = vmatprep.subr.bf16.mxu0 %v12528_v0 }
 0x33d   : > { %10641 = vmatpush3.bf16.msra.mxu0 %v12874_v50 }
 0x33e   : > { %9913 = vmatprep.subr.bf16.mxu0 %v12798_v4 }
 0x340   : > { %3012 = vmatmul.mubr.bf16.gmra.mrb[168].mxu0 %v12228_v57  ;;  %v2402_v57 = vsel %vm940_vm2, %v9000_v3, 0 }
 0x341   : > { %3019 = vmatprep.mubr.bf16.mxu0 %v12229_v38 }
 0x348   : > { %3020 = vmatmul.mubr.bf16.gmra.mrb[172].mxu0 %v12231_v11 }
 0x349   : > { %3027 = vmatprep.mubr.bf16.mxu0 %v12232_v62 }
 0x350   : > { %3028 = vmatmul.mubr.bf16.gmra.mrb[176].mxu0 %v12234_v30 }
 0x351   : > { %10642 = vmatprep.mubr.msk.bf16.mxu0 %vm12529_vm0, %v12528_v0 }
 0x358   : > { %10643 = vmatmul.mubr.msk.bf16.vlgmr.msra.gmra.mrb[180].mxu0 %vm756_vm1, %v12236_v13 }
 0x359   : > { %10646 = vmatprep.mubr.msk.bf16.mxu0 %vm12529_vm0, %v12528_v0  ;;  %9914 = vmatpush3.bf16.msra.mxu0 %v12803_v8 }
 0x35a   : > { %9915 = vmatprep.subr.bf16.mxu0 %v12805_v9 }
 0x35d   : > { %9916 = vmatpush3.bf16.msra.mxu0 %v12813_v14 }
 0x35e   : > { %9917 = vmatprep.subr.bf16.mxu0 %v12816_v15 }
 0x360   : > { %10647 = vmatmul.mubr.msk.bf16.gmra.mrb[184].mxu0 %vm756_vm1, %v12238_v12 }
 0x361   : > { %10650 = vmatprep.mubr.msk.bf16.mxu0 %vm12529_vm0, %v12528_v0  ;;  %9918 = vmatpush3.bf16.msra.mxu0 %v12825_v22 }
 0x362   : > { %9919 = vmatprep.subr.bf16.mxu0 %v12831_v25 }
 0x365   : > { %9920 = vmatpush3.bf16.msra.mxu0 %v12845_v34 }
 0x366   : > { %9921 = vmatprep.subr.bf16.mxu0 %v12850_v37 }
 0x368   : > { %10651 = vmatmul.mubr.msk.bf16.gmra.mrb[188].mxu0 %vm756_vm1, %v12240_v20 }
 0x369   : > { %10654 = vmatprep.mubr.msk.bf16.mxu0 %vm12529_vm0, %v12528_v0  ;;  %9922 = vmatpush3.bf16.msra.mxu0 %v12865_v45 }
 0x36a   : > { %9923 = vmatprep.subr.bf16.mxu0 %v12869_v47 }
 0x36d   : > { %9924 = vmatpush3.bf16.msra.mxu0 %v12878_v51 }
 0x36e   : > { %9925 = vmatprep.subr.bf16.mxu0 %v12883_v54 }
 0x370   : > { %10655 = vmatmul.mubr.msk.bf16.gmra.mrb[192].mxu0 %vm756_vm1, %v12242_v6 }
 0x371   : > { %10658 = vmatprep.mubr.msk.bf16.mxu0 %vm12529_vm0, %v12528_v0  ;;  %9926 = vmatpush3.bf16.msra.mxu0 %v12893_v58 }
 0x372   : > { %9927 = vmatprep.subr.bf16.mxu0 %v12897_v60 }
 0x375   : > { %9928 = vmatpush3.bf16.msra.mxu0 %v12908_v1 }
 0x376   : > { %9974 = vmatprep.subr.bf16.mxu0 %v12798_v4 }
 0x378   : > { %10659 = vmatmul.mubr.msk.bf16.gmra.mrb[196].mxu0 %vm756_vm1, %v12244_v17 }
 0x398   : > { %v1975_v63 = vpop.f32.mrb[60].mxu1 }
 0x399   : > { %v1976_v43 = vadd.f32 %v13434_v27, %v1975_v63  ;;  %v10494_v26 = vpop.f32.mrb[61].mxu1 }
 0x39a   : > { %v1978_v33 = vpop.f32.mrb[62].mxu1 }
 0x39b   : > { %v1979_v56 = vadd.f32 %v13457_v19, %v1978_v33  ;;  %v10495_v48 = vpop.f32.mrb[63].mxu1 }
 0x39d   : > { %v2014_v59 = vpack.c.bf16 %v1979_v56, %v1976_v43 }
 0x39f   : > { %10515 = vmatmul.mubr.msk.bf16.vlgmr.msra.gmra.mrb[20].mxu1 %vm924_vm3, %v2014_v59 }
 0x3a0   : > { %v1983_v4 = vpop.f32.mrb[64].mxu1  ;;  %10563 = vmatpush3.bf16.msra.mxu1 %v2402_v57  ;;  %10518 = vmatprep.mubr.msk.bf16.mxu1 %vm12529_vm0, %v12528_v0 }
 0x3a1   : > { %v1984_v27 = vadd.f32 %v13459_v29, %v1983_v4  ;;  %v10498_v38 = vpop.f32.mrb[65].mxu1  ;;  %10584 = vmatprep.subr.bf16.mxu1 %v12528_v0 }
 0x3a2   : > { %v1986_v11 = vpop.f32.mrb[66].mxu1 }
 0x3a3   : > { %v1987_v62 = vadd.f32 %v13461_v32, %v1986_v11  ;;  %v10499_v19 = vpop.f32.mrb[67].mxu1 }
 0x3a5   : > { %v2015_v30 = vpack.c.bf16 %v1987_v62, %v1984_v27  ;;  %v12243_v62 = vld [vmem:[%s15049_s1 + $0x2c0] ss:$12 sps:$4 sm:$0xff]  }
 0x3a7   : > { %10519 = vmatmul.mubr.msk.bf16.gmra.mrb[24].mxu1 %vm924_vm3, %v2015_v30 }
 0x3a8   : > { %v1991_v13 = vpop.f32.mrb[68].mxu1  ;;  %10522 = vmatprep.mubr.msk.bf16.mxu1 %vm12529_vm0, %v12528_v0 }
 0x3a9   : > { %v1992_v12 = vadd.f32 %v13463_v46, %v1991_v13  ;;  %v10502_v20 = vpop.f32.mrb[69].mxu1 }
 0x3aa   : > { %v1994_v6 = vpop.f32.mrb[70].mxu1 }
 0x3ab   : > { %v1995_v29 = vadd.f32 %v13465_v53, %v1994_v6  ;;  %v10503_v17 = vpop.f32.mrb[71].mxu1 }
 0x3ad   : > { %v2016_v63 = vpack.c.bf16 %v1995_v29, %v1992_v12 }
 0x3ae   : > { %v9807_v21 = vpop.f32.mrb[140].mxu0 }
 0x3af   : > { %10523 = vmatmul.mubr.msk.bf16.gmra.mrb[28].mxu1 %vm924_vm3, %v2016_v63 }
 0x3b0   : > { %v1999_v43 = vpop.f32.mrb[72].mxu1  ;;  %10526 = vmatprep.mubr.msk.bf16.mxu1 %vm12529_vm0, %v12528_v0 }
 0x3b1   : > { %v2000_v32 = vadd.f32 %v13467_v52, %v1999_v43  ;;  %v10506_v26 = vpop.f32.mrb[73].mxu1 }
 0x3b2   : > { %v2002_v33 = vpop.f32.mrb[74].mxu1 }
 0x3b3   : > { %v2003_v3 = vadd.f32 %v13469_v49, %v2002_v33  ;;  %v10507_v56 = vpop.f32.mrb[75].mxu1  ;;  %v9046_v49 = vld [vmem:[%s14995_s2 + $0x14] sm:$0xf] }
 0x3b5   : > { %v2017_v46 = vpack.c.bf16 %v2003_v3, %v2000_v32 }
 0x3b7   : > { %10527 = vmatmul.mubr.msk.bf16.gmra.mrb[32].mxu1 %vm924_vm3, %v2017_v46 }
 0x3b8   : > { %v2007_v48 = vpop.f32.mrb[76].mxu1  ;;  %10530 = vmatprep.mubr.msk.bf16.mxu1 %vm12529_vm0, %v12528_v0 }
 0x3b9   : > { %v2008_v53 = vadd.f32 %v13471_v2, %v2007_v48  ;;  %v10510_v59 = vpop.f32.mrb[77].mxu1  ;;  %v12235_v2 = vld [vmem:[%s15049_s1 + $0x260] ss:$12 sps:$4 sm:$0xff]  }
 0x3ba   : > { %v2010_v57 = vpop.f32.mrb[78].mxu1 }
 0x3bb   : > { %v2011_v4 = vadd.f32 %v13473_v28, %v2010_v57  ;;  %v10511_v27 = vpop.f32.mrb[79].mxu1  ;;  %v2767_v28 = vsel %vm940_vm2, %v9046_v49, 0 }
 0x3bd   : > { %v2018_v52 = vpack.c.bf16 %v2011_v4, %v2008_v53 }
 0x3bf   : > { %10531 = vmatmul.mubr.msk.bf16.gmra.mrb[36].mxu1 %vm924_vm3, %v2018_v52 }
 0x3c0   : > { %10564 = vmatprep.mubr.msk.bf16.mxu1 %vm12529_vm0, %v12528_v0 }
 0x3c7   : > { %10565 = vmatmul.mubr.msk.bf16.vlgmr.msra.gmra.mrb[20].mxu1 %vm924_vm3, %v2379_v24  ;;  %v9808_v24 = vpop.f32.mrb[141].mxu0 }
 0x3c8   : > { %10585 = vmatpush3.bf16.msra.mxu1 %v12827_v23  ;;  %10568 = vmatprep.mubr.msk.bf16.mxu1 %vm12529_vm0, %v12528_v0  ;;  %v9810_v16 = vpop.f32.mrb[142].mxu0  ;;  %v13720_v39 = vadd.f32 %v9808_v24, %v9807_v21 }
 0x3c9   : > { %10586 = vmatprep.subr.bf16.mxu1 %v12528_v0 }
 0x3cc   : > { %10587 = vmatpush3.bf16.msra.mxu1 %v12839_v31 }
 0x3cd   : > { %10588 = vmatprep.subr.bf16.mxu1 %v12528_v0 }
 0x3cf   : > { %10569 = vmatmul.mubr.msk.bf16.gmra.mrb[24].mxu1 %vm924_vm3, %v2380_v10  ;;  %v9811_v10 = vpop.f32.mrb[143].mxu0 }
 0x3d0   : > { %10572 = vmatprep.mubr.msk.bf16.mxu1 %vm12529_vm0, %v12528_v0  ;;  %10589 = vmatpush3.bf16.msra.mxu1 %v12858_v41  ;;  %v13743_v43 = vadd.f32 %v9811_v10, %v9810_v16 }
 0x3d1   : > { %10590 = vmatprep.subr.bf16.mxu1 %v12528_v0 }
 0x3d4   : > { %10591 = vmatpush3.bf16.msra.mxu1 %v12874_v50 }
 0x3d5   : > { %10612 = vmatprep.subr.bf16.mxu1 %v12528_v0 }
 0x3d7   : > { %10573 = vmatmul.mubr.msk.bf16.gmra.mrb[28].mxu1 %vm924_vm3, %v2381_v55 }
 0x3d8   : > { %10576 = vmatprep.mubr.msk.bf16.mxu1 %vm12529_vm0, %v12528_v0 }
 0x3df   : > { %10577 = vmatmul.mubr.msk.bf16.gmra.mrb[32].mxu1 %vm924_vm3, %v2382_v18 }
 0x3e0   : > { %10580 = vmatprep.mubr.msk.bf16.mxu1 %vm12529_vm0, %v12528_v0 }
 0x3e3   : > { %v9813_v61 = vpop.f32.mrb[144].mxu0 }
 0x3e4   : > { %v9814_v55 = vpop.f32.mrb[145].mxu0 }
 0x3e5   : > { %v9816_v42 = vpop.f32.mrb[146].mxu0  ;;  %v13745_v48 = vadd.f32 %v9814_v55, %v9813_v61 }
 0x3e6   : > { %v9817_v40 = vpop.f32.mrb[147].mxu0 }
 0x3e7   : > { %10581 = vmatmul.mubr.msk.bf16.gmra.mrb[36].mxu1 %vm924_vm3, %v2383_v36  ;;  %v13747_v53 = vadd.f32 %v9817_v40, %v9816_v42 }
 0x3e8   : > { %10592 = vmatprep.mubr.msk.bf16.mxu1 %vm12529_vm0, %v12528_v0 }
 0x3eb   : > { %v9819_v18 = vpop.f32.mrb[148].mxu0 }
 0x3ec   : > { %v9820_v44 = vpop.f32.mrb[149].mxu0 }
 0x3ed   : > { %v9822_v36 = vpop.f32.mrb[150].mxu0 }
 0x3ee   : > { %v9823_v38 = vpop.f32.mrb[151].mxu0 }
 0x3ef   : > { %10593 = vmatmul.mubr.msk.bf16.vlgmr.msra.gmra.mrb[80].mxu1 %vm756_vm1, %v12235_v2  ;;  %v13749_v2 = vadd.f32 %v9820_v44, %v9819_v18 }
 0x3f0   : > { %10596 = vmatprep.mubr.msk.bf16.mxu1 %vm12529_vm0, %v12528_v0  ;;  %10613 = vmatpush3.bf16.msra.mxu1 %v2767_v28  ;;  %v13751_v28 = vadd.f32 %v9823_v38, %v9822_v36 }
 0x3f1   : > { %10662 = vmatprep.subr.bf16.mxu1 %v12528_v0 }
 0x3f3   : > { %v9825_v11 = vpop.f32.mrb[152].mxu0 }
 0x3f4   : > { %v9826_v19 = vpop.f32.mrb[153].mxu0 }
 0x3f5   : > { %v9828_v30 = vpop.f32.mrb[154].mxu0  ;;  %v13753_v61 = vadd.f32 %v9826_v19, %v9825_v11 }
 0x3f6   : > { %v9829_v13 = vpop.f32.mrb[155].mxu0 }
 0x3f7   : > { %10597 = vmatmul.mubr.msk.bf16.gmra.mrb[84].mxu1 %vm756_vm1, %v12237_v5  ;;  %v13755_v55 = vadd.f32 %v9829_v13, %v9828_v30 }
 0x3f8   : > { %10600 = vmatprep.mubr.msk.bf16.mxu1 %vm12529_vm0, %v12528_v0 }
 0x3fb   : > { %v9831_v12 = vpop.f32.mrb[156].mxu0 }
 0x3fc   : > { %v9832_v20 = vpop.f32.mrb[157].mxu0 }
 0x3fd   : > { %v9834_v6 = vpop.f32.mrb[158].mxu0  ;;  %v13757_v18 = vadd.f32 %v9832_v20, %v9831_v12  ;;  %v12247_v12 = vld [vmem:[%s15049_s1 + $0x34c] ss:$12 sps:$4 sm:$0xff]  }
 0x3fe   : > { %v9835_v29 = vpop.f32.mrb[159].mxu0  ;;  %3360 = vmatprep.mubr.bf16.mxu0 %v12247_v12  ;;  %v12272_v12 = vld [vmem:[%s15049_s1 + $0x424] ss:$12 sps:$4 sm:$0xff]  }
 0x3ff   : > { %10601 = vmatmul.mubr.msk.bf16.gmra.mrb[88].mxu1 %vm756_vm1, %v12239_v7  ;;  %v13759_v44 = vadd.f32 %v9835_v29, %v9834_v6  ;;  %v12245_v6 = vld [vmem:[%s15049_s1 + $0x348] ss:$12 sps:$4 sm:$0xff]  }
 0x400   : > { %10604 = vmatprep.mubr.msk.bf16.mxu1 %vm12529_vm0, %v12528_v0  ;;  %3361 = vmatmul.mubr.bf16.vlgmr.msra.gmra.mrb[200].mxu0 %v12245_v6  ;;  %v12274_v6 = vld [vmem:[%s15049_s1 + $0x420] ss:$12 sps:$4 sm:$0xff]  }
 0x401   : > { %9975 = vmatpush3.bf16.msra.mxu0 %v12803_v8  ;;  %v12250_v8 = vld [vmem:[%s15049_s1 + $0x360] ss:$12 sps:$4 sm:$0xff]  }
 0x402   : > { %9976 = vmatprep.subr.bf16.mxu0 %v12805_v9 }
 0x403   : > { %v9868_v17 = vpop.f32.mrb[160].mxu0 }
 0x404   : > { %v9869_v63 = vpop.f32.mrb[161].mxu0 }
 0x405   : > { %v9870_v32 = vadd.f32 %v9869_v63, %v9868_v17  ;;  %v9871_v26 = vpop.f32.mrb[162].mxu0  ;;  %9977 = vmatpush3.bf16.msra.mxu0 %v12813_v14 }
 0x406   : > { %v9872_v33 = vpop.f32.mrb[163].mxu0  ;;  %9978 = vmatprep.subr.bf16.mxu0 %v12816_v15  ;;  %v12253_v15 = vld [vmem:[%s15049_s1 + $0x378] ss:$12 sps:$4 sm:$0xff]  }
 0x407   : > { %10605 = vmatmul.mubr.msk.bf16.gmra.mrb[92].mxu1 %vm756_vm1, %v12241_v35  ;;  %v9873_v3 = vadd.f32 %v9872_v33, %v9871_v26 }
 0x408   : > { %10608 = vmatprep.mubr.msk.bf16.mxu1 %vm12529_vm0, %v12528_v0 }
 0x409   : > { %9979 = vmatpush3.bf16.msra.mxu0 %v12825_v22 }
 0x40a   : > { %9980 = vmatprep.subr.bf16.mxu0 %v12831_v25 }
 0x40b   : > { %v9874_v56 = vpop.f32.mrb[164].mxu0 }
 0x40c   : > { %v9875_v46 = vpop.f32.mrb[165].mxu0 }
 0x40d   : > { %v9876_v59 = vadd.f32 %v9875_v46, %v9874_v56  ;;  %v9877_v57 = vpop.f32.mrb[166].mxu0  ;;  %9981 = vmatpush3.bf16.msra.mxu0 %v12845_v34 }
 0x40e   : > { %v9878_v4 = vpop.f32.mrb[167].mxu0  ;;  %9982 = vmatprep.subr.bf16.mxu0 %v12850_v37  ;;  %v12254_v37 = vld [vmem:[%s15049_s1 + $0x394] ss:$12 sps:$4 sm:$0xff]  }
 0x40f   : > { %10609 = vmatmul.mubr.msk.bf16.gmra.mrb[96].mxu1 %vm756_vm1, %v12243_v62  ;;  %v9879_v27 = vadd.f32 %v9878_v4, %v9877_v57 }
 0x410   : > { %10614 = vmatprep.mubr.msk.bf16.mxu1 %vm12529_vm0, %v12528_v0 }
 0x411   : > { %9983 = vmatpush3.bf16.msra.mxu0 %v12865_v45  ;;  %v12256_v45 = vld [vmem:[%s15049_s1 + $0x390] ss:$12 sps:$4 sm:$0xff]  }
 0x412   : > { %9984 = vmatprep.subr.bf16.mxu0 %v12869_v47 }
 0x413   : > { %v9880_v52 = vpop.f32.mrb[168].mxu0 }
 0x414   : > { %v9881_v49 = vpop.f32.mrb[169].mxu0 }
 0x415   : > { %v9882_v21 = vadd.f32 %v9881_v49, %v9880_v52  ;;  %v9883_v5 = vpop.f32.mrb[170].mxu0  ;;  %v12248_v49 = vld [vmem:[%s15049_s1 + $0x364] ss:$12 sps:$4 sm:$0xff]   ;;  %9985 = vmatpush3.bf16.msra.mxu0 %v12878_v51 }
 0x416   : > { %v9884_v24 = vpop.f32.mrb[171].mxu0  ;;  %3368 = vmatprep.mubr.bf16.mxu0 %v12248_v49  ;;  %9986 = vmatprep.subr.bf16.mxu0 %v12883_v54  ;;  %v12284_v49 = vld [vmem:[%s15049_s1 + $0x428] ss:$12 sps:$4 sm:$0xff]  }
 0x417   : > { %v9885_v16 = vadd.f32 %v9884_v24, %v9883_v5  ;;  %3369 = vmatmul.mubr.bf16.gmra.mrb[204].mxu0 %v12250_v8 }
 0x419   : > { %9987 = vmatpush3.bf16.msra.mxu0 %v12893_v58  ;;  %v12259_v58 = vld [vmem:[%s15049_s1 + $0x3a8] ss:$12 sps:$4 sm:$0xff]  }
 0x41a   : > { %9988 = vmatprep.subr.bf16.mxu0 %v12897_v60  ;;  %v12262_v60 = vld [vmem:[%s15049_s1 + $0x3c4] ss:$12 sps:$4 sm:$0xff]  }
 0x41b   : > { %v9886_v10 = vpop.f32.mrb[172].mxu0 }
 0x41c   : > { %v9887_v7 = vpop.f32.mrb[173].mxu0 }
 0x41d   : > { %v9888_v42 = vadd.f32 %v9887_v7, %v9886_v10  ;;  %v9889_v40 = vpop.f32.mrb[174].mxu0  ;;  %v12251_v7 = vld [vmem:[%s15049_s1 + $0x37c] ss:$12 sps:$4 sm:$0xff]   ;;  %9989 = vmatpush3.bf16.msra.mxu0 %v12908_v1  ;;  %v12260_v1 = vld [vmem:[%s15049_s1 + $0x3c0] ss:$12 sps:$4 sm:$0xff]  }
 0x41e   : > { %v9890_v35 = vpop.f32.mrb[175].mxu0  ;;  %3376 = vmatprep.mubr.bf16.mxu0 %v12251_v7  ;;  %10734 = vmatprep.subr.bf16.mxu0 %v12528_v0 }
 0x41f   : > { %v9891_v62 = vadd.f32 %v9890_v35, %v9889_v40  ;;  %3377 = vmatmul.mubr.bf16.gmra.mrb[208].mxu0 %v12253_v15 }
 0x420   : > { %3384 = vmatprep.mubr.bf16.mxu0 %v12254_v37 }
 0x423   : > { %v9892_v17 = vpop.f32.mrb[176].mxu0 }
 0x424   : > { %v9893_v63 = vpop.f32.mrb[177].mxu0 }
 0x425   : > { %v9894_v36 = vadd.f32 %v9893_v63, %v9892_v17  ;;  %v9895_v38 = vpop.f32.mrb[178].mxu0 }
 0x426   : > { %v9896_v26 = vpop.f32.mrb[179].mxu0 }
 0x427   : > { %v13761_v33 = vadd.f32 %v9896_v26, %v9895_v38  ;;  %3385 = vmatmul.mubr.bf16.gmra.mrb[212].mxu0 %v12256_v45  ;;  %v12257_v26 = vld [vmem:[%s15049_s1 + $0x3ac] ss:$12 sps:$4 sm:$0xff]  }
 0x428   : > { %3392 = vmatprep.mubr.bf16.mxu0 %v12257_v26 }
 0x42b   : > { %v3070_v56 = vpop.f32.mrb[180].mxu0 }
 0x42c   : > { %v13763_v11 = vadd.f32 %v9870_v32, %v3070_v56  ;;  %v10644_v19 = vpop.f32.mrb[181].mxu0  ;;  %v12266_v56 = vld [vmem:[%s15049_s1 + $0x3f4] ss:$12 sps:$4 sm:$0xff]  }
 0x42d   : > { %v3073_v30 = vpop.f32.mrb[182].mxu0  ;;  %v12268_v19 = vld [vmem:[%s15049_s1 + $0x3f0] ss:$12 sps:$4 sm:$0xff]  }
 0x42e   : > { %v13765_v13 = vadd.f32 %v9873_v3, %v3073_v30  ;;  %v10645_v46 = vpop.f32.mrb[183].mxu0  ;;  %v12269_v30 = vld [vmem:[%s15049_s1 + $0x40c] ss:$12 sps:$4 sm:$0xff]  }
 0x42f   : > { %3393 = vmatmul.mubr.bf16.gmra.mrb[216].mxu0 %v12259_v58  ;;  %v12271_v46 = vld [vmem:[%s15049_s1 + $0x408] ss:$12 sps:$4 sm:$0xff]  }
 0x430   : > { %v3109_v20 = vpack.c.bf16 %v13765_v13, %v13763_v11  ;;  %3725 = vmatprep.mubr.bf16.mxu0 %v12262_v60 }
 0x433   : > { %v3078_v29 = vpop.f32.mrb[184].mxu0 }
 0x434   : > { %v13776_v32 = vadd.f32 %v9876_v59, %v3078_v29  ;;  %v10648_v3 = vpop.f32.mrb[185].mxu0  ;;  %v12276_v29 = vld [vmem:[%s15049_s1 + $0x3c8] ss:$12 sps:$4 sm:$0xff]  }
 0x435   : > { %v3081_v57 = vpop.f32.mrb[186].mxu0  ;;  %v12278_v3 = vld [vmem:[%s15049_s1 + $0x3e0] ss:$12 sps:$4 sm:$0xff]  }
 0x436   : > { %v13779_v4 = vadd.f32 %v9879_v27, %v3081_v57  ;;  %v10649_v52 = vpop.f32.mrb[187].mxu0  ;;  %v12280_v57 = vld [vmem:[%s15049_s1 + $0x3f8] ss:$12 sps:$4 sm:$0xff]  }
 0x437   : > { %3726 = vmatmul.mubr.bf16.vlgmr.msra.gmra.mrb[220].mxu0 %v12260_v1  ;;  %v12282_v52 = vld [vmem:[%s15049_s1 + $0x410] ss:$12 sps:$4 sm:$0xff]  }
 0x438   : > { %v3110_v5 = vpack.c.bf16 %v13779_v4, %v13776_v32  ;;  %10735 = vmatpush3.bf16.msra.mxu0 %v12827_v23  ;;  %v12279_v32 = vld [vmem:[%s15049_s1 + $0x380] ss:$12 sps:$4 sm:$0xff]  }
 0x439   : > { %10736 = vmatprep.subr.bf16.mxu0 %v12528_v0 }
 0x43b   : > { %v3086_v9 = vpop.f32.mrb[188].mxu0 }
 0x43c   : > { %v10652_v59 = vpop.f32.mrb[189].mxu0  ;;  %v13793_v14 = vadd.f32 %v9882_v21, %v3086_v9  ;;  %10737 = vmatpush3.bf16.msra.mxu0 %v12839_v31 }
 0x43d   : > { %v3089_v27 = vpop.f32.mrb[190].mxu0  ;;  %10738 = vmatprep.subr.bf16.mxu0 %v12528_v0 }
 0x43e   : > { %v10653_v24 = vpop.f32.mrb[191].mxu0  ;;  %v13795_v10 = vadd.f32 %v9885_v16, %v3089_v27 }
 0x43f   : > { %v9092_v24 = vld [vmem:[%s14995_s2 + $0x18] sm:$0xf] }
 0x440   : > { %v3111_v22 = vpack.c.bf16 %v13795_v10, %v13793_v14  ;;  %10739 = vmatpush3.bf16.msra.mxu0 %v12858_v41 }
 0x441   : > { %10740 = vmatprep.subr.bf16.mxu0 %v12528_v0 }
 0x443   : > { %v3094_v25 = vpop.f32.mrb[192].mxu0 }
 0x444   : > { %v13808_v21 = vadd.f32 %v9888_v42, %v3094_v25  ;;  %v10656_v16 = vpop.f32.mrb[193].mxu0  ;;  %10741 = vmatpush3.bf16.msra.mxu0 %v12874_v50 }
 0x445   : > { %v3097_v34 = vpop.f32.mrb[194].mxu0  ;;  %10784 = vmatprep.subr.bf16.mxu0 %v12528_v0  ;;  %v3132_v16 = vsel %vm940_vm2, %v9092_v24, 0 }
 0x446   : > { %v13811_v40 = vadd.f32 %v9891_v62, %v3097_v34  ;;  %v10657_v35 = vpop.f32.mrb[195].mxu0 }
 0x448   : > { %v3112_v17 = vpack.c.bf16 %v13811_v40, %v13808_v21 }
 0x44b   : > { %v3102_v47 = vpop.f32.mrb[196].mxu0 }
 0x44c   : > { %v13824_v42 = vadd.f32 %v9894_v36, %v3102_v47  ;;  %v10660_v62 = vpop.f32.mrb[197].mxu0  ;;  %v12263_v36 = vld [vmem:[%s15049_s1 + $0x3dc] ss:$12 sps:$4 sm:$0xff]  }
 0x44d   : > { %v3105_v51 = vpop.f32.mrb[198].mxu0  ;;  %3733 = vmatprep.mubr.bf16.mxu0 %v12263_v36 }
 0x44e   : > { %v13828_v63 = vadd.f32 %v13761_v33, %v3105_v51  ;;  %v10661_v38 = vpop.f32.mrb[199].mxu0  ;;  %v12265_v33 = vld [vmem:[%s15049_s1 + $0x3d8] ss:$12 sps:$4 sm:$0xff]  }
 0x44f   : > { %3734 = vmatmul.mubr.bf16.gmra.mrb[224].mxu0 %v12265_v33 }
 0x450   : > { %v3113_v54 = vpack.c.bf16 %v13828_v63, %v13824_v42  ;;  %3741 = vmatprep.mubr.bf16.mxu0 %v12266_v56  ;;  %v12283_v63 = vld [vmem:[%s15049_s1 + $0x3b0] ss:$12 sps:$4 sm:$0xff]  }
 0x457   : > { %3742 = vmatmul.mubr.bf16.gmra.mrb[228].mxu0 %v12268_v19 }
 0x458   : > { %3749 = vmatprep.mubr.bf16.mxu0 %v12269_v30 }
 0x45f   : > { %3750 = vmatmul.mubr.bf16.gmra.mrb[232].mxu0 %v12271_v46 }
 0x460   : > { %3757 = vmatprep.mubr.bf16.mxu0 %v12272_v12 }
 0x467   : > { %3758 = vmatmul.mubr.bf16.gmra.mrb[236].mxu0 %v12274_v6 }
 0x468   : > { %10742 = vmatprep.mubr.msk.bf16.mxu0 %vm12529_vm0, %v12528_v0 }
 0x46f   : > { %10743 = vmatmul.mubr.msk.bf16.vlgmr.msra.gmra.mrb[240].mxu0 %vm756_vm1, %v12276_v29 }
 0x470   : > { %10746 = vmatprep.mubr.msk.bf16.mxu0 %vm12529_vm0, %v12528_v0 }
 0x477   : > { %10747 = vmatmul.mubr.msk.bf16.gmra.mrb[244].mxu0 %vm756_vm1, %v12278_v3 }
 0x478   : > { %10750 = vmatprep.mubr.msk.bf16.mxu0 %vm12529_vm0, %v12528_v0 }
 0x47f   : > { %10751 = vmatmul.mubr.msk.bf16.gmra.mrb[248].mxu0 %vm756_vm1, %v12280_v57 }
 0x480   : > { %10754 = vmatprep.mubr.msk.bf16.mxu0 %vm12529_vm0, %v12528_v0 }
 0x487   : > { %10755 = vmatmul.mubr.msk.bf16.gmra.mrb[252].mxu0 %vm756_vm1, %v12282_v52 }
 0x488   : > { %10758 = vmatprep.mubr.msk.bf16.mxu0 %vm12529_vm0, %v12528_v0 }
 0x48f   : > { %10759 = vmatmul.mubr.msk.bf16.gmra.mrb[0].mxu0 %vm756_vm1, %v12284_v49 }
 0x490   : > { %10794 = vmatprep.mubr.msk.bf16.mxu0 %vm12529_vm0, %v12528_v0 }
 0x4c2   : > { %v2705_v8 = vpop.f32.mrb[80].mxu1 }
 0x4c3   : > { %v2706_v9 = vadd.f32 %v13720_v39, %v2705_v8  ;;  %v10594_v59 = vpop.f32.mrb[81].mxu1 }
 0x4c4   : > { %v2708_v27 = vpop.f32.mrb[82].mxu1 }
 0x4c5   : > { %v2709_v7 = vadd.f32 %v13743_v43, %v2708_v27  ;;  %v10595_v15 = vpop.f32.mrb[83].mxu1 }
 0x4c7   : > { %v2744_v25 = vpack.c.bf16 %v2709_v7, %v2706_v9 }
 0x4c9   : > { %10615 = vmatmul.mubr.msk.bf16.vlgmr.msra.gmra.mrb[20].mxu1 %vm924_vm3, %v2744_v25 }
 0x4ca   : > { %v2713_v34 = vpop.f32.mrb[84].mxu1  ;;  %10663 = vmatpush3.bf16.msra.mxu1 %v3132_v16  ;;  %10618 = vmatprep.mubr.msk.bf16.mxu1 %vm12529_vm0, %v12528_v0 }
 0x4cb   : > { %v2714_v39 = vadd.f32 %v13745_v48, %v2713_v34  ;;  %v10598_v35 = vpop.f32.mrb[85].mxu1  ;;  %10684 = vmatprep.subr.bf16.mxu1 %v12528_v0 }
 0x4cc   : > { %v2716_v37 = vpop.f32.mrb[86].mxu1 }
 0x4cd   : > { %v2717_v45 = vadd.f32 %v13747_v53, %v2716_v37  ;;  %v10599_v43 = vpop.f32.mrb[87].mxu1 }
 0x4cf   : > { %v2745_v47 = vpack.c.bf16 %v2717_v45, %v2714_v39 }
 0x4d1   : > { %10619 = vmatmul.mubr.msk.bf16.gmra.mrb[24].mxu1 %vm924_vm3, %v2745_v47 }
 0x4d2   : > { %v2721_v62 = vpop.f32.mrb[88].mxu1  ;;  %10622 = vmatprep.mubr.msk.bf16.mxu1 %vm12529_vm0, %v12528_v0 }
 0x4d3   : > { %v2722_v51 = vadd.f32 %v13749_v2, %v2721_v62  ;;  %v10602_v38 = vpop.f32.mrb[89].mxu1 }
 0x4d4   : > { %v2724_v26 = vpop.f32.mrb[90].mxu1 }
 0x4d5   : > { %v2725_v48 = vadd.f32 %v13751_v28, %v2724_v26  ;;  %v10603_v58 = vpop.f32.mrb[91].mxu1 }
 0x4d7   : > { %v2746_v60 = vpack.c.bf16 %v2725_v48, %v2722_v51 }
 0x4d9   : > { %10623 = vmatmul.mubr.msk.bf16.gmra.mrb[28].mxu1 %vm924_vm3, %v2746_v60 }
 0x4da   : > { %v2729_v1 = vpop.f32.mrb[92].mxu1  ;;  %10626 = vmatprep.mubr.msk.bf16.mxu1 %vm12529_vm0, %v12528_v0 }
 0x4db   : > { %v2730_v53 = vadd.f32 %v13753_v61, %v2729_v1  ;;  %v10606_v36 = vpop.f32.mrb[93].mxu1 }
 0x4dc   : > { %v2732_v33 = vpop.f32.mrb[94].mxu1 }
 0x4dd   : > { %v2733_v56 = vadd.f32 %v13755_v55, %v2732_v33  ;;  %v10607_v19 = vpop.f32.mrb[95].mxu1  ;;  %v12277_v55 = vld [vmem:[%s15049_s1 + $0x368] ss:$12 sps:$4 sm:$0xff]  }
 0x4df   : > { %v2747_v2 = vpack.c.bf16 %v2733_v56, %v2730_v53 }
 0x4e1   : > { %10627 = vmatmul.mubr.msk.bf16.gmra.mrb[32].mxu1 %vm924_vm3, %v2747_v2 }
 0x4e2   : > { %v2737_v30 = vpop.f32.mrb[96].mxu1  ;;  %10630 = vmatprep.mubr.msk.bf16.mxu1 %vm12529_vm0, %v12528_v0 }
 0x4e3   : > { %v2738_v28 = vadd.f32 %v13757_v18, %v2737_v30  ;;  %v10610_v46 = vpop.f32.mrb[97].mxu1 }
 0x4e4   : > { %v2740_v12 = vpop.f32.mrb[98].mxu1 }
 0x4e5   : > { %v2741_v6 = vadd.f32 %v13759_v44, %v2740_v12  ;;  %v10611_v29 = vpop.f32.mrb[99].mxu1 }
 0x4e7   : > { %v2748_v61 = vpack.c.bf16 %v2741_v6, %v2738_v28 }
 0x4e9   : > { %10631 = vmatmul.mubr.msk.bf16.gmra.mrb[36].mxu1 %vm924_vm3, %v2748_v61 }
 0x4ea   : > { %10664 = vmatprep.mubr.msk.bf16.mxu1 %vm12529_vm0, %v12528_v0 }
 0x4f1   : > { %10665 = vmatmul.mubr.msk.bf16.vlgmr.msra.gmra.mrb[20].mxu1 %vm924_vm3, %v3109_v20 }
 0x4f2   : > { %10685 = vmatpush3.bf16.msra.mxu1 %v12827_v23  ;;  %10668 = vmatprep.mubr.msk.bf16.mxu1 %vm12529_vm0, %v12528_v0  ;;  %v9138_v23 = vld [vmem:[%s14995_s2 + $0x1c] sm:$0xf] }
 0x4f3   : > { %10686 = vmatprep.subr.bf16.mxu1 %v12528_v0 }
 0x4f6   : > { %10687 = vmatpush3.bf16.msra.mxu1 %v12839_v31  ;;  %v12275_v31 = vld [vmem:[%s15049_s1 + $0x350] ss:$12 sps:$4 sm:$0xff]  }
 0x4f7   : > { %10688 = vmatprep.subr.bf16.mxu1 %v12528_v0 }
 0x4f9   : > { %10669 = vmatmul.mubr.msk.bf16.gmra.mrb[24].mxu1 %vm924_vm3, %v3110_v5 }
 0x4fa   : > { %10672 = vmatprep.mubr.msk.bf16.mxu1 %vm12529_vm0, %v12528_v0  ;;  %10689 = vmatpush3.bf16.msra.mxu1 %v12858_v41  ;;  %v3497_v41 = vsel %vm940_vm2, %v9138_v23, 0 }
 0x4fb   : > { %10690 = vmatprep.subr.bf16.mxu1 %v12528_v0 }
 0x4fe   : > { %10691 = vmatpush3.bf16.msra.mxu1 %v12874_v50  ;;  %v9929_v50 = vpop.f32.mrb[200].mxu0 }
 0x4ff   : > { %10712 = vmatprep.subr.bf16.mxu1 %v12528_v0  ;;  %v9930_v18 = vpop.f32.mrb[201].mxu0 }
 0x500   : > { %v9932_v44 = vpop.f32.mrb[202].mxu0  ;;  %v13992_v11 = vadd.f32 %v9930_v18, %v9929_v50 }
 0x501   : > { %10673 = vmatmul.mubr.msk.bf16.gmra.mrb[28].mxu1 %vm924_vm3, %v3111_v22  ;;  %v9933_v13 = vpop.f32.mrb[203].mxu0  ;;  %v12281_v22 = vld [vmem:[%s15049_s1 + $0x398] ss:$12 sps:$4 sm:$0xff]  }
 0x502   : > { %10676 = vmatprep.mubr.msk.bf16.mxu1 %vm12529_vm0, %v12528_v0  ;;  %v9935_v20 = vpop.f32.mrb[204].mxu0  ;;  %v14015_v24 = vadd.f32 %v9933_v13, %v9932_v44 }
 0x503   : > { %v9936_v4 = vpop.f32.mrb[205].mxu0 }
 0x504   : > { %v9938_v5 = vpop.f32.mrb[206].mxu0  ;;  %v14017_v34 = vadd.f32 %v9936_v4, %v9935_v20 }
 0x505   : > { %v9939_v14 = vpop.f32.mrb[207].mxu0 }
 0x506   : > { %v9941_v10 = vpop.f32.mrb[208].mxu0  ;;  %v14019_v39 = vadd.f32 %v9939_v14, %v9938_v5 }
 0x507   : > { %v9942_v21 = vpop.f32.mrb[209].mxu0 }
 0x508   : > { %v9944_v40 = vpop.f32.mrb[210].mxu0  ;;  %v14021_v47 = vadd.f32 %v9942_v21, %v9941_v10 }
 0x509   : > { %10677 = vmatmul.mubr.msk.bf16.gmra.mrb[32].mxu1 %vm924_vm3, %v3112_v17  ;;  %v9945_v17 = vpop.f32.mrb[211].mxu0 }
 0x50a   : > { %10680 = vmatprep.mubr.msk.bf16.mxu1 %vm12529_vm0, %v12528_v0  ;;  %v9947_v42 = vpop.f32.mrb[212].mxu0  ;;  %v14023_v62 = vadd.f32 %v9945_v17, %v9944_v40 }
 0x511   : > { %10681 = vmatmul.mubr.msk.bf16.gmra.mrb[36].mxu1 %vm924_vm3, %v3113_v54  ;;  %v9948_v54 = vpop.f32.mrb[213].mxu0 }
 0x512   : > { %10692 = vmatprep.mubr.msk.bf16.mxu1 %vm12529_vm0, %v12528_v0  ;;  %v9950_v3 = vpop.f32.mrb[214].mxu0  ;;  %v14025_v58 = vadd.f32 %v9948_v54, %v9947_v42 }
 0x513   : > { %v9951_v57 = vpop.f32.mrb[215].mxu0 }
 0x514   : > { %v9953_v52 = vpop.f32.mrb[216].mxu0  ;;  %v14027_v60 = vadd.f32 %v9951_v57, %v9950_v3 }
 0x515   : > { %v9954_v49 = vpop.f32.mrb[217].mxu0 }
 0x516   : > { %v9956_v8 = vpop.f32.mrb[218].mxu0  ;;  %v14029_v56 = vadd.f32 %v9954_v49, %v9953_v52 }
 0x517   : > { %v9957_v9 = vpop.f32.mrb[219].mxu0 }
 0x518   : > { %v9990_v59 = vpop.f32.mrb[220].mxu0  ;;  %v14031_v19 = vadd.f32 %v9957_v9, %v9956_v8 }
 0x519   : > { %10693 = vmatmul.mubr.msk.bf16.vlgmr.msra.gmra.mrb[100].mxu1 %vm756_vm1, %v12275_v31  ;;  %v9991_v27 = vpop.f32.mrb[221].mxu0 }
 0x51a   : > { %10696 = vmatprep.mubr.msk.bf16.mxu1 %vm12529_vm0, %v12528_v0  ;;  %10713 = vmatpush3.bf16.msra.mxu1 %v3497_v41  ;;  %v9993_v7 = vpop.f32.mrb[222].mxu0  ;;  %v9992_v6 = vadd.f32 %v9991_v27, %v9990_v59 }
 0x51b   : > { %10762 = vmatprep.subr.bf16.mxu1 %v12528_v0  ;;  %v9994_v15 = vpop.f32.mrb[223].mxu0 }
 0x51c   : > { %v9995_v61 = vadd.f32 %v9994_v15, %v9993_v7 }
 0x521   : > { %10697 = vmatmul.mubr.msk.bf16.gmra.mrb[104].mxu1 %vm756_vm1, %v12277_v55 }
 0x522   : > { %10700 = vmatprep.mubr.msk.bf16.mxu1 %vm12529_vm0, %v12528_v0  ;;  %v9996_v25 = vpop.f32.mrb[224].mxu0 }
 0x523   : > { %v9997_v16 = vpop.f32.mrb[225].mxu0 }
 0x524   : > { %v9999_v35 = vpop.f32.mrb[226].mxu0  ;;  %v9998_v44 = vadd.f32 %v9997_v16, %v9996_v25 }
 0x525   : > { %v10000_v37 = vpop.f32.mrb[227].mxu0 }
 0x526   : > { %v10001_v20 = vadd.f32 %v10000_v37, %v9999_v35 }
 0x529   : > { %10701 = vmatmul.mubr.msk.bf16.gmra.mrb[108].mxu1 %vm756_vm1, %v12279_v32 }
 0x52a   : > { %10704 = vmatprep.mubr.msk.bf16.mxu1 %vm12529_vm0, %v12528_v0  ;;  %v10002_v45 = vpop.f32.mrb[228].mxu0 }
 0x52b   : > { %v10003_v43 = vpop.f32.mrb[229].mxu0 }
 0x52c   : > { %v10005_v51 = vpop.f32.mrb[230].mxu0  ;;  %v10004_v21 = vadd.f32 %v10003_v43, %v10002_v45 }
 0x52d   : > { %v10006_v38 = vpop.f32.mrb[231].mxu0 }
 0x52e   : > { %v10007_v17 = vadd.f32 %v10006_v38, %v10005_v51 }
 0x531   : > { %10705 = vmatmul.mubr.msk.bf16.gmra.mrb[112].mxu1 %vm756_vm1, %v12281_v22 }
 0x532   : > { %10708 = vmatprep.mubr.msk.bf16.mxu1 %vm12529_vm0, %v12528_v0  ;;  %v10008_v26 = vpop.f32.mrb[232].mxu0 }
 0x533   : > { %v10009_v48 = vpop.f32.mrb[233].mxu0 }
 0x534   : > { %v10011_v1 = vpop.f32.mrb[234].mxu0  ;;  %v10010_v49 = vadd.f32 %v10009_v48, %v10008_v26 }
 0x535   : > { %v10012_v53 = vpop.f32.mrb[235].mxu0 }
 0x536   : > { %v10013_v9 = vadd.f32 %v10012_v53, %v10011_v1 }
 0x539   : > { %10709 = vmatmul.mubr.msk.bf16.gmra.mrb[116].mxu1 %vm756_vm1, %v12283_v63 }
 0x53a   : > { %10714 = vmatprep.mubr.msk.bf16.mxu1 %vm12529_vm0, %v12528_v0  ;;  %v10014_v36 = vpop.f32.mrb[236].mxu0 }
 0x53b   : > { %v10015_v33 = vpop.f32.mrb[237].mxu0 }
 0x53c   : > { %v10016_v2 = vadd.f32 %v10015_v33, %v10014_v36  ;;  %v10017_v30 = vpop.f32.mrb[238].mxu0  ;;  %v9184_v36 = vld [vmem:[%s14995_s2 + $0x20] sm:$0xf] }
 0x53d   : > { %v10018_v28 = vpop.f32.mrb[239].mxu0 }
 0x53e   : > { %v10019_v46 = vadd.f32 %v10018_v28, %v10017_v30  ;;  %v3862_v28 = vsel %vm940_vm2, %v9184_v36, 0 }
 0x542   : > { %v3800_v12 = vpop.f32.mrb[240].mxu0 }
 0x543   : > { %v10744_v29 = vpop.f32.mrb[241].mxu0  ;;  %v14033_v31 = vadd.f32 %v9992_v6, %v3800_v12 }
 0x544   : > { %v3803_v23 = vpop.f32.mrb[242].mxu0 }
 0x545   : > { %v14035_v41 = vadd.f32 %v9995_v61, %v3803_v23  ;;  %v10745_v50 = vpop.f32.mrb[243].mxu0 }
 0x547   : > { %v3839_v55 = vpack.c.bf16 %v14035_v41, %v14033_v31 }
 0x54a   : > { %v3808_v18 = vpop.f32.mrb[244].mxu0 }
 0x54b   : > { %v10748_v13 = vpop.f32.mrb[245].mxu0  ;;  %v14039_v4 = vadd.f32 %v9998_v44, %v3808_v18 }
 0x54c   : > { %v3811_v32 = vpop.f32.mrb[246].mxu0 }
 0x54d   : > { %v14041_v5 = vadd.f32 %v10001_v20, %v3811_v32  ;;  %v10749_v14 = vpop.f32.mrb[247].mxu0 }
 0x54f   : > { %v3840_v10 = vpack.c.bf16 %v14041_v5, %v14039_v4 }
 0x552   : > { %v3816_v22 = vpop.f32.mrb[248].mxu0 }
 0x553   : > { %v10752_v40 = vpop.f32.mrb[249].mxu0  ;;  %v14045_v63 = vadd.f32 %v10004_v21, %v3816_v22 }
 0x554   : > { %v3819_v42 = vpop.f32.mrb[250].mxu0 }
 0x555   : > { %v14047_v54 = vadd.f32 %v10007_v17, %v3819_v42  ;;  %v10753_v3 = vpop.f32.mrb[251].mxu0 }
 0x557   : > { %v3841_v57 = vpack.c.bf16 %v14047_v54, %v14045_v63 }
 0x55a   : > { %v3824_v52 = vpop.f32.mrb[252].mxu0 }
 0x55b   : > { %v10756_v8 = vpop.f32.mrb[253].mxu0  ;;  %v14051_v27 = vadd.f32 %v10010_v49, %v3824_v52 }
 0x55c   : > { %v3827_v59 = vpop.f32.mrb[254].mxu0 }
 0x55d   : > { %v14053_v7 = vadd.f32 %v10013_v9, %v3827_v59  ;;  %v10757_v15 = vpop.f32.mrb[255].mxu0 }
 0x55f   : > { %v3842_v25 = vpack.c.bf16 %v14053_v7, %v14051_v27 }
 0x562   : > { %v3832_v16 = vpop.f32.mrb[0].mxu0 }
 0x563   : > { %v14057_v35 = vadd.f32 %v10016_v2, %v3832_v16  ;;  %v10760_v37 = vpop.f32.mrb[1].mxu0 }
 0x564   : > { %v3835_v45 = vpop.f32.mrb[2].mxu0 }
 0x565   : > { %v3836_v43 = vadd.f32 %v10019_v46, %v3835_v45  ;;  %v10761_v51 = vpop.f32.mrb[3].mxu0 }
 0x567   : > { %v3843_v38 = vpack.c.bf16 %v3836_v43, %v14057_v35 }
 0x5ec   : > { %v3435_v26 = vpop.f32.mrb[100].mxu1 }
 0x5ed   : > { %v3436_v48 = vadd.f32 %v13992_v11, %v3435_v26  ;;  %v10694_v1 = vpop.f32.mrb[101].mxu1 }
 0x5ee   : > { %v3438_v53 = vpop.f32.mrb[102].mxu1 }
 0x5ef   : > { %v3439_v33 = vadd.f32 %v14015_v24, %v3438_v53  ;;  %v10695_v30 = vpop.f32.mrb[103].mxu1 }
 0x5f1   : > { %v3474_v2 = vpack.c.bf16 %v3439_v33, %v3436_v48 }
 0x5f3   : > { %10715 = vmatmul.mubr.msk.bf16.vlgmr.msra.gmra.mrb[20].mxu1 %vm924_vm3, %v3474_v2 }
 0x5f4   : > { %v3443_v46 = vpop.f32.mrb[104].mxu1  ;;  %10763 = vmatpush3.bf16.msra.mxu1 %v3862_v28  ;;  %10718 = vmatprep.mubr.msk.bf16.mxu1 %vm12529_vm0, %v12528_v0 }
 0x5f5   : > { %v3444_v11 = vadd.f32 %v14017_v34, %v3443_v46  ;;  %v10698_v12 = vpop.f32.mrb[105].mxu1  ;;  %10814 = vmatprep.subr.bf16.mxu1 %v12528_v0 }
 0x5f6   : > { %v3446_v6 = vpop.f32.mrb[106].mxu1 }
 0x5f7   : > { %v3447_v29 = vadd.f32 %v14019_v39, %v3446_v6  ;;  %v10699_v24 = vpop.f32.mrb[107].mxu1 }
 0x5f9   : > { %v3475_v61 = vpack.c.bf16 %v3447_v29, %v3444_v11 }
 0x5fb   : > { %10719 = vmatmul.mubr.msk.bf16.gmra.mrb[24].mxu1 %vm924_vm3, %v3475_v61 }
 0x5fc   : > { %v3451_v23 = vpop.f32.mrb[108].mxu1  ;;  %10722 = vmatprep.mubr.msk.bf16.mxu1 %vm12529_vm0, %v12528_v0 }
 0x5fd   : > { %v3452_v50 = vadd.f32 %v14021_v47, %v3451_v23  ;;  %v10702_v18 = vpop.f32.mrb[109].mxu1 }
 0x5fe   : > { %v3454_v44 = vpop.f32.mrb[110].mxu1 }
 0x5ff   : > { %v3455_v34 = vadd.f32 %v14023_v62, %v3454_v44  ;;  %v10703_v13 = vpop.f32.mrb[111].mxu1 }
 0x600   : > { %v12286_v13 = vld [vmem:[#allocation2 + $0x8] sm:$0xff]  }
 0x601   : > { %v3476_v20 = vpack.c.bf16 %v3455_v34, %v3452_v50  ;;  %v12285_v34 = vld [vmem:[#allocation2] sm:$0xff]  }
 0x603   : > { %10723 = vmatmul.mubr.msk.bf16.gmra.mrb[28].mxu1 %vm924_vm3, %v3476_v20  ;;  %v12287_v20 = vld [vmem:[#allocation2 + $0x10] sm:$0xff]  }
 0x604   : > { %v3459_v32 = vpop.f32.mrb[112].mxu1  ;;  %10726 = vmatprep.mubr.msk.bf16.mxu1 %vm12529_vm0, %v12528_v0 }
 0x605   : > { %v3460_v39 = vadd.f32 %v14025_v58, %v3459_v32  ;;  %v10706_v14 = vpop.f32.mrb[113].mxu1  ;;  %v12288_v32 = vld [vmem:[#allocation2 + $0x18] sm:$0xff]  }
 0x606   : > { %v3462_v22 = vpop.f32.mrb[114].mxu1  ;;  %v12290_v14 = vld [vmem:[#allocation2 + $0x28] sm:$0xff]  }
 0x607   : > { %v3463_v21 = vadd.f32 %v14027_v60, %v3462_v22  ;;  %v10707_v40 = vpop.f32.mrb[115].mxu1  ;;  %v8796_v60 = vld [vmem:[%s14996_s3] ss:$0 sm:$0xff]  ;;  %v12291_v22 = vld [vmem:[#allocation2 + $0x30] sm:$0xff]  }
 0x609   : > { %v3477_v47 = vpack.c.bf16 %v3463_v21, %v3460_v39  ;;  %v12289_v39 = vld [vmem:[#allocation2 + $0x20] sm:$0xff]  }
 0x60a   : > { %v4099_v21 = vld [vmem:[%s14998_s5] sm:$0x3] }
 0x60b   : > { %10727 = vmatmul.mubr.msk.bf16.gmra.mrb[32].mxu1 %vm924_vm3, %v3477_v47  ;;  %v4118_v40 = vsel %vm4116_vm5, %v4099_v21, 0  ;;  %v12292_v47 = vld [vmem:[#allocation2 + $0x38] sm:$0xff]  }
 0x60c   : > { %v3467_v17 = vpop.f32.mrb[116].mxu1  ;;  %10730 = vmatprep.mubr.msk.bf16.mxu1 %vm12529_vm0, %v12528_v0 }
 0x60d   : > { %v3468_v62 = vadd.f32 %v14029_v56, %v3467_v17  ;;  %v10710_v42 = vpop.f32.mrb[117].mxu1  ;;  %v12293_v17 = vld [vmem:[#allocation2 + $0x40] sm:$0xff]  }
 0x60e   : > { %v3470_v3 = vpop.f32.mrb[118].mxu1  ;;  %v12295_v42 = vld [vmem:[#allocation2 + $0x50] sm:$0xff]  }
 0x60f   : > { %v3471_v52 = vadd.f32 %v14031_v19, %v3470_v3  ;;  %v10711_v49 = vpop.f32.mrb[119].mxu1  ;;  %v12296_v3 = vld [vmem:[#allocation2 + $0x58] sm:$0xff]  }
 0x610   : > { %v12298_v49 = vld [vmem:[#allocation2 + $0x68] sm:$0xff]  }
 0x611   : > { %v3478_v58 = vpack.c.bf16 %v3471_v52, %v3468_v62  ;;  %v12294_v62 = vld [vmem:[#allocation2 + $0x48] sm:$0xff]   ;;  %v12297_v52 = vld [vmem:[#allocation2 + $0x60] sm:$0xff]  }
 0x613   : > { %10731 = vmatmul.mubr.msk.bf16.gmra.mrb[36].mxu1 %vm924_vm3, %v3478_v58  ;;  %v12299_v58 = vld [vmem:[#allocation2 + $0x70] sm:$0xff]  }
 0x614   : > { %10764 = vmatprep.mubr.msk.bf16.mxu1 %vm12529_vm0, %v12528_v0 }
 0x61b   : > { %10765 = vmatmul.mubr.msk.bf16.vlgmr.msra.gmra.mrb[20].mxu1 %vm924_vm3, %v3839_v55 }
 0x61c   : > { %10768 = vmatprep.mubr.msk.bf16.mxu1 %vm12529_vm0, %v12528_v0  ;;  %10815 = vmatpush3.bf16.msra.mxu1 %v4118_v40 }
 0x61d   : > { %10866 = vmatprep.subr.bf16.mxu1 %v12528_v0 }
 0x623   : > { %10769 = vmatmul.mubr.msk.bf16.gmra.mrb[24].mxu1 %vm924_vm3, %v3840_v10 }
 0x624   : > { %10772 = vmatprep.mubr.msk.bf16.mxu1 %vm12529_vm0, %v12528_v0 }
 0x62b   : > { %10773 = vmatmul.mubr.msk.bf16.gmra.mrb[28].mxu1 %vm924_vm3, %v3841_v57 }
 0x62c   : > { %10776 = vmatprep.mubr.msk.bf16.mxu1 %vm12529_vm0, %v12528_v0 }
 0x633   : > { %10777 = vmatmul.mubr.msk.bf16.gmra.mrb[32].mxu1 %vm924_vm3, %v3842_v25 }
 0x634   : > { %10780 = vmatprep.mubr.msk.bf16.mxu1 %vm12529_vm0, %v12528_v0 }
 0x63b   : > { %10781 = vmatmul.mubr.msk.bf16.gmra.mrb[36].mxu1 %vm924_vm3, %v3843_v38 }
 0x63c   : > { %10816 = vmatprep.mubr.msk.bf16.mxu1 %vm12529_vm0, %v12528_v0 }
 0x6ee   : > { %v3898_v56 = vpop.f32.mrb[20].mxu1 }
 0x6ef   : > { %v11564_v19 = vadd.f32 %v8796_v60, %v3898_v56  ;;  %v10766_v31 = vpop.f32.mrb[21].mxu1  ;;  %v12301_v56 = vld [vmem:[#allocation2 + $0x80] sm:$0xff]  }
 0x6f0   : > { %v3901_v41 = vpop.f32.mrb[22].mxu1  ;;  %v12303_v31 = vld [vmem:[#allocation2 + $0x90] sm:$0xff]  }
 0x6f1   : > { %v11565_v55 = vadd.f32 %v8796_v60, %v3901_v41  ;;  %v10767_v4 = vpop.f32.mrb[23].mxu1  ;;  %v3947_v5 = vmax.f32 %v11564_v19, 0.0  ;;  %v12302_v19 = vld [vmem:[#allocation2 + $0x88] sm:$0xff]   ;;  %v12304_v41 = vld [vmem:[#allocation2 + $0x98] sm:$0xff]  }
 0x6f2   : > { %v12306_v4 = vld [vmem:[#allocation2 + $0xa8] sm:$0xff]  }
 0x6f3   : > { %v3948_v10 = vmax.f32 %v11565_v55, 0.0  ;;  %v12305_v55 = vld [vmem:[#allocation2 + $0xa0] sm:$0xff]  }
 0x6f5   : > { %v14120_v63 = vpack.c.bf16 %v3948_v10, %v3947_v5  ;;  %v12307_v5 = vld [vmem:[#allocation2 + $0xb0] sm:$0xff]   ;;  %v12308_v10 = vld [vmem:[#allocation2 + $0xb8] sm:$0xff]  }
 0x6f6   : > { %v3906_v54 = vpop.f32.mrb[24].mxu1 }
 0x6f7   : > { %v11566_v57 = vadd.f32 %v8796_v60, %v3906_v54  ;;  %v10770_v8 = vpop.f32.mrb[25].mxu1  ;;  %10785 = vmatpush3.bf16.msra.mxu0 %v14120_v63  ;;  %v12309_v54 = vld [vmem:[#allocation2 + $0xc0] sm:$0xff]  }
 0x6f8   : > { %v3909_v9 = vpop.f32.mrb[26].mxu1  ;;  %10786 = vmatprep.subr.bf16.mxu0 %v12528_v0  ;;  %v12311_v8 = vld [vmem:[#allocation2 + $0xd0] sm:$0xff]  }
 0x6f9   : > { %v11567_v59 = vadd.f32 %v8796_v60, %v3909_v9  ;;  %v10771_v27 = vpop.f32.mrb[27].mxu1  ;;  %v3949_v7 = vmax.f32 %v11566_v57, 0.0  ;;  %v12310_v57 = vld [vmem:[#allocation2 + $0xc8] sm:$0xff]  }
 0x6fb   : > { %v3950_v15 = vmax.f32 %v11567_v59, 0.0  ;;  %v9216_v59 = vld [vmem:[%s14998_s5 + $0x2] sm:$0x3] }
 0x6fd   : > { %v14124_v25 = vpack.c.bf16 %v3950_v15, %v3949_v7  ;;  %v12312_v7 = vld [vmem:[#allocation2 + $0xd8] sm:$0xff]  }
 0x6fe   : > { %v3914_v16 = vpop.f32.mrb[28].mxu1 }
 0x6ff   : > { %v11568_v35 = vadd.f32 %v8796_v60, %v3914_v16  ;;  %v10774_v37 = vpop.f32.mrb[29].mxu1  ;;  %10787 = vmatpush3.bf16.msra.mxu0 %v14124_v25 }
 0x700   : > { %v3917_v45 = vpop.f32.mrb[30].mxu1  ;;  %10788 = vmatprep.subr.bf16.mxu0 %v12528_v0  ;;  %v4350_v37 = vsel %vm4116_vm5, %v9216_v59, 0 }
 0x701   : > { %v11569_v43 = vadd.f32 %v8796_v60, %v3917_v45  ;;  %v10775_v51 = vpop.f32.mrb[31].mxu1  ;;  %v3951_v38 = vmax.f32 %v11568_v35, 0.0 }
 0x702   : > { %v12313_v51 = vld [vmem:[#allocation2 + $0xe0] sm:$0xff]  }
 0x703   : > { %v3952_v26 = vmax.f32 %v11569_v43, 0.0 }
 0x705   : > { %v14128_v48 = vpack.c.bf16 %v3952_v26, %v3951_v38 }
 0x706   : > { %v3922_v1 = vpop.f32.mrb[32].mxu1 }
 0x707   : > { %v11570_v53 = vadd.f32 %v8796_v60, %v3922_v1  ;;  %v10778_v36 = vpop.f32.mrb[33].mxu1  ;;  %10789 = vmatpush3.bf16.msra.mxu0 %v14128_v48 }
 0x708   : > { %v3925_v33 = vpop.f32.mrb[34].mxu1  ;;  %10790 = vmatprep.subr.bf16.mxu0 %v12528_v0 }
 0x709   : > { %v11571_v30 = vadd.f32 %v8796_v60, %v3925_v33  ;;  %v10779_v2 = vpop.f32.mrb[35].mxu1  ;;  %v3953_v28 = vmax.f32 %v11570_v53, 0.0  ;;  %v12314_v33 = vld [vmem:[#allocation2 + $0xe8] sm:$0xff]  }
 0x70b   : > { %v3954_v46 = vmax.f32 %v11571_v30, 0.0 }
 0x70d   : > { %v14132_v11 = vpack.c.bf16 %v3954_v46, %v3953_v28 }
 0x70e   : > { %v3930_v12 = vpop.f32.mrb[36].mxu1 }
 0x70f   : > { %v11572_v6 = vadd.f32 %v8796_v60, %v3930_v12  ;;  %v10782_v29 = vpop.f32.mrb[37].mxu1  ;;  %10791 = vmatpush3.bf16.msra.mxu0 %v14132_v11 }
 0x710   : > { %v3933_v24 = vpop.f32.mrb[38].mxu1  ;;  %10792 = vmatprep.subr.bf16.mxu0 %v12528_v0 }
 0x711   : > { %v11573_v61 = vadd.f32 %v8796_v60, %v3933_v24  ;;  %v10783_v23 = vpop.f32.mrb[39].mxu1  ;;  %v3955_v50 = vmax.f32 %v11572_v6, 0.0  ;;  %v12300_v60 = vld [vmem:[#allocation2 + $0x78] sm:$0xff]   ;;  %v12315_v6 = vld [vmem:[#allocation2 + $0xf0] sm:$0xff]  }
 0x713   : > { %v3956_v18 = vmax.f32 %v11573_v61, 0.0 }
 0x715   : > { %v14136_v44 = vpack.c.bf16 %v3956_v18, %v3955_v50  ;;  %v12316_v18 = vld [vmem:[#allocation2 + $0xf8] sm:$0xff]  }
 0x717   : > { %10793 = vmatpush3.bf16.msra.mxu0 %v14136_v44 }
 0x718   : > { %10836 = vmatprep.subr.bf16.mxu0 %v12528_v0 }
 0x71a   : > { %10795 = vmatmul.mubr.msk.bf16.vlgmr.msra.gmra.mrb[4].mxu0 %vm4005_vm4, %v12285_v34 }
 0x71b   : > { %10837 = vmatpush3.bf16.msra.mxu0 %v14120_v63  ;;  %10798 = vmatprep.mubr.msk.bf16.mxu0 %vm12529_vm0, %v12528_v0 }
 0x71c   : > { %10838 = vmatprep.subr.bf16.mxu0 %v12528_v0 }
 0x71f   : > { %10839 = vmatpush3.bf16.msra.mxu0 %v14124_v25 }
 0x720   : > { %10840 = vmatprep.subr.bf16.mxu0 %v12528_v0 }
 0x722   : > { %10799 = vmatmul.mubr.msk.bf16.gmra.mrb[8].mxu0 %vm4005_vm4, %v12286_v13 }
 0x723   : > { %10841 = vmatpush3.bf16.msra.mxu0 %v14128_v48  ;;  %10802 = vmatprep.mubr.msk.bf16.mxu0 %vm12529_vm0, %v12528_v0 }
 0x724   : > { %10842 = vmatprep.subr.bf16.mxu0 %v12528_v0 }
 0x727   : > { %10843 = vmatpush3.bf16.msra.mxu0 %v14132_v11 }
 0x728   : > { %10844 = vmatprep.subr.bf16.mxu0 %v12528_v0 }
 0x72a   : > { %10803 = vmatmul.mubr.msk.bf16.gmra.mrb[12].mxu0 %vm4005_vm4, %v12287_v20 }
 0x72b   : > { %10845 = vmatpush3.bf16.msra.mxu0 %v14136_v44  ;;  %10806 = vmatprep.mubr.msk.bf16.mxu0 %vm12529_vm0, %v12528_v0 }
 0x72c   : > { %10888 = vmatprep.subr.bf16.mxu0 %v12528_v0 }
 0x732   : > { %10807 = vmatmul.mubr.msk.bf16.gmra.mrb[16].mxu0 %vm4005_vm4, %v12288_v32 }
 0x733   : > { %10810 = vmatprep.mubr.msk.bf16.mxu0 %vm12529_vm0, %v12528_v0 }
 0x73a   : > { %10811 = vmatmul.mubr.msk.bf16.gmra.mrb[20].mxu0 %vm4005_vm4, %v12289_v39  ;;  %v9232_v39 = vld [vmem:[%s14998_s5 + $0x4] sm:$0x3] }
 0x73b   : > { %10846 = vmatprep.mubr.msk.bf16.mxu0 %vm12529_vm0, %v12528_v0 }
 0x742   : > { %10847 = vmatmul.mubr.msk.bf16.vlgmr.msra.gmra.mrb[24].mxu0 %vm4005_vm4, %v12290_v14 }
 0x743   : > { %10889 = vmatpush3.bf16.msra.mxu0 %v14120_v63  ;;  %10850 = vmatprep.mubr.msk.bf16.mxu0 %vm12529_vm0, %v12528_v0 }
 0x744   : > { %10890 = vmatprep.subr.bf16.mxu0 %v12528_v0 }
 0x747   : > { %10891 = vmatpush3.bf16.msra.mxu0 %v14124_v25 }
 0x748   : > { %10892 = vmatprep.subr.bf16.mxu0 %v12528_v0 }
 0x74a   : > { %10851 = vmatmul.mubr.msk.bf16.gmra.mrb[28].mxu0 %vm4005_vm4, %v12291_v22  ;;  %v12317_v22 = vld [vmem:[#allocation2 + $0x100] sm:$0xff]  }
 0x74b   : > { %10893 = vmatpush3.bf16.msra.mxu0 %v14128_v48  ;;  %10854 = vmatprep.mubr.msk.bf16.mxu0 %vm12529_vm0, %v12528_v0 }
 0x74c   : > { %10894 = vmatprep.subr.bf16.mxu0 %v12528_v0 }
 0x74f   : > { %10895 = vmatpush3.bf16.msra.mxu0 %v14132_v11 }
 0x750   : > { %10896 = vmatprep.subr.bf16.mxu0 %v12528_v0 }
 0x752   : > { %10855 = vmatmul.mubr.msk.bf16.gmra.mrb[32].mxu0 %vm4005_vm4, %v12292_v47 }
 0x753   : > { %10897 = vmatpush3.bf16.msra.mxu0 %v14136_v44  ;;  %10858 = vmatprep.mubr.msk.bf16.mxu0 %vm12529_vm0, %v12528_v0 }
 0x754   : > { %10940 = vmatprep.subr.bf16.mxu0 %v12528_v0 }
 0x75a   : > { %10859 = vmatmul.mubr.msk.bf16.gmra.mrb[36].mxu0 %vm4005_vm4, %v12293_v17  ;;  %v4582_v17 = vsel %vm4116_vm5, %v9232_v39, 0 }
 0x75b   : > { %10862 = vmatprep.mubr.msk.bf16.mxu0 %vm12529_vm0, %v12528_v0 }
 0x762   : > { %10863 = vmatmul.mubr.msk.bf16.gmra.mrb[40].mxu0 %vm4005_vm4, %v12294_v62 }
 0x763   : > { %10898 = vmatprep.mubr.msk.bf16.mxu0 %vm12529_vm0, %v12528_v0 }
 0x76a   : > { %10899 = vmatmul.mubr.msk.bf16.vlgmr.msra.gmra.mrb[44].mxu0 %vm4005_vm4, %v12295_v42 }
 0x76b   : > { %10941 = vmatpush3.bf16.msra.mxu0 %v14120_v63  ;;  %10902 = vmatprep.mubr.msk.bf16.mxu0 %vm12529_vm0, %v12528_v0 }
 0x76c   : > { %10942 = vmatprep.subr.bf16.mxu0 %v12528_v0 }
 0x76f   : > { %10943 = vmatpush3.bf16.msra.mxu0 %v14124_v25 }
 0x770   : > { %10944 = vmatprep.subr.bf16.mxu0 %v12528_v0 }
 0x772   : > { %10903 = vmatmul.mubr.msk.bf16.gmra.mrb[48].mxu0 %vm4005_vm4, %v12296_v3  ;;  %v12318_v3 = vld [vmem:[#allocation2 + $0x108] sm:$0xff]  }
 0x773   : > { %10945 = vmatpush3.bf16.msra.mxu0 %v14128_v48  ;;  %10906 = vmatprep.mubr.msk.bf16.mxu0 %vm12529_vm0, %v12528_v0 }
 0x774   : > { %10946 = vmatprep.subr.bf16.mxu0 %v12528_v0 }
 0x777   : > { %10947 = vmatpush3.bf16.msra.mxu0 %v14132_v11 }
 0x778   : > { %10948 = vmatprep.subr.bf16.mxu0 %v12528_v0 }
 0x77a   : > { %10907 = vmatmul.mubr.msk.bf16.gmra.mrb[52].mxu0 %vm4005_vm4, %v12297_v52 }
 0x77b   : > { %10949 = vmatpush3.bf16.msra.mxu0 %v14136_v44  ;;  %10910 = vmatprep.mubr.msk.bf16.mxu0 %vm12529_vm0, %v12528_v0 }
 0x77c   : > { %10992 = vmatprep.subr.bf16.mxu0 %v12528_v0 }
 0x782   : > { %10911 = vmatmul.mubr.msk.bf16.gmra.mrb[56].mxu0 %vm4005_vm4, %v12298_v49 }
 0x783   : > { %10914 = vmatprep.mubr.msk.bf16.mxu0 %vm12529_vm0, %v12528_v0 }
 0x78a   : > { %10915 = vmatmul.mubr.msk.bf16.gmra.mrb[60].mxu0 %vm4005_vm4, %v12299_v58 }
 0x78b   : > { %10950 = vmatprep.mubr.msk.bf16.mxu0 %vm12529_vm0, %v12528_v0 }
 0x792   : > { %10951 = vmatmul.mubr.msk.bf16.vlgmr.msra.gmra.mrb[64].mxu0 %vm4005_vm4, %v12300_v60 }
 0x793   : > { %10993 = vmatpush3.bf16.msra.mxu0 %v14120_v63  ;;  %10954 = vmatprep.mubr.msk.bf16.mxu0 %vm12529_vm0, %v12528_v0 }
 0x794   : > { %10994 = vmatprep.subr.bf16.mxu0 %v12528_v0 }
 0x797   : > { %10995 = vmatpush3.bf16.msra.mxu0 %v14124_v25 }
 0x798   : > { %10996 = vmatprep.subr.bf16.mxu0 %v12528_v0 }
 0x79a   : > { %10955 = vmatmul.mubr.msk.bf16.gmra.mrb[68].mxu0 %vm4005_vm4, %v12301_v56 }
 0x79b   : > { %10997 = vmatpush3.bf16.msra.mxu0 %v14128_v48  ;;  %10958 = vmatprep.mubr.msk.bf16.mxu0 %vm12529_vm0, %v12528_v0 }
 0x79c   : > { %10998 = vmatprep.subr.bf16.mxu0 %v12528_v0 }
 0x79f   : > { %10999 = vmatpush3.bf16.msra.mxu0 %v14132_v11 }
 0x7a0   : > { %11000 = vmatprep.subr.bf16.mxu0 %v12528_v0 }
 0x7a2   : > { %10959 = vmatmul.mubr.msk.bf16.gmra.mrb[72].mxu0 %vm4005_vm4, %v12302_v19  ;;  %v12319_v19 = vld [vmem:[#allocation2 + $0x110] sm:$0xff]  }
 0x7a3   : > { %11001 = vmatpush3.bf16.msra.mxu0 %v14136_v44  ;;  %10962 = vmatprep.mubr.msk.bf16.mxu0 %vm12529_vm0, %v12528_v0 }
 0x7a4   : > { %11044 = vmatprep.subr.bf16.mxu0 %v12528_v0 }
 0x7aa   : > { %10963 = vmatmul.mubr.msk.bf16.gmra.mrb[76].mxu0 %vm4005_vm4, %v12303_v31 }
 0x7ab   : > { %10966 = vmatprep.mubr.msk.bf16.mxu0 %vm12529_vm0, %v12528_v0 }
 0x7b2   : > { %10967 = vmatmul.mubr.msk.bf16.gmra.mrb[80].mxu0 %vm4005_vm4, %v12304_v41 }
 0x7b3   : > { %11002 = vmatprep.mubr.msk.bf16.mxu0 %vm12529_vm0, %v12528_v0 }
 0x7ba   : > { %11003 = vmatmul.mubr.msk.bf16.vlgmr.msra.gmra.mrb[84].mxu0 %vm4005_vm4, %v12305_v55 }
 0x7bb   : > { %11045 = vmatpush3.bf16.msra.mxu0 %v14120_v63  ;;  %11006 = vmatprep.mubr.msk.bf16.mxu0 %vm12529_vm0, %v12528_v0 }
 0x7bc   : > { %11046 = vmatprep.subr.bf16.mxu0 %v12528_v0 }
 0x7bf   : > { %11047 = vmatpush3.bf16.msra.mxu0 %v14124_v25 }
 0x7c0   : > { %11048 = vmatprep.subr.bf16.mxu0 %v12528_v0 }
 0x7c2   : > { %11007 = vmatmul.mubr.msk.bf16.gmra.mrb[88].mxu0 %vm4005_vm4, %v12306_v4 }
 0x7c3   : > { %11049 = vmatpush3.bf16.msra.mxu0 %v14128_v48  ;;  %11010 = vmatprep.mubr.msk.bf16.mxu0 %vm12529_vm0, %v12528_v0 }
 0x7c4   : > { %11050 = vmatprep.subr.bf16.mxu0 %v12528_v0 }
 0x7c7   : > { %11051 = vmatpush3.bf16.msra.mxu0 %v14132_v11 }
 0x7c8   : > { %11052 = vmatprep.subr.bf16.mxu0 %v12528_v0 }
 0x7ca   : > { %11011 = vmatmul.mubr.msk.bf16.gmra.mrb[92].mxu0 %vm4005_vm4, %v12307_v5 }
 0x7cb   : > { %11053 = vmatpush3.bf16.msra.mxu0 %v14136_v44  ;;  %11014 = vmatprep.mubr.msk.bf16.mxu0 %vm12529_vm0, %v12528_v0 }
 0x7cc   : > { %11096 = vmatprep.subr.bf16.mxu0 %v12528_v0 }
 0x7d2   : > { %11015 = vmatmul.mubr.msk.bf16.gmra.mrb[96].mxu0 %vm4005_vm4, %v12308_v10  ;;  %v12320_v10 = vld [vmem:[#allocation2 + $0x118] sm:$0xff]  }
 0x7d3   : > { %11018 = vmatprep.mubr.msk.bf16.mxu0 %vm12529_vm0, %v12528_v0 }
 0x7da   : > { %11019 = vmatmul.mubr.msk.bf16.gmra.mrb[100].mxu0 %vm4005_vm4, %v12309_v54 }
 0x7db   : > { %11054 = vmatprep.mubr.msk.bf16.mxu0 %vm12529_vm0, %v12528_v0 }
 0x7e2   : > { %11055 = vmatmul.mubr.msk.bf16.vlgmr.msra.gmra.mrb[104].mxu0 %vm4005_vm4, %v12310_v57 }
 0x7e3   : > { %11097 = vmatpush3.bf16.msra.mxu0 %v14120_v63  ;;  %11058 = vmatprep.mubr.msk.bf16.mxu0 %vm12529_vm0, %v12528_v0 }
 0x7e4   : > { %11098 = vmatprep.subr.bf16.mxu0 %v12528_v0 }
 0x7e7   : > { %11099 = vmatpush3.bf16.msra.mxu0 %v14124_v25 }
 0x7e8   : > { %11100 = vmatprep.subr.bf16.mxu0 %v12528_v0 }
 0x7ea   : > { %11059 = vmatmul.mubr.msk.bf16.gmra.mrb[108].mxu0 %vm4005_vm4, %v12311_v8 }
 0x7eb   : > { %11101 = vmatpush3.bf16.msra.mxu0 %v14128_v48  ;;  %11062 = vmatprep.mubr.msk.bf16.mxu0 %vm12529_vm0, %v12528_v0 }
 0x7ec   : > { %11102 = vmatprep.subr.bf16.mxu0 %v12528_v0 }
 0x7ed   : > { %v4055_v9 = vpop.f32.mrb[4].mxu0 }
 0x7ee   : > { %v10796_v27 = vpop.f32.mrb[5].mxu0 }
 0x7ef   : > { %11103 = vmatpush3.bf16.msra.mxu0 %v14132_v11  ;;  %v4058_v15 = vpop.f32.mrb[6].mxu0  ;;  %v12321_v27 = vld [vmem:[#allocation2 + $0x120] sm:$0xff]  }
 0x7f0   : > { %v4094_v16 = vpack.c.bf16 %v4058_v15, %v4055_v9  ;;  %v10797_v35 = vpop.f32.mrb[7].mxu0  ;;  %11104 = vmatprep.subr.bf16.mxu0 %v12528_v0 }
 0x7f2   : > { %10817 = vmatmul.mubr.msk.bf16.vlgmr.msra.gmra.mrb[120].mxu1 %vm4100_vm6, %v4094_v16  ;;  %11063 = vmatmul.mubr.msk.bf16.gmra.mrb[112].mxu0 %vm4005_vm4, %v12312_v7 }
 0x7f3   : > { %11105 = vmatpush3.bf16.msra.mxu0 %v14136_v44  ;;  %10867 = vmatpush3.bf16.msra.mxu1 %v4350_v37  ;;  %v12322_v37 = vld [vmem:[#allocation2 + $0x128] sm:$0xff]  }
 0x7f4   : > { %10820 = vmatprep.mubr.msk.bf16.mxu1 %vm12529_vm0, %v12528_v0  ;;  %11066 = vmatprep.mubr.msk.bf16.mxu0 %vm12529_vm0, %v12528_v0 }
 0x7f5   : > { %v4063_v45 = vpop.f32.mrb[8].mxu0  ;;  %11148 = vmatprep.subr.bf16.mxu0 %v12528_v0  ;;  %10918 = vmatprep.subr.bf16.mxu1 %v12528_v0 }
 0x7f6   : > { %v10800_v43 = vpop.f32.mrb[9].mxu0 }
 0x7f7   : > { %v4066_v38 = vpop.f32.mrb[10].mxu0 }
 0x7f8   : > { %v4095_v26 = vpack.c.bf16 %v4066_v38, %v4063_v45  ;;  %v10801_v1 = vpop.f32.mrb[11].mxu0 }
 0x7fa   : > { %10821 = vmatmul.mubr.msk.bf16.gmra.mrb[124].mxu1 %vm4100_vm6, %v4095_v26  ;;  %11067 = vmatmul.mubr.msk.bf16.gmra.mrb[116].mxu0 %vm4005_vm4, %v12313_v51  ;;  %v12323_v26 = vld [vmem:[#allocation2 + $0x130] sm:$0xff]  }
 0x7fb   : > { %10824 = vmatprep.mubr.msk.bf16.mxu1 %vm12529_vm0, %v12528_v0  ;;  %11070 = vmatprep.mubr.msk.bf16.mxu0 %vm12529_vm0, %v12528_v0 }
 0x7fd   : > { %v4071_v53 = vpop.f32.mrb[12].mxu0 }
 0x7fe   : > { %v10804_v36 = vpop.f32.mrb[13].mxu0 }
 0x7ff   : > { %v4074_v30 = vpop.f32.mrb[14].mxu0 }
 0x800   : > { %v4096_v2 = vpack.c.bf16 %v4074_v30, %v4071_v53  ;;  %v10805_v28 = vpop.f32.mrb[15].mxu0  ;;  %v12324_v30 = vld [vmem:[#allocation2 + $0x138] sm:$0xff]  }
 0x802   : > { %10825 = vmatmul.mubr.msk.bf16.gmra.mrb[128].mxu1 %vm4100_vm6, %v4096_v2  ;;  %11071 = vmatmul.mubr.msk.bf16.gmra.mrb[120].mxu0 %vm4005_vm4, %v12314_v33 }
 0x803   : > { %10828 = vmatprep.mubr.msk.bf16.mxu1 %vm12529_vm0, %v12528_v0  ;;  %11106 = vmatprep.mubr.msk.bf16.mxu0 %vm12529_vm0, %v12528_v0 }
 0x805   : > { %v4079_v46 = vpop.f32.mrb[16].mxu0 }
 0x806   : > { %v10808_v12 = vpop.f32.mrb[17].mxu0 }
 0x807   : > { %v4082_v29 = vpop.f32.mrb[18].mxu0 }
 0x808   : > { %v4097_v24 = vpack.c.bf16 %v4082_v29, %v4079_v46  ;;  %v10809_v61 = vpop.f32.mrb[19].mxu0  ;;  %v12325_v29 = vld [vmem:[#allocation2 + $0x140] sm:$0xff]  }
 0x80a   : > { %10829 = vmatmul.mubr.msk.bf16.gmra.mrb[132].mxu1 %vm4100_vm6, %v4097_v24  ;;  %11107 = vmatmul.mubr.msk.bf16.vlgmr.msra.gmra.mrb[124].mxu0 %vm4005_vm4, %v12315_v6 }
 0x80b   : > { %11149 = vmatpush3.bf16.msra.mxu0 %v14120_v63  ;;  %10832 = vmatprep.mubr.msk.bf16.mxu1 %vm12529_vm0, %v12528_v0 }
 0x80c   : > { %11150 = vmatprep.subr.bf16.mxu0 %v12528_v0  ;;  %11110 = vmatprep.mubr.msk.bf16.mxu0 %vm12529_vm0, %v12528_v0 }
 0x80d   : > { %v4087_v23 = vpop.f32.mrb[20].mxu0 }
 0x80e   : > { %v10812_v50 = vpop.f32.mrb[21].mxu0 }
 0x80f   : > { %11151 = vmatpush3.bf16.msra.mxu0 %v14124_v25  ;;  %v4090_v34 = vpop.f32.mrb[22].mxu0 }
 0x810   : > { %v4098_v13 = vpack.c.bf16 %v4090_v34, %v4087_v23  ;;  %v10813_v20 = vpop.f32.mrb[23].mxu0  ;;  %11152 = vmatprep.subr.bf16.mxu0 %v12528_v0  ;;  %v12326_v34 = vld [vmem:[#allocation2 + $0x148] sm:$0xff]  }
 0x812   : > { %10833 = vmatmul.mubr.msk.bf16.gmra.mrb[136].mxu1 %vm4100_vm6, %v4098_v13  ;;  %11111 = vmatmul.mubr.msk.bf16.gmra.mrb[128].mxu0 %vm4005_vm4, %v12316_v18 }
 0x813   : > { %11153 = vmatpush3.bf16.msra.mxu0 %v14128_v48  ;;  %10868 = vmatprep.mubr.msk.bf16.mxu1 %vm12529_vm0, %v12528_v0 }
 0x814   : > { %11154 = vmatprep.subr.bf16.mxu0 %v12528_v0  ;;  %11114 = vmatprep.mubr.msk.bf16.mxu0 %vm12529_vm0, %v12528_v0 }
 0x815   : > { %v4288_v32 = vpop.f32.mrb[24].mxu0 }
 0x816   : > { %v10848_v14 = vpop.f32.mrb[25].mxu0 }
 0x817   : > { %11155 = vmatpush3.bf16.msra.mxu0 %v14132_v11  ;;  %v4291_v21 = vpop.f32.mrb[26].mxu0  ;;  %v9264_v14 = vld [vmem:[%s14998_s5 + $0x8] sm:$0x3] }
 0x818   : > { %v4327_v40 = vpack.c.bf16 %v4291_v21, %v4288_v32  ;;  %v10849_v47 = vpop.f32.mrb[27].mxu0  ;;  %11156 = vmatprep.subr.bf16.mxu0 %v12528_v0  ;;  %v12327_v21 = vld [vmem:[#allocation2 + $0x150] sm:$0xff]  }
 0x81a   : > { %10869 = vmatmul.mubr.msk.bf16.vlgmr.msra.gmra.mrb[120].mxu1 %vm4100_vm6, %v4327_v40  ;;  %11115 = vmatmul.mubr.msk.bf16.gmra.mrb[132].mxu0 %vm4005_vm4, %v12317_v22 }
 0x81b   : > { %11157 = vmatpush3.bf16.msra.mxu0 %v14136_v44  ;;  %10919 = vmatpush3.bf16.msra.mxu1 %v4582_v17 }
 0x81c   : > { %10872 = vmatprep.mubr.msk.bf16.mxu1 %vm12529_vm0, %v12528_v0  ;;  %11118 = vmatprep.mubr.msk.bf16.mxu0 %vm12529_vm0, %v12528_v0 }
 0x81d   : > { %v4296_v62 = vpop.f32.mrb[28].mxu0  ;;  %11200 = vmatprep.subr.bf16.mxu0 %v12528_v0  ;;  %10970 = vmatprep.subr.bf16.mxu1 %v12528_v0 }
 0x81e   : > { %v10852_v42 = vpop.f32.mrb[29].mxu0 }
 0x81f   : > { %v4299_v52 = vpop.f32.mrb[30].mxu0 }
 0x820   : > { %v4328_v49 = vpack.c.bf16 %v4299_v52, %v4296_v62  ;;  %v10853_v58 = vpop.f32.mrb[31].mxu0  ;;  %v5046_v62 = vsel %vm4116_vm5, %v9264_v14, 0  ;;  %v12328_v52 = vld [vmem:[#allocation2 + $0x158] sm:$0xff]  }
 0x822   : > { %10873 = vmatmul.mubr.msk.bf16.gmra.mrb[124].mxu1 %vm4100_vm6, %v4328_v49  ;;  %11119 = vmatmul.mubr.msk.bf16.gmra.mrb[136].mxu0 %vm4005_vm4, %v12318_v3 }
 0x823   : > { %10876 = vmatprep.mubr.msk.bf16.mxu1 %vm12529_vm0, %v12528_v0  ;;  %11122 = vmatprep.mubr.msk.bf16.mxu0 %vm12529_vm0, %v12528_v0 }
 0x825   : > { %v4304_v60 = vpop.f32.mrb[32].mxu0 }
 0x826   : > { %v10856_v56 = vpop.f32.mrb[33].mxu0 }
 0x827   : > { %v4307_v31 = vpop.f32.mrb[34].mxu0 }
 0x828   : > { %v4329_v41 = vpack.c.bf16 %v4307_v31, %v4304_v60  ;;  %v10857_v55 = vpop.f32.mrb[35].mxu0  ;;  %v12329_v31 = vld [vmem:[#allocation2 + $0x160] sm:$0xff]  }
 0x82a   : > { %10877 = vmatmul.mubr.msk.bf16.gmra.mrb[128].mxu1 %vm4100_vm6, %v4329_v41  ;;  %11123 = vmatmul.mubr.msk.bf16.gmra.mrb[140].mxu0 %vm4005_vm4, %v12319_v19 }
 0x82b   : > { %10880 = vmatprep.mubr.msk.bf16.mxu1 %vm12529_vm0, %v12528_v0  ;;  %11158 = vmatprep.mubr.msk.bf16.mxu0 %vm12529_vm0, %v12528_v0 }
 0x82d   : > { %v4312_v4 = vpop.f32.mrb[36].mxu0 }
 0x82e   : > { %v10860_v5 = vpop.f32.mrb[37].mxu0 }
 0x82f   : > { %v4315_v54 = vpop.f32.mrb[38].mxu0 }
 0x830   : > { %v4330_v57 = vpack.c.bf16 %v4315_v54, %v4312_v4  ;;  %v10861_v8 = vpop.f32.mrb[39].mxu0 }
 0x832   : > { %10881 = vmatmul.mubr.msk.bf16.gmra.mrb[132].mxu1 %vm4100_vm6, %v4330_v57  ;;  %11159 = vmatmul.mubr.msk.bf16.vlgmr.msra.gmra.mrb[144].mxu0 %vm4005_vm4, %v12320_v10 }
 0x833   : > { %11201 = vmatpush3.bf16.msra.mxu0 %v14120_v63  ;;  %10884 = vmatprep.mubr.msk.bf16.mxu1 %vm12529_vm0, %v12528_v0 }
 0x834   : > { %11202 = vmatprep.subr.bf16.mxu0 %v12528_v0  ;;  %11162 = vmatprep.mubr.msk.bf16.mxu0 %vm12529_vm0, %v12528_v0 }
 0x835   : > { %v4320_v9 = vpop.f32.mrb[40].mxu0 }
 0x836   : > { %v10864_v59 = vpop.f32.mrb[41].mxu0 }
 0x837   : > { %11203 = vmatpush3.bf16.msra.mxu0 %v14124_v25  ;;  %v4323_v7 = vpop.f32.mrb[42].mxu0  ;;  %v9248_v25 = vld [vmem:[%s14998_s5 + $0x6] sm:$0x3] }
 0x838   : > { %v4331_v15 = vpack.c.bf16 %v4323_v7, %v4320_v9  ;;  %v10865_v16 = vpop.f32.mrb[43].mxu0  ;;  %11204 = vmatprep.subr.bf16.mxu0 %v12528_v0  ;;  %v4814_v51 = vsel %vm4116_vm5, %v9248_v25, 0 }
 0x83a   : > { %10885 = vmatmul.mubr.msk.bf16.gmra.mrb[136].mxu1 %vm4100_vm6, %v4331_v15  ;;  %11163 = vmatmul.mubr.msk.bf16.gmra.mrb[148].mxu0 %vm4005_vm4, %v12321_v27 }
 0x83b   : > { %11205 = vmatpush3.bf16.msra.mxu0 %v14128_v48  ;;  %10920 = vmatprep.mubr.msk.bf16.mxu1 %vm12529_vm0, %v12528_v0 }
 0x83c   : > { %11206 = vmatprep.subr.bf16.mxu0 %v12528_v0  ;;  %11166 = vmatprep.mubr.msk.bf16.mxu0 %vm12529_vm0, %v12528_v0 }
 0x83d   : > { %v4520_v63 = vpop.f32.mrb[44].mxu0 }
 0x83e   : > { %v10900_v35 = vpop.f32.mrb[45].mxu0 }
 0x83f   : > { %11207 = vmatpush3.bf16.msra.mxu0 %v14132_v11  ;;  %v4523_v45 = vpop.f32.mrb[46].mxu0 }
 0x840   : > { %v4559_v43 = vpack.c.bf16 %v4523_v45, %v4520_v63  ;;  %v10901_v48 = vpop.f32.mrb[47].mxu0  ;;  %11208 = vmatprep.subr.bf16.mxu0 %v12528_v0  ;;  %v9280_v63 = vld [vmem:[%s14998_s5 + $0xa] sm:$0x3] }
 0x842   : > { %10921 = vmatmul.mubr.msk.bf16.vlgmr.msra.gmra.mrb[120].mxu1 %vm4100_vm6, %v4559_v43  ;;  %11167 = vmatmul.mubr.msk.bf16.gmra.mrb[152].mxu0 %vm4005_vm4, %v12322_v37  ;;  %v5278_v43 = vsel %vm4116_vm5, %v9280_v63, 0 }
 0x843   : > { %11209 = vmatpush3.bf16.msra.mxu0 %v14136_v44  ;;  %10971 = vmatpush3.bf16.msra.mxu1 %v4814_v51 }
 0x844   : > { %10924 = vmatprep.mubr.msk.bf16.mxu1 %vm12529_vm0, %v12528_v0  ;;  %11170 = vmatprep.mubr.msk.bf16.mxu0 %vm12529_vm0, %v12528_v0 }
 0x845   : > { %v4528_v11 = vpop.f32.mrb[48].mxu0  ;;  %11022 = vmatprep.subr.bf16.mxu1 %v12528_v0 }
 0x846   : > { %v10904_v38 = vpop.f32.mrb[49].mxu0 }
 0x847   : > { %v4531_v1 = vpop.f32.mrb[50].mxu0 }
 0x848   : > { %v4560_v53 = vpack.c.bf16 %v4531_v1, %v4528_v11  ;;  %v10905_v36 = vpop.f32.mrb[51].mxu0 }
 0x84a   : > { %10925 = vmatmul.mubr.msk.bf16.gmra.mrb[124].mxu1 %vm4100_vm6, %v4560_v53  ;;  %11171 = vmatmul.mubr.msk.bf16.gmra.mrb[156].mxu0 %vm4005_vm4, %v12323_v26 }
 0x84b   : > { %10928 = vmatprep.mubr.msk.bf16.mxu1 %vm12529_vm0, %v12528_v0  ;;  %11174 = vmatprep.mubr.msk.bf16.mxu0 %vm12529_vm0, %v12528_v0 }
 0x84d   : > { %v4536_v44 = vpop.f32.mrb[52].mxu0 }
 0x84e   : > { %v10908_v33 = vpop.f32.mrb[53].mxu0 }
 0x84f   : > { %v4539_v2 = vpop.f32.mrb[54].mxu0 }
 0x850   : > { %v4561_v28 = vpack.c.bf16 %v4539_v2, %v4536_v44  ;;  %v10909_v46 = vpop.f32.mrb[55].mxu0 }
 0x852   : > { %10929 = vmatmul.mubr.msk.bf16.gmra.mrb[128].mxu1 %vm4100_vm6, %v4561_v28  ;;  %11175 = vmatmul.mubr.msk.bf16.gmra.mrb[160].mxu0 %vm4005_vm4, %v12324_v30 }
 0x853   : > { %10932 = vmatprep.mubr.msk.bf16.mxu1 %vm12529_vm0, %v12528_v0  ;;  %11210 = vmatprep.mubr.msk.bf16.mxu0 %vm12529_vm0, %v12528_v0 }
 0x855   : > { %v4544_v12 = vpop.f32.mrb[56].mxu0 }
 0x856   : > { %v10912_v6 = vpop.f32.mrb[57].mxu0 }
 0x857   : > { %v4547_v24 = vpop.f32.mrb[58].mxu0 }
 0x858   : > { %v4562_v61 = vpack.c.bf16 %v4547_v24, %v4544_v12  ;;  %v10913_v23 = vpop.f32.mrb[59].mxu0 }
 0x85a   : > { %10933 = vmatmul.mubr.msk.bf16.gmra.mrb[132].mxu1 %vm4100_vm6, %v4562_v61  ;;  %11211 = vmatmul.mubr.msk.bf16.vlgmr.msra.gmra.mrb[164].mxu0 %vm4005_vm4, %v12325_v29 }
 0x85b   : > { %10936 = vmatprep.mubr.msk.bf16.mxu1 %vm12529_vm0, %v12528_v0  ;;  %11214 = vmatprep.mubr.msk.bf16.mxu0 %vm12529_vm0, %v12528_v0 }
 0x85d   : > { %v4552_v50 = vpop.f32.mrb[60].mxu0 }
 0x85e   : > { %v10916_v18 = vpop.f32.mrb[61].mxu0 }
 0x85f   : > { %v4555_v13 = vpop.f32.mrb[62].mxu0  ;;  %v9296_v18 = vld [vmem:[%s14998_s5 + $0xc] sm:$0x3] }
 0x860   : > { %v4563_v20 = vpack.c.bf16 %v4555_v13, %v4552_v50  ;;  %v10917_v32 = vpop.f32.mrb[63].mxu0 }
 0x862   : > { %10937 = vmatmul.mubr.msk.bf16.gmra.mrb[136].mxu1 %vm4100_vm6, %v4563_v20  ;;  %11215 = vmatmul.mubr.msk.bf16.gmra.mrb[168].mxu0 %vm4005_vm4, %v12326_v34 }
 0x863   : > { %10972 = vmatprep.mubr.msk.bf16.mxu1 %vm12529_vm0, %v12528_v0  ;;  %11218 = vmatprep.mubr.msk.bf16.mxu0 %vm12529_vm0, %v12528_v0 }
 0x865   : > { %v4752_v39 = vpop.f32.mrb[64].mxu0 }
 0x866   : > { %v10952_v22 = vpop.f32.mrb[65].mxu0 }
 0x867   : > { %v4755_v40 = vpop.f32.mrb[66].mxu0 }
 0x868   : > { %v4791_v47 = vpack.c.bf16 %v4755_v40, %v4752_v39  ;;  %v10953_v17 = vpop.f32.mrb[67].mxu0  ;;  %v5510_v39 = vsel %vm4116_vm5, %v9296_v18, 0 }
 0x86a   : > { %10973 = vmatmul.mubr.msk.bf16.vlgmr.msra.gmra.mrb[120].mxu1 %vm4100_vm6, %v4791_v47  ;;  %11219 = vmatmul.mubr.msk.bf16.gmra.mrb[172].mxu0 %vm4005_vm4, %v12327_v21 }
 0x86b   : > { %11023 = vmatpush3.bf16.msra.mxu1 %v5046_v62  ;;  %10976 = vmatprep.mubr.msk.bf16.mxu1 %vm12529_vm0, %v12528_v0 }
 0x86c   : > { %11222 = vmatprep.mubr.msk.bf16.mxu0 %vm12529_vm0, %v12528_v0  ;;  %11074 = vmatprep.subr.bf16.mxu1 %v12528_v0 }
 0x86d   : > { %v4760_v42 = vpop.f32.mrb[68].mxu0 }
 0x86e   : > { %v10956_v3 = vpop.f32.mrb[69].mxu0 }
 0x86f   : > { %v4763_v49 = vpop.f32.mrb[70].mxu0 }
 0x870   : > { %v4792_v58 = vpack.c.bf16 %v4763_v49, %v4760_v42  ;;  %v10957_v60 = vpop.f32.mrb[71].mxu0 }
 0x872   : > { %10977 = vmatmul.mubr.msk.bf16.gmra.mrb[124].mxu1 %vm4100_vm6, %v4792_v58  ;;  %11223 = vmatmul.mubr.msk.bf16.gmra.mrb[176].mxu0 %vm4005_vm4, %v12328_v52 }
 0x873   : > { %10980 = vmatprep.mubr.msk.bf16.mxu1 %vm12529_vm0, %v12528_v0  ;;  %11226 = vmatprep.mubr.msk.bf16.mxu0 %vm12529_vm0, %v12528_v0 }
 0x875   : > { %v4768_v56 = vpop.f32.mrb[72].mxu0 }
 0x876   : > { %v10960_v19 = vpop.f32.mrb[73].mxu0 }
 0x877   : > { %v4771_v41 = vpop.f32.mrb[74].mxu0 }
 0x878   : > { %v4793_v55 = vpack.c.bf16 %v4771_v41, %v4768_v56  ;;  %v10961_v4 = vpop.f32.mrb[75].mxu0 }
 0x87a   : > { %10981 = vmatmul.mubr.msk.bf16.gmra.mrb[128].mxu1 %vm4100_vm6, %v4793_v55  ;;  %11227 = vmatmul.mubr.msk.bf16.gmra.mrb[180].mxu0 %vm4005_vm4, %v12329_v31 }
 0x87b   : > { %10984 = vmatprep.mubr.msk.bf16.mxu1 %vm12529_vm0, %v12528_v0 }
 0x87d   : > { %v4776_v5 = vpop.f32.mrb[76].mxu0 }
 0x87e   : > { %v10964_v10 = vpop.f32.mrb[77].mxu0 }
 0x87f   : > { %v4779_v54 = vpop.f32.mrb[78].mxu0 }
 0x880   : > { %v4794_v57 = vpack.c.bf16 %v4779_v54, %v4776_v5  ;;  %v10965_v8 = vpop.f32.mrb[79].mxu0  ;;  %v9312_v54 = vld [vmem:[%s14998_s5 + $0xe] sm:$0x3] }
 0x882   : > { %10985 = vmatmul.mubr.msk.bf16.gmra.mrb[132].mxu1 %vm4100_vm6, %v4794_v57 }
 0x883   : > { %10988 = vmatprep.mubr.msk.bf16.mxu1 %vm12529_vm0, %v12528_v0 }
 0x885   : > { %v4784_v9 = vpop.f32.mrb[80].mxu0 }
 0x886   : > { %v10968_v59 = vpop.f32.mrb[81].mxu0 }
 0x887   : > { %v4787_v27 = vpop.f32.mrb[82].mxu0 }
 0x888   : > { %v4795_v7 = vpack.c.bf16 %v4787_v27, %v4784_v9  ;;  %v10969_v15 = vpop.f32.mrb[83].mxu0  ;;  %v5742_v27 = vsel %vm4116_vm5, %v9312_v54, 0 }
 0x88a   : > { %10989 = vmatmul.mubr.msk.bf16.gmra.mrb[136].mxu1 %vm4100_vm6, %v4795_v7 }
 0x88b   : > { %11024 = vmatprep.mubr.msk.bf16.mxu1 %vm12529_vm0, %v12528_v0 }
 0x88d   : > { %v4984_v16 = vpop.f32.mrb[84].mxu0 }
 0x88e   : > { %v11004_v25 = vpop.f32.mrb[85].mxu0 }
 0x88f   : > { %v4987_v35 = vpop.f32.mrb[86].mxu0 }
 0x890   : > { %v5023_v37 = vpack.c.bf16 %v4987_v35, %v4984_v16  ;;  %v11005_v45 = vpop.f32.mrb[87].mxu0 }
 0x892   : > { %11025 = vmatmul.mubr.msk.bf16.vlgmr.msra.gmra.mrb[120].mxu1 %vm4100_vm6, %v5023_v37 }
 0x893   : > { %11075 = vmatpush3.bf16.msra.mxu1 %v5278_v43  ;;  %11028 = vmatprep.mubr.msk.bf16.mxu1 %vm12529_vm0, %v12528_v0 }
 0x894   : > { %11126 = vmatprep.subr.bf16.mxu1 %v12528_v0 }
 0x895   : > { %v4992_v48 = vpop.f32.mrb[88].mxu0 }
 0x896   : > { %v11008_v51 = vpop.f32.mrb[89].mxu0 }
 0x897   : > { %v4995_v11 = vpop.f32.mrb[90].mxu0 }
 0x898   : > { %v5024_v38 = vpack.c.bf16 %v4995_v11, %v4992_v48  ;;  %v11009_v26 = vpop.f32.mrb[91].mxu0 }
 0x89a   : > { %11029 = vmatmul.mubr.msk.bf16.gmra.mrb[124].mxu1 %vm4100_vm6, %v5024_v38 }
 0x89b   : > { %11032 = vmatprep.mubr.msk.bf16.mxu1 %vm12529_vm0, %v12528_v0 }
 0x89d   : > { %v5000_v1 = vpop.f32.mrb[92].mxu0 }
 0x89e   : > { %v11012_v53 = vpop.f32.mrb[93].mxu0 }
 0x89f   : > { %v5003_v36 = vpop.f32.mrb[94].mxu0 }
 0x8a0   : > { %v5025_v44 = vpack.c.bf16 %v5003_v36, %v5000_v1  ;;  %v11013_v33 = vpop.f32.mrb[95].mxu0 }
 0x8a2   : > { %11033 = vmatmul.mubr.msk.bf16.gmra.mrb[128].mxu1 %vm4100_vm6, %v5025_v44 }
 0x8a3   : > { %11036 = vmatprep.mubr.msk.bf16.mxu1 %vm12529_vm0, %v12528_v0 }
 0x8a5   : > { %v5008_v30 = vpop.f32.mrb[96].mxu0 }
 0x8a6   : > { %v11016_v2 = vpop.f32.mrb[97].mxu0 }
 0x8a7   : > { %v5011_v28 = vpop.f32.mrb[98].mxu0 }
 0x8a8   : > { %v5026_v46 = vpack.c.bf16 %v5011_v28, %v5008_v30  ;;  %v11017_v12 = vpop.f32.mrb[99].mxu0  ;;  %v9328_v28 = vld [vmem:[%s14998_s5 + $0x10] sm:$0x3] }
 0x8aa   : > { %11037 = vmatmul.mubr.msk.bf16.gmra.mrb[132].mxu1 %vm4100_vm6, %v5026_v46 }
 0x8ab   : > { %11040 = vmatprep.mubr.msk.bf16.mxu1 %vm12529_vm0, %v12528_v0 }
 0x8ad   : > { %v5016_v6 = vpop.f32.mrb[100].mxu0 }
 0x8ae   : > { %v11020_v29 = vpop.f32.mrb[101].mxu0 }
 0x8af   : > { %v5019_v24 = vpop.f32.mrb[102].mxu0 }
 0x8b0   : > { %v5027_v61 = vpack.c.bf16 %v5019_v24, %v5016_v6  ;;  %v11021_v23 = vpop.f32.mrb[103].mxu0  ;;  %v5974_v24 = vsel %vm4116_vm5, %v9328_v28, 0 }
 0x8b2   : > { %11041 = vmatmul.mubr.msk.bf16.gmra.mrb[136].mxu1 %vm4100_vm6, %v5027_v61 }
 0x8b3   : > { %11076 = vmatprep.mubr.msk.bf16.mxu1 %vm12529_vm0, %v12528_v0 }
 0x8b5   : > { %v5216_v50 = vpop.f32.mrb[104].mxu0 }
 0x8b6   : > { %v11056_v34 = vpop.f32.mrb[105].mxu0 }
 0x8b7   : > { %v5219_v13 = vpop.f32.mrb[106].mxu0 }
 0x8b8   : > { %v5255_v20 = vpack.c.bf16 %v5219_v13, %v5216_v50  ;;  %v11057_v32 = vpop.f32.mrb[107].mxu0 }
 0x8ba   : > { %11077 = vmatmul.mubr.msk.bf16.vlgmr.msra.gmra.mrb[120].mxu1 %vm4100_vm6, %v5255_v20 }
 0x8bb   : > { %11127 = vmatpush3.bf16.msra.mxu1 %v5510_v39  ;;  %11080 = vmatprep.mubr.msk.bf16.mxu1 %vm12529_vm0, %v12528_v0 }
 0x8bc   : > { %11178 = vmatprep.subr.bf16.mxu1 %v12528_v0 }
 0x8bd   : > { %v5224_v14 = vpop.f32.mrb[108].mxu0 }
 0x8be   : > { %v11060_v22 = vpop.f32.mrb[109].mxu0 }
 0x8bf   : > { %v5227_v21 = vpop.f32.mrb[110].mxu0 }
 0x8c0   : > { %v5256_v40 = vpack.c.bf16 %v5227_v21, %v5224_v14  ;;  %v11061_v47 = vpop.f32.mrb[111].mxu0 }
 0x8c2   : > { %11081 = vmatmul.mubr.msk.bf16.gmra.mrb[124].mxu1 %vm4100_vm6, %v5256_v40 }
 0x8c3   : > { %11084 = vmatprep.mubr.msk.bf16.mxu1 %vm12529_vm0, %v12528_v0 }
 0x8c5   : > { %v5232_v17 = vpop.f32.mrb[112].mxu0 }
 0x8c6   : > { %v11064_v62 = vpop.f32.mrb[113].mxu0 }
 0x8c7   : > { %v5235_v42 = vpop.f32.mrb[114].mxu0 }
 0x8c8   : > { %v5257_v3 = vpack.c.bf16 %v5235_v42, %v5232_v17  ;;  %v11065_v52 = vpop.f32.mrb[115].mxu0 }
 0x8ca   : > { %11085 = vmatmul.mubr.msk.bf16.gmra.mrb[128].mxu1 %vm4100_vm6, %v5257_v3 }
 0x8cb   : > { %11088 = vmatprep.mubr.msk.bf16.mxu1 %vm12529_vm0, %v12528_v0 }
 0x8cd   : > { %v5240_v49 = vpop.f32.mrb[116].mxu0 }
 0x8ce   : > { %v11068_v58 = vpop.f32.mrb[117].mxu0 }
 0x8cf   : > { %v5243_v60 = vpop.f32.mrb[118].mxu0 }
 0x8d0   : > { %v5258_v56 = vpack.c.bf16 %v5243_v60, %v5240_v49  ;;  %v11069_v19 = vpop.f32.mrb[119].mxu0 }
 0x8d2   : > { %11089 = vmatmul.mubr.msk.bf16.gmra.mrb[132].mxu1 %vm4100_vm6, %v5258_v56 }
 0x8d3   : > { %11092 = vmatprep.mubr.msk.bf16.mxu1 %vm12529_vm0, %v12528_v0 }
 0x8d5   : > { %v5248_v31 = vpop.f32.mrb[120].mxu0 }
 0x8d6   : > { %v11072_v41 = vpop.f32.mrb[121].mxu0 }
 0x8d7   : > { %v5251_v55 = vpop.f32.mrb[122].mxu0 }
 0x8d8   : > { %v5259_v4 = vpack.c.bf16 %v5251_v55, %v5248_v31  ;;  %v11073_v5 = vpop.f32.mrb[123].mxu0 }
 0x8da   : > { %11093 = vmatmul.mubr.msk.bf16.gmra.mrb[136].mxu1 %vm4100_vm6, %v5259_v4 }
 0x8db   : > { %11128 = vmatprep.mubr.msk.bf16.mxu1 %vm12529_vm0, %v12528_v0 }
 0x8dd   : > { %v5448_v10 = vpop.f32.mrb[124].mxu0 }
 0x8de   : > { %v11108_v57 = vpop.f32.mrb[125].mxu0 }
 0x8df   : > { %v5451_v8 = vpop.f32.mrb[126].mxu0 }
 0x8e0   : > { %v5487_v9 = vpack.c.bf16 %v5451_v8, %v5448_v10  ;;  %v11109_v59 = vpop.f32.mrb[127].mxu0 }
 0x8e2   : > { %11129 = vmatmul.mubr.msk.bf16.vlgmr.msra.gmra.mrb[120].mxu1 %vm4100_vm6, %v5487_v9 }
 0x8e3   : > { %11179 = vmatpush3.bf16.msra.mxu1 %v5742_v27  ;;  %11132 = vmatprep.mubr.msk.bf16.mxu1 %vm12529_vm0, %v12528_v0 }
 0x8e4   : > { %11230 = vmatprep.subr.bf16.mxu1 %v12528_v0 }
 0x8e5   : > { %v5456_v7 = vpop.f32.mrb[128].mxu0 }
 0x8e6   : > { %v11112_v15 = vpop.f32.mrb[129].mxu0 }
 0x8e7   : > { %v5459_v16 = vpop.f32.mrb[130].mxu0 }
 0x8e8   : > { %v5488_v63 = vpack.c.bf16 %v5459_v16, %v5456_v7  ;;  %v11113_v25 = vpop.f32.mrb[131].mxu0 }
 0x8ea   : > { %11133 = vmatmul.mubr.msk.bf16.gmra.mrb[124].mxu1 %vm4100_vm6, %v5488_v63 }
 0x8eb   : > { %11136 = vmatprep.mubr.msk.bf16.mxu1 %vm12529_vm0, %v12528_v0 }
 0x8ed   : > { %v5464_v35 = vpop.f32.mrb[132].mxu0 }
 0x8ee   : > { %v11116_v37 = vpop.f32.mrb[133].mxu0 }
 0x8ef   : > { %v5467_v45 = vpop.f32.mrb[134].mxu0 }
 0x8f0   : > { %v5489_v43 = vpack.c.bf16 %v5467_v45, %v5464_v35  ;;  %v11117_v48 = vpop.f32.mrb[135].mxu0 }
 0x8f1   : > { %v12330_v48 = vld [vmem:[#allocation5] sm:$0xff]  }
 0x8f2   : > { %11137 = vmatmul.mubr.msk.bf16.gmra.mrb[128].mxu1 %vm4100_vm6, %v5489_v43  ;;  %11262 = vmatprep.mubr.msk.bf16.mxu0 %vm4005_vm4, %v12330_v48 }
 0x8f3   : > { %11140 = vmatprep.mubr.msk.bf16.mxu1 %vm12529_vm0, %v12528_v0 }
 0x8f5   : > { %v5472_v51 = vpop.f32.mrb[136].mxu0 }
 0x8f6   : > { %v11120_v11 = vpop.f32.mrb[137].mxu0 }
 0x8f7   : > { %v5475_v38 = vpop.f32.mrb[138].mxu0  ;;  %v9190_v11 = vld [vmem:[%s14999_s6] ss:$0 sm:$0xff] }
 0x8f8   : > { %v5490_v26 = vpack.c.bf16 %v5475_v38, %v5472_v51  ;;  %v11121_v1 = vpop.f32.mrb[139].mxu0  ;;  %v12332_v51 = vld [vmem:[#allocation5 + $0xc] sm:$0xff]  }
 0x8fa   : > { %11141 = vmatmul.mubr.msk.bf16.gmra.mrb[132].mxu1 %vm4100_vm6, %v5490_v26 }
 0x8fb   : > { %11144 = vmatprep.mubr.msk.bf16.mxu1 %vm12529_vm0, %v12528_v0 }
 0x8fd   : > { %v5480_v53 = vpop.f32.mrb[140].mxu0 }
 0x8fe   : > { %v11124_v36 = vpop.f32.mrb[141].mxu0 }
 0x8ff   : > { %v5483_v44 = vpop.f32.mrb[142].mxu0 }
 0x900   : > { %v5491_v33 = vpack.c.bf16 %v5483_v44, %v5480_v53  ;;  %v11125_v30 = vpop.f32.mrb[143].mxu0 }
 0x902   : > { %11145 = vmatmul.mubr.msk.bf16.gmra.mrb[136].mxu1 %vm4100_vm6, %v5491_v33 }
 0x903   : > { %11180 = vmatprep.mubr.msk.bf16.mxu1 %vm12529_vm0, %v12528_v0 }
 0x905   : > { %v5680_v2 = vpop.f32.mrb[144].mxu0 }
 0x906   : > { %v11160_v46 = vpop.f32.mrb[145].mxu0 }
 0x907   : > { %v5683_v12 = vpop.f32.mrb[146].mxu0 }
 0x908   : > { %v5719_v6 = vpack.c.bf16 %v5683_v12, %v5680_v2  ;;  %v11161_v29 = vpop.f32.mrb[147].mxu0 }
 0x90a   : > { %11181 = vmatmul.mubr.msk.bf16.vlgmr.msra.gmra.mrb[120].mxu1 %vm4100_vm6, %v5719_v6 }
 0x90b   : > { %11231 = vmatpush3.bf16.msra.mxu1 %v5974_v24  ;;  %11184 = vmatprep.mubr.msk.bf16.mxu1 %vm12529_vm0, %v12528_v0 }
 0x90d   : > { %v5688_v61 = vpop.f32.mrb[148].mxu0 }
 0x90e   : > { %v11164_v23 = vpop.f32.mrb[149].mxu0 }
 0x90f   : > { %v5691_v50 = vpop.f32.mrb[150].mxu0 }
 0x910   : > { %v5720_v18 = vpack.c.bf16 %v5691_v50, %v5688_v61  ;;  %v11165_v34 = vpop.f32.mrb[151].mxu0 }
 0x912   : > { %11185 = vmatmul.mubr.msk.bf16.gmra.mrb[124].mxu1 %vm4100_vm6, %v5720_v18 }
 0x913   : > { %11188 = vmatprep.mubr.msk.bf16.mxu1 %vm12529_vm0, %v12528_v0 }
 0x915   : > { %v5696_v13 = vpop.f32.mrb[152].mxu0 }
 0x916   : > { %v11168_v20 = vpop.f32.mrb[153].mxu0 }
 0x917   : > { %v5699_v32 = vpop.f32.mrb[154].mxu0 }
 0x918   : > { %v5721_v39 = vpack.c.bf16 %v5699_v32, %v5696_v13  ;;  %v11169_v14 = vpop.f32.mrb[155].mxu0 }
 0x91a   : > { %11189 = vmatmul.mubr.msk.bf16.gmra.mrb[128].mxu1 %vm4100_vm6, %v5721_v39 }
 0x91b   : > { %11192 = vmatprep.mubr.msk.bf16.mxu1 %vm12529_vm0, %v12528_v0 }
 0x91d   : > { %v5704_v22 = vpop.f32.mrb[156].mxu0 }
 0x91e   : > { %v11172_v21 = vpop.f32.mrb[157].mxu0 }
 0x91f   : > { %v5707_v40 = vpop.f32.mrb[158].mxu0 }
 0x920   : > { %v5722_v47 = vpack.c.bf16 %v5707_v40, %v5704_v22  ;;  %v11173_v17 = vpop.f32.mrb[159].mxu0 }
 0x922   : > { %11193 = vmatmul.mubr.msk.bf16.gmra.mrb[132].mxu1 %vm4100_vm6, %v5722_v47 }
 0x923   : > { %11196 = vmatprep.mubr.msk.bf16.mxu1 %vm12529_vm0, %v12528_v0 }
 0x925   : > { %v5712_v62 = vpop.f32.mrb[160].mxu0 }
 0x926   : > { %v11176_v42 = vpop.f32.mrb[161].mxu0 }
 0x927   : > { %v5715_v3 = vpop.f32.mrb[162].mxu0 }
 0x928   : > { %v5723_v52 = vpack.c.bf16 %v5715_v3, %v5712_v62  ;;  %v11177_v49 = vpop.f32.mrb[163].mxu0 }
 0x92a   : > { %11197 = vmatmul.mubr.msk.bf16.gmra.mrb[136].mxu1 %vm4100_vm6, %v5723_v52 }
 0x92b   : > { %11232 = vmatprep.mubr.msk.bf16.mxu1 %vm12529_vm0, %v12528_v0 }
 0x92d   : > { %v5912_v58 = vpop.f32.mrb[164].mxu0 }
 0x92e   : > { %v11212_v60 = vpop.f32.mrb[165].mxu0 }
 0x92f   : > { %v5915_v56 = vpop.f32.mrb[166].mxu0 }
 0x930   : > { %v5951_v19 = vpack.c.bf16 %v5915_v56, %v5912_v58  ;;  %v11213_v31 = vpop.f32.mrb[167].mxu0 }
 0x932   : > { %11233 = vmatmul.mubr.msk.bf16.vlgmr.msra.gmra.mrb[120].mxu1 %vm4100_vm6, %v5951_v19 }
 0x933   : > { %11236 = vmatprep.mubr.msk.bf16.mxu1 %vm12529_vm0, %v12528_v0 }
 0x935   : > { %v5920_v41 = vpop.f32.mrb[168].mxu0 }
 0x936   : > { %v11216_v55 = vpop.f32.mrb[169].mxu0 }
 0x937   : > { %v5923_v4 = vpop.f32.mrb[170].mxu0 }
 0x938   : > { %v5952_v5 = vpack.c.bf16 %v5923_v4, %v5920_v41  ;;  %v11217_v10 = vpop.f32.mrb[171].mxu0 }
 0x93a   : > { %11237 = vmatmul.mubr.msk.bf16.gmra.mrb[124].mxu1 %vm4100_vm6, %v5952_v5 }
 0x93b   : > { %11240 = vmatprep.mubr.msk.bf16.mxu1 %vm12529_vm0, %v12528_v0 }
 0x93d   : > { %v5928_v54 = vpop.f32.mrb[172].mxu0 }
 0x93e   : > { %v11220_v57 = vpop.f32.mrb[173].mxu0 }
 0x93f   : > { %v5931_v8 = vpop.f32.mrb[174].mxu0  ;;  %v12333_v57 = vld [vmem:[#allocation5 + $0x14] ss:$0 sps:$4 sm:$0x33]  }
 0x940   : > { %v5953_v9 = vpack.c.bf16 %v5931_v8, %v5928_v54  ;;  %v11221_v59 = vpop.f32.mrb[175].mxu0  ;;  %v12331_v54 = vld [vmem:[#allocation5 + $0x8] ss:$0 sps:$4 sm:$0x33]  }
 0x941   : > { %v12334_v8 = vld [vmem:[#allocation5 + $0x24] sm:$0xff]   ;;  %v12336_v59 = vld [vmem:[#allocation5 + $0x30] sm:$0xff]  }
 0x942   : > { %11241 = vmatmul.mubr.msk.bf16.gmra.mrb[128].mxu1 %vm4100_vm6, %v5953_v9  ;;  %v12335_v9 = vld [vmem:[#allocation5 + $0x2c] ss:$0 sps:$4 sm:$0x33]  }
 0x943   : > { %11244 = vmatprep.mubr.msk.bf16.mxu1 %vm12529_vm0, %v12528_v0 }
 0x945   : > { %v5936_v27 = vpop.f32.mrb[176].mxu0 }
 0x946   : > { %v11224_v7 = vpop.f32.mrb[177].mxu0 }
 0x947   : > { %v5939_v15 = vpop.f32.mrb[178].mxu0  ;;  %v12338_v7 = vld [vmem:[#allocation5 + $0x48] sm:$0xff]  }
 0x948   : > { %v5954_v16 = vpack.c.bf16 %v5939_v15, %v5936_v27  ;;  %v11225_v63 = vpop.f32.mrb[179].mxu0  ;;  %v12337_v27 = vld [vmem:[#allocation5 + $0x38] ss:$0 sps:$4 sm:$0x33]  }
 0x949   : > { %v12339_v15 = vld [vmem:[#allocation5 + $0x50] ss:$0 sps:$4 sm:$0x33]  }
 0x94a   : > { %11245 = vmatmul.mubr.msk.bf16.gmra.mrb[132].mxu1 %vm4100_vm6, %v5954_v16  ;;  %v6149_v16 = vld [vmem:[%s15001_s8] sm:$0x3] }
 0x94b   : > { %11248 = vmatprep.mubr.msk.bf16.mxu1 %vm12529_vm0, %v12528_v0  ;;  %v6157_v63 = vsel %vm4116_vm5, %v6149_v16, 0 }
 0x94d   : > { %v5944_v25 = vpop.f32.mrb[180].mxu0 }
 0x94e   : > { %v11228_v35 = vpop.f32.mrb[181].mxu0 }
 0x94f   : > { %v5947_v37 = vpop.f32.mrb[182].mxu0 }
 0x950   : > { %v5955_v45 = vpack.c.bf16 %v5947_v37, %v5944_v25  ;;  %v11229_v43 = vpop.f32.mrb[183].mxu0  ;;  %v9345_v25 = vld [vmem:[%s15001_s8 + $0x2] sm:$0x3] }
 0x952   : > { %11249 = vmatmul.mubr.msk.bf16.gmra.mrb[136].mxu1 %vm4100_vm6, %v5955_v45 }
 0x953   : > { %11282 = vmatprep.mubr.msk.bf16.mxu1 %vm4005_vm4, %v12332_v51 }
 0xa05   : > { %v6010_v38 = vpop.f32.mrb[120].mxu1 }
 0xa06   : > { %v11574_v26 = vadd.f32 %v9190_v11, %v6010_v38  ;;  %v11234_v1 = vpop.f32.mrb[121].mxu1 }
 0xa07   : > { %v6013_v53 = vpop.f32.mrb[122].mxu1 }
 0xa08   : > { %v11575_v36 = vadd.f32 %v9190_v11, %v6013_v53  ;;  %v11235_v44 = vpop.f32.mrb[123].mxu1  ;;  %v6059_v33 = vmax.f32 %v11574_v26, 0.0 }
 0xa09   : > { %v12340_v44 = vld [vmem:[#allocation5 + $0x18] sm:$0xff]  }
 0xa0a   : > { %v6060_v30 = vmax.f32 %v11575_v36, 0.0  ;;  %v6287_v36 = vsel %vm4116_vm5, %v9345_v25, 0 }
 0xa0c   : > { %v14534_v2 = vpack.c.bf16 %v6060_v30, %v6059_v33  ;;  %v12341_v30 = vld [vmem:[#allocation5 + $0x20] ss:$0 sps:$4 sm:$0x33]  }
 0xa0d   : > { %v6018_v28 = vpop.f32.mrb[124].mxu1 }
 0xa0e   : > { %v11576_v46 = vadd.f32 %v9190_v11, %v6018_v28  ;;  %v11238_v12 = vpop.f32.mrb[125].mxu1  ;;  %11252 = vmatprep.subr.bf16.mxu0 %v14534_v2  ;;  %11272 = vmatprep.subr.bf16.mxu1 %v14534_v2  ;;  %v9352_v28 = vld [vmem:[%s15001_s8 + $0x4] sm:$0x3] }
 0xa0f   : > { %v6021_v6 = vpop.f32.mrb[126].mxu1  ;;  %11253 = vmatpush3.bf16.msra.mxu0 %v14534_v2  ;;  %11273 = vmatpush3.bf16.msra.mxu1 %v14534_v2  ;;  %v6417_v12 = vsel %vm4116_vm5, %v9352_v28, 0 }
 0xa10   : > { %v11577_v29 = vadd.f32 %v9190_v11, %v6021_v6  ;;  %v11239_v24 = vpop.f32.mrb[127].mxu1  ;;  %v6061_v61 = vmax.f32 %v11576_v46, 0.0 }
 0xa12   : > { %v6062_v23 = vmax.f32 %v11577_v29, 0.0 }
 0xa14   : > { %v14540_v50 = vpack.c.bf16 %v6062_v23, %v6061_v61  ;;  %v9359_v23 = vld [vmem:[%s15001_s8 + $0x6] sm:$0x3] }
 0xa15   : > { %v6026_v18 = vpop.f32.mrb[128].mxu1 }
 0xa16   : > { %v11578_v34 = vadd.f32 %v9190_v11, %v6026_v18  ;;  %v11242_v13 = vpop.f32.mrb[129].mxu1  ;;  %11254 = vmatprep.subr.bf16.mxu0 %v14540_v50  ;;  %11274 = vmatprep.subr.bf16.mxu1 %v14540_v50 }
 0xa17   : > { %v6029_v20 = vpop.f32.mrb[130].mxu1  ;;  %11255 = vmatpush3.bf16.msra.mxu0 %v14540_v50  ;;  %11275 = vmatpush3.bf16.msra.mxu1 %v14540_v50 }
 0xa18   : > { %v11579_v32 = vadd.f32 %v9190_v11, %v6029_v20  ;;  %v11243_v39 = vpop.f32.mrb[131].mxu1  ;;  %v6063_v14 = vmax.f32 %v11578_v34, 0.0 }
 0xa19   : > { %v12344_v39 = vld [vmem:[#allocation5 + $0x54] sm:$0xff]  }
 0xa1a   : > { %v6064_v22 = vmax.f32 %v11579_v32, 0.0 }
 0xa1c   : > { %v14546_v21 = vpack.c.bf16 %v6064_v22, %v6063_v14  ;;  %v12345_v14 = vld [vmem:[#allocation5 + $0x5c] ss:$0 sps:$4 sm:$0x33]  }
 0xa1d   : > { %v6034_v40 = vpop.f32.mrb[132].mxu1 }
 0xa1e   : > { %v11580_v47 = vadd.f32 %v9190_v11, %v6034_v40  ;;  %v11246_v17 = vpop.f32.mrb[133].mxu1  ;;  %11256 = vmatprep.subr.bf16.mxu0 %v14546_v21  ;;  %11276 = vmatprep.subr.bf16.mxu1 %v14546_v21 }
 0xa1f   : > { %v6037_v62 = vpop.f32.mrb[134].mxu1  ;;  %11257 = vmatpush3.bf16.msra.mxu0 %v14546_v21  ;;  %11277 = vmatpush3.bf16.msra.mxu1 %v14546_v21 }
 0xa20   : > { %v11581_v42 = vadd.f32 %v9190_v11, %v6037_v62  ;;  %v11247_v3 = vpop.f32.mrb[135].mxu1  ;;  %v6065_v52 = vmax.f32 %v11580_v47, 0.0 }
 0xa21   : > { %v6547_v3 = vsel %vm4116_vm5, %v9359_v23, 0 }
 0xa22   : > { %v6066_v49 = vmax.f32 %v11581_v42, 0.0 }
 0xa24   : > { %v14552_v58 = vpack.c.bf16 %v6066_v49, %v6065_v52  ;;  %v9366_v52 = vld [vmem:[%s15001_s8 + $0x8] sm:$0x3] }
 0xa25   : > { %v6042_v60 = vpop.f32.mrb[136].mxu1 }
 0xa26   : > { %v11582_v56 = vadd.f32 %v9190_v11, %v6042_v60  ;;  %v11250_v19 = vpop.f32.mrb[137].mxu1  ;;  %11258 = vmatprep.subr.bf16.mxu0 %v14552_v58  ;;  %11278 = vmatprep.subr.bf16.mxu1 %v14552_v58  ;;  %v6677_v60 = vsel %vm4116_vm5, %v9366_v52, 0 }
 0xa27   : > { %v6045_v31 = vpop.f32.mrb[138].mxu1  ;;  %11259 = vmatpush3.bf16.msra.mxu0 %v14552_v58  ;;  %11279 = vmatpush3.bf16.msra.mxu1 %v14552_v58 }
 0xa28   : > { %v11583_v41 = vadd.f32 %v9190_v11, %v6045_v31  ;;  %v11251_v55 = vpop.f32.mrb[139].mxu1  ;;  %v6067_v4 = vmax.f32 %v11582_v56, 0.0  ;;  %v12342_v56 = vld [vmem:[#allocation5 + $0x3c] sm:$0xff]   ;;  %v12343_v31 = vld [vmem:[#allocation5 + $0x44] ss:$0 sps:$4 sm:$0x33]  }
 0xa2a   : > { %v6068_v5 = vmax.f32 %v11583_v41, 0.0  ;;  %v9373_v41 = vld [vmem:[%s15001_s8 + $0xa] sm:$0x3] }
 0xa2c   : > { %v14558_v10 = vpack.c.bf16 %v6068_v5, %v6067_v4  ;;  %v6807_v4 = vsel %vm4116_vm5, %v9373_v41, 0 }
 0xa2e   : > { %11260 = vmatprep.subr.bf16.mxu0 %v14558_v10  ;;  %11280 = vmatprep.subr.bf16.mxu1 %v14558_v10 }
 0xa2f   : > { %11261 = vmatpush3.bf16.msra.mxu0 %v14558_v10  ;;  %11281 = vmatpush3.bf16.msra.mxu1 %v14558_v10 }
 0xa30   : > { %11312 = vmatprep.subr.bf16.mxu1 %v14534_v2  ;;  %11974 = vmatprep.subr.msk.bf16.mxu0 %vm4116_vm5, %v6149_v16 }
 0xa32   : > { %11263 = vmatmul.mubr.msk.bf16.vlgmr.msra.gmra.mrb[184].mxu0 %vm4005_vm4, %v12331_v54  ;;  %11283 = vmatmul.mubr.msk.bf16.vlgmr.msra.gmra.mrb[140].mxu1 %vm4005_vm4, %v12333_v57 }
 0xa33   : > { %11313 = vmatpush3.bf16.msra.mxu1 %v14534_v2  ;;  %11322 = vmatprep.mubr.msk.bf16.mxu1 %vm4005_vm4, %v12334_v8 }
 0xa34   : > { %11314 = vmatprep.subr.bf16.mxu1 %v14540_v50  ;;  %11267 = vmatpush3.bf16.msra.mxu0 %v6157_v63 }
 0xa35   : > { %11975 = vmatprep.subr.msk.bf16.mxu0 %vm4116_vm5, %v9345_v25 }
 0xa37   : > { %11315 = vmatpush3.bf16.msra.mxu1 %v14540_v50 }
 0xa38   : > { %11316 = vmatprep.subr.bf16.mxu1 %v14546_v21 }
 0xa3b   : > { %11317 = vmatpush3.bf16.msra.mxu1 %v14546_v21 }
 0xa3c   : > { %11318 = vmatprep.subr.bf16.mxu1 %v14552_v58 }
 0xa3f   : > { %11319 = vmatpush3.bf16.msra.mxu1 %v14552_v58 }
 0xa40   : > { %11320 = vmatprep.subr.bf16.mxu1 %v14558_v10 }
 0xa43   : > { %11321 = vmatpush3.bf16.msra.mxu1 %v14558_v10 }
 0xa44   : > { %11332 = vmatprep.subr.bf16.mxu1 %v14534_v2 }
 0xa46   : > { %11323 = vmatmul.mubr.msk.bf16.vlgmr.msra.gmra.mrb[144].mxu1 %vm4005_vm4, %v12335_v9  ;;  %v9380_v9 = vld [vmem:[%s15001_s8 + $0xc] sm:$0x3] }
 0xa47   : > { %11333 = vmatpush3.bf16.msra.mxu1 %v14534_v2  ;;  %11342 = vmatprep.mubr.msk.bf16.mxu1 %vm4005_vm4, %v12336_v59 }
 0xa48   : > { %11334 = vmatprep.subr.bf16.mxu1 %v14540_v50 }
 0xa4b   : > { %11335 = vmatpush3.bf16.msra.mxu1 %v14540_v50 }
 0xa4c   : > { %11336 = vmatprep.subr.bf16.mxu1 %v14546_v21 }
 0xa4f   : > { %11337 = vmatpush3.bf16.msra.mxu1 %v14546_v21 }
 0xa50   : > { %11338 = vmatprep.subr.bf16.mxu1 %v14552_v58 }
 0xa53   : > { %11339 = vmatpush3.bf16.msra.mxu1 %v14552_v58 }
 0xa54   : > { %11340 = vmatprep.subr.bf16.mxu1 %v14558_v10 }
 0xa57   : > { %11341 = vmatpush3.bf16.msra.mxu1 %v14558_v10 }
 0xa58   : > { %11372 = vmatprep.subr.bf16.mxu1 %v14534_v2 }
 0xa5a   : > { %11343 = vmatmul.mubr.msk.bf16.vlgmr.msra.gmra.mrb[148].mxu1 %vm4005_vm4, %v12337_v27 }
 0xa5b   : > { %11373 = vmatpush3.bf16.msra.mxu1 %v14534_v2  ;;  %11382 = vmatprep.mubr.msk.bf16.mxu1 %vm4005_vm4, %v12338_v7 }
 0xa5c   : > { %11374 = vmatprep.subr.bf16.mxu1 %v14540_v50 }
 0xa5f   : > { %11375 = vmatpush3.bf16.msra.mxu1 %v14540_v50 }
 0xa60   : > { %11376 = vmatprep.subr.bf16.mxu1 %v14546_v21 }
 0xa63   : > { %11377 = vmatpush3.bf16.msra.mxu1 %v14546_v21 }
 0xa64   : > { %11378 = vmatprep.subr.bf16.mxu1 %v14552_v58 }
 0xa67   : > { %11379 = vmatpush3.bf16.msra.mxu1 %v14552_v58 }
 0xa68   : > { %11380 = vmatprep.subr.bf16.mxu1 %v14558_v10 }
 0xa6b   : > { %11381 = vmatpush3.bf16.msra.mxu1 %v14558_v10 }
 0xa6c   : > { %11392 = vmatprep.subr.bf16.mxu1 %v14534_v2 }
 0xa6e   : > { %11383 = vmatmul.mubr.msk.bf16.vlgmr.msra.gmra.mrb[152].mxu1 %vm4005_vm4, %v12339_v15 }
 0xa6f   : > { %11393 = vmatpush3.bf16.msra.mxu1 %v14534_v2  ;;  %11402 = vmatprep.mubr.msk.bf16.mxu1 %vm4005_vm4, %v12344_v39 }
 0xa70   : > { %11394 = vmatprep.subr.bf16.mxu1 %v14540_v50 }
 0xa73   : > { %11395 = vmatpush3.bf16.msra.mxu1 %v14540_v50 }
 0xa74   : > { %11396 = vmatprep.subr.bf16.mxu1 %v14546_v21 }
 0xa77   : > { %11397 = vmatpush3.bf16.msra.mxu1 %v14546_v21 }
 0xa78   : > { %11398 = vmatprep.subr.bf16.mxu1 %v14552_v58 }
 0xa7b   : > { %11399 = vmatpush3.bf16.msra.mxu1 %v14552_v58 }
 0xa7c   : > { %11400 = vmatprep.subr.bf16.mxu1 %v14558_v10 }
 0xa7f   : > { %11401 = vmatpush3.bf16.msra.mxu1 %v14558_v10 }
 0xa82   : > { %11403 = vmatmul.mubr.msk.bf16.vlgmr.msra.gmra.mrb[156].mxu1 %vm4005_vm4, %v12345_v14  ;;  %v12349_v14 = vld [vmem:[#allocation7 + $0x8] ss:$0 sps:$4 sm:$0x33]  }
 0xb05   : > { %v11264_v35 = vpop.f32.mrb[184].mxu0  ;;  %v11284_v37 = vpop.f32.mrb[140].mxu1 }
 0xb06   : > { %v6133_v45 = vpop.f32.mrb[185].mxu0  ;;  %v6262_v43 = vpop.f32.mrb[141].mxu1  ;;  %v6148_v53 = vpack.c.bf16 %v11264_v35, %v11264_v35  ;;  %v6277_v33 = vpack.c.bf16 %v11284_v37, %v11284_v37 }
 0xb07   : > { %v11265_v48 = vpop.f32.mrb[186].mxu0  ;;  %v11285_v51 = vpop.f32.mrb[142].mxu1 }
 0xb08   : > { %v6136_v11 = vpop.f32.mrb[187].mxu0  ;;  %v6265_v38 = vpop.f32.mrb[143].mxu1  ;;  %v6937_v48 = vsel %vm4116_vm5, %v9380_v9, 0  ;;  %v9387_v51 = vld [vmem:[%s15001_s8 + $0xe] sm:$0x3] }
 0xb09   : > { %v6147_v26 = vpack.c.bf16 %v6136_v11, %v6133_v45  ;;  %v6276_v1 = vpack.c.bf16 %v6265_v38, %v6262_v43  ;;  %v7067_v38 = vsel %vm4116_vm5, %v9387_v51, 0 }
 0xb0b   : > { %11268 = vmatprep.mubr.msk.bf16.mxu0 %vm4100_vm6, %v6147_v26  ;;  %v12346_v26 = vld [vmem:[#allocation5 + $0x60] sm:$0xff]  }
 0xb0c   : > { %11269 = vmatmul.mubr.msk.bf16.vlgmr.msra.gmra.mrb[188].mxu0 %vm4100_vm6, %v6148_v53  ;;  %v12347_v53 = vld [vmem:[#allocation5 + $0x68] ss:$0 sps:$4 sm:$0x33]  }
 0xb0d   : > { %11287 = vmatpush3.bf16.msra.mxu0 %v6287_v36  ;;  %11288 = vmatprep.mubr.msk.bf16.mxu0 %vm4100_vm6, %v6276_v1 }
 0xb0e   : > { %11292 = vmatprep.subr.bf16.mxu0 %v14534_v2 }
 0xb18   : > { %11289 = vmatmul.mubr.msk.bf16.vlgmr.msra.gmra.mrb[188].mxu0 %vm4100_vm6, %v6277_v33 }
 0xb19   : > { %11293 = vmatpush3.bf16.msra.mxu0 %v14534_v2  ;;  %11302 = vmatprep.mubr.msk.bf16.mxu0 %vm4005_vm4, %v12340_v44  ;;  %v11324_v46 = vpop.f32.mrb[144].mxu1 }
 0xb1a   : > { %11294 = vmatprep.subr.bf16.mxu0 %v14540_v50  ;;  %v6522_v6 = vpop.f32.mrb[145].mxu1  ;;  %v6537_v49 = vpack.c.bf16 %v11324_v46, %v11324_v46  ;;  %v9334_v46 = vld [vmem:[%s15002_s9] ss:$0 sm:$0xff] }
 0xb1b   : > { %v11325_v29 = vpop.f32.mrb[146].mxu1 }
 0xb1c   : > { %v6525_v24 = vpop.f32.mrb[147].mxu1 }
 0xb1d   : > { %11295 = vmatpush3.bf16.msra.mxu0 %v14540_v50  ;;  %v6536_v61 = vpack.c.bf16 %v6525_v24, %v6522_v6 }
 0xb1e   : > { %11296 = vmatprep.subr.bf16.mxu0 %v14546_v21 }
 0xb21   : > { %11297 = vmatpush3.bf16.msra.mxu0 %v14546_v21 }
 0xb22   : > { %11298 = vmatprep.subr.bf16.mxu0 %v14552_v58 }
 0xb25   : > { %11299 = vmatpush3.bf16.msra.mxu0 %v14552_v58 }
 0xb26   : > { %11300 = vmatprep.subr.bf16.mxu0 %v14558_v10 }
 0xb29   : > { %11301 = vmatpush3.bf16.msra.mxu0 %v14558_v10 }
 0xb2a   : > { %11976 = vmatprep.subr.msk.bf16.mxu0 %vm4116_vm5, %v9352_v28  ;;  %v12350_v28 = vld [vmem:[#allocation7 + $0x18] sm:$0xff]  }
 0xb2c   : > { %11303 = vmatmul.mubr.msk.bf16.vlgmr.msra.gmra.mrb[192].mxu0 %vm4005_vm4, %v12341_v30 }
 0xb2d   : > { %11307 = vmatpush3.bf16.msra.mxu0 %v6417_v12  ;;  %v11344_v18 = vpop.f32.mrb[148].mxu1 }
 0xb2e   : > { %11977 = vmatprep.subr.msk.bf16.mxu0 %vm4116_vm5, %v9359_v23  ;;  %v6652_v34 = vpop.f32.mrb[149].mxu1  ;;  %v6667_v19 = vpack.c.bf16 %v11344_v18, %v11344_v18 }
 0xb2f   : > { %v11345_v13 = vpop.f32.mrb[150].mxu1 }
 0xb30   : > { %v6655_v20 = vpop.f32.mrb[151].mxu1 }
 0xb31   : > { %v6666_v32 = vpack.c.bf16 %v6655_v20, %v6652_v34 }
 0xb41   : > { %v11384_v55 = vpop.f32.mrb[152].mxu1 }
 0xb42   : > { %v6912_v5 = vpop.f32.mrb[153].mxu1  ;;  %v6927_v11 = vpack.c.bf16 %v11384_v55, %v11384_v55  ;;  %v12364_v55 = vld [vmem:[#allocation7 + $0x60] sm:$0xff]  }
 0xb43   : > { %v11385_v54 = vpop.f32.mrb[154].mxu1 }
 0xb44   : > { %v6915_v57 = vpop.f32.mrb[155].mxu1 }
 0xb45   : > { %v6926_v8 = vpack.c.bf16 %v6915_v57, %v6912_v5 }
 0xb55   : > { %v11404_v59 = vpop.f32.mrb[156].mxu1 }
 0xb56   : > { %v7042_v27 = vpop.f32.mrb[157].mxu1  ;;  %v7057_v1 = vpack.c.bf16 %v11404_v59, %v11404_v59  ;;  %v12362_v59 = vld [vmem:[#allocation7 + $0xc] sm:$0xff]  }
 0xb57   : > { %v11405_v7 = vpop.f32.mrb[158].mxu1 }
 0xb58   : > { %v7045_v15 = vpop.f32.mrb[159].mxu1  ;;  %v12363_v7 = vld [vmem:[#allocation7 + $0x14] ss:$0 sps:$4 sm:$0x33]  }
 0xb59   : > { %v7056_v16 = vpack.c.bf16 %v7045_v15, %v7042_v27 }
 0xbff   : > { %v11304_v22 = vpop.f32.mrb[192].mxu0 }
 0xc00   : > { %v6392_v40 = vpop.f32.mrb[193].mxu0  ;;  %v6407_v42 = vpack.c.bf16 %v11304_v22, %v11304_v22  ;;  %v7334_v22 = vld [vmem:[%s15004_s11] sm:$0xf] }
 0xc01   : > { %v11305_v47 = vpop.f32.mrb[194].mxu0 }
 0xc02   : > { %v6395_v17 = vpop.f32.mrb[195].mxu0  ;;  %v12351_v47 = vld [vmem:[#allocation7 + $0x20] ss:$0 sps:$4 sm:$0x33]  }
 0xc03   : > { %v6406_v62 = vpack.c.bf16 %v6395_v17, %v6392_v40  ;;  %v7342_v17 = vsel %vm940_vm2, %v7334_v22, 0 }
 0xc05   : > { %11308 = vmatprep.mubr.msk.bf16.mxu0 %vm4100_vm6, %v6406_v62  ;;  %v12352_v62 = vld [vmem:[#allocation7 + $0x24] sm:$0xff]  }
 0xc06   : > { %11309 = vmatmul.mubr.msk.bf16.vlgmr.msra.gmra.mrb[188].mxu0 %vm4100_vm6, %v6407_v42  ;;  %v12353_v42 = vld [vmem:[#allocation7 + $0x2c] ss:$0 sps:$4 sm:$0x33]  }
 0xc07   : > { %11327 = vmatpush3.bf16.msra.mxu0 %v6547_v3  ;;  %11328 = vmatprep.mubr.msk.bf16.mxu0 %vm4100_vm6, %v6536_v61  ;;  %v12354_v3 = vld [vmem:[#allocation7 + $0x30] sm:$0xff]  }
 0xc08   : > { %11978 = vmatprep.subr.msk.bf16.mxu0 %vm4116_vm5, %v9366_v52  ;;  %v12355_v52 = vld [vmem:[#allocation7 + $0x38] ss:$0 sps:$4 sm:$0x33]  }
 0xc12   : > { %11329 = vmatmul.mubr.msk.bf16.vlgmr.msra.gmra.mrb[188].mxu0 %vm4100_vm6, %v6537_v49  ;;  %v12356_v49 = vld [vmem:[#allocation7 + $0x3c] sm:$0xff]  }
 0xc13   : > { %11347 = vmatpush3.bf16.msra.mxu0 %v6677_v60  ;;  %11348 = vmatprep.mubr.msk.bf16.mxu0 %vm4100_vm6, %v6666_v32  ;;  %v12357_v60 = vld [vmem:[#allocation7 + $0x44] ss:$0 sps:$4 sm:$0x33]  }
 0xc14   : > { %11352 = vmatprep.subr.bf16.mxu0 %v14534_v2 }
 0xc1e   : > { %11349 = vmatmul.mubr.msk.bf16.vlgmr.msra.gmra.mrb[188].mxu0 %vm4100_vm6, %v6667_v19  ;;  %v12359_v19 = vld [vmem:[#allocation7 + $0x50] ss:$0 sps:$4 sm:$0x33]  }
 0xc1f   : > { %11353 = vmatpush3.bf16.msra.mxu0 %v14534_v2  ;;  %11362 = vmatprep.mubr.msk.bf16.mxu0 %vm4005_vm4, %v12342_v56  ;;  %v12358_v56 = vld [vmem:[#allocation7 + $0x48] sm:$0xff]  }
 0xc20   : > { %11354 = vmatprep.subr.bf16.mxu0 %v14540_v50 }
 0xc23   : > { %11355 = vmatpush3.bf16.msra.mxu0 %v14540_v50 }
 0xc24   : > { %11356 = vmatprep.subr.bf16.mxu0 %v14546_v21 }
 0xc27   : > { %11357 = vmatpush3.bf16.msra.mxu0 %v14546_v21 }
 0xc28   : > { %11358 = vmatprep.subr.bf16.mxu0 %v14552_v58 }
 0xc2b   : > { %11359 = vmatpush3.bf16.msra.mxu0 %v14552_v58 }
 0xc2c   : > { %11360 = vmatprep.subr.bf16.mxu0 %v14558_v10 }
 0xc2f   : > { %11361 = vmatpush3.bf16.msra.mxu0 %v14558_v10 }
 0xc30   : > { %11979 = vmatprep.subr.msk.bf16.mxu0 %vm4116_vm5, %v9373_v41  ;;  %v12361_v41 = vld [vmem:[#allocation7 + $0x5c] ss:$0 sps:$4 sm:$0x33]  }
 0xc32   : > { %11363 = vmatmul.mubr.msk.bf16.vlgmr.msra.gmra.mrb[196].mxu0 %vm4005_vm4, %v12343_v31  ;;  %v12360_v31 = vld [vmem:[#allocation7 + $0x54] sm:$0xff]  }
 0xc33   : > { %11367 = vmatpush3.bf16.msra.mxu0 %v6807_v4  ;;  %v12365_v4 = vld [vmem:[#allocation7 + $0x68] ss:$0 sps:$4 sm:$0x33]  }
 0xc34   : > { %11980 = vmatprep.subr.msk.bf16.mxu0 %vm4116_vm5, %v9380_v9 }
 0xd05   : > { %v11364_v63 = vpop.f32.mrb[196].mxu0 }
 0xd06   : > { %v6782_v25 = vpop.f32.mrb[197].mxu0  ;;  %v6797_v43 = vpack.c.bf16 %v11364_v63, %v11364_v63 }
 0xd07   : > { %v11365_v35 = vpop.f32.mrb[198].mxu0 }
 0xd08   : > { %v6785_v37 = vpop.f32.mrb[199].mxu0 }
 0xd09   : > { %v6796_v45 = vpack.c.bf16 %v6785_v37, %v6782_v25 }
 0xd0b   : > { %11368 = vmatprep.mubr.msk.bf16.mxu0 %vm4100_vm6, %v6796_v45 }
 0xd0c   : > { %11369 = vmatmul.mubr.msk.bf16.vlgmr.msra.gmra.mrb[188].mxu0 %vm4100_vm6, %v6797_v43 }
 0xd0d   : > { %11387 = vmatpush3.bf16.msra.mxu0 %v6937_v48  ;;  %11388 = vmatprep.mubr.msk.bf16.mxu0 %vm4100_vm6, %v6926_v8 }
 0xd0e   : > { %11981 = vmatprep.subr.msk.bf16.mxu0 %vm4116_vm5, %v9387_v51 }
 0xd18   : > { %11389 = vmatmul.mubr.msk.bf16.vlgmr.msra.gmra.mrb[188].mxu0 %vm4100_vm6, %v6927_v11 }
 0xd19   : > { %11407 = vmatpush3.bf16.msra.mxu0 %v7067_v38  ;;  %11408 = vmatprep.mubr.msk.bf16.mxu0 %vm4100_vm6, %v7056_v16  ;;  %v9415_v16 = vld [vmem:[%s15004_s11 + $0x8] sm:$0xf] }
 0xd1a   : > { %11412 = vmatprep.subr.bf16.mxu0 %v14534_v2 }
 0xd24   : > { %11409 = vmatmul.mubr.msk.bf16.vlgmr.msra.gmra.mrb[188].mxu0 %vm4100_vm6, %v7057_v1 }
 0xd25   : > { %11413 = vmatpush3.bf16.msra.mxu0 %v14534_v2  ;;  %11422 = vmatprep.mubr.msk.bf16.mxu0 %vm4005_vm4, %v12346_v26  ;;  %v9394_v2 = vld [vmem:[%s15001_s8 + $0x10] sm:$0x3] }
 0xd26   : > { %11414 = vmatprep.subr.bf16.mxu0 %v14540_v50 }
 0xd29   : > { %11415 = vmatpush3.bf16.msra.mxu0 %v14540_v50  ;;  %v7197_v50 = vsel %vm4116_vm5, %v9394_v2, 0 }
 0xd2a   : > { %11416 = vmatprep.subr.bf16.mxu0 %v14546_v21 }
 0xd2d   : > { %11417 = vmatpush3.bf16.msra.mxu0 %v14546_v21 }
 0xd2e   : > { %11418 = vmatprep.subr.bf16.mxu0 %v14552_v58 }
 0xd31   : > { %11419 = vmatpush3.bf16.msra.mxu0 %v14552_v58 }
 0xd32   : > { %11420 = vmatprep.subr.bf16.mxu0 %v14558_v10 }
 0xd35   : > { %11421 = vmatpush3.bf16.msra.mxu0 %v14558_v10  ;;  %v12348_v10 = vld [vmem:[#allocation7] sm:$0xff]  }
 0xd36   : > { %11982 = vmatprep.subr.msk.bf16.mxu0 %vm4116_vm5, %v9394_v2  ;;  %11436 = vmatprep.mubr.msk.bf16.mxu1 %vm7274_vm7, %v12348_v10 }
 0xd38   : > { %11423 = vmatmul.mubr.msk.bf16.vlgmr.msra.gmra.mrb[200].mxu0 %vm4005_vm4, %v12347_v53 }
 0xd39   : > { %11427 = vmatpush3.bf16.msra.mxu0 %v7197_v50 }
 0xe0b   : > { %v11424_v21 = vpop.f32.mrb[200].mxu0 }
 0xe0c   : > { %v7172_v36 = vpop.f32.mrb[201].mxu0  ;;  %v7187_v30 = vpack.c.bf16 %v11424_v21, %v11424_v21 }
 0xe0d   : > { %v11425_v44 = vpop.f32.mrb[202].mxu0 }
 0xe0e   : > { %v7175_v58 = vpop.f32.mrb[203].mxu0 }
 0xe0f   : > { %v7186_v33 = vpack.c.bf16 %v7175_v58, %v7172_v36 }
 0xe11   : > { %11428 = vmatprep.mubr.msk.bf16.mxu0 %vm4100_vm6, %v7186_v33 }
 0xe12   : > { %11429 = vmatmul.mubr.msk.bf16.vlgmr.msra.gmra.mrb[188].mxu0 %vm4100_vm6, %v7187_v30 }
 0xe13   : > { %11464 = vmatprep.mubr.msk.bf16.mxu0 %vm7274_vm7, %v12350_v28 }
 0xee5   : > { %v11430_v12 = vpop.f32.mrb[188].mxu0 }
 0xee6   : > { %v7233_v6 = vpop.f32.mrb[189].mxu0  ;;  %v11584_v29 = vadd.f32 %v11430_v12, %v9334_v46 }
 0xee7   : > { %v11585_v24 = vadd.f32 %v9334_v46, %v7233_v6  ;;  %v11431_v61 = vpop.f32.mrb[190].mxu0 }
 0xee8   : > { %v7236_v23 = vpop.f32.mrb[191].mxu0  ;;  %v7252_v34 = vmax.f32 %v11584_v29, 0.0 }
 0xee9   : > { %v11586_v18 = vadd.f32 %v9334_v46, %v7236_v23  ;;  %v7250_v13 = vmax.f32 %v11585_v24, 0.0 }
 0xeea   : > { %v14720_v39 = vpack.c.bf16 %v7252_v34, %v7252_v34 }
 0xeeb   : > { %v7251_v20 = vmax.f32 %v11586_v18, 0.0 }
 0xeec   : > { %v14735_v40 = vsel %vm4116_vm5, %v14720_v39, 0 }
 0xeed   : > { %v14718_v32 = vpack.c.bf16 %v7251_v20, %v7250_v13 }
 0xeef   : > { %11432 = vmatprep.subr.bf16.mxu1 %v14718_v32  ;;  %11460 = vmatprep.subr.bf16.mxu0 %v14718_v32 }
 0xef0   : > { %11433 = vmatpush3.bf16.msra.mxu1 %v14718_v32  ;;  %11461 = vmatpush3.bf16.msra.mxu0 %v14718_v32 }
 0xef1   : > { %11983 = vmatprep.subr.msk.bf16.mxu1 %vm4116_vm5, %v14720_v39  ;;  %11987 = vmatprep.subr.msk.bf16.mxu0 %vm4116_vm5, %v14720_v39 }
 0xef4   : > { %11435 = vmatpush3.bf16.msra.mxu1 %v14735_v40  ;;  %11463 = vmatpush3.bf16.msra.mxu0 %v14735_v40 }
 0xef5   : > { %11474 = vmatprep.subr.bf16.mxu0 %v14718_v32  ;;  %11984 = vmatprep.subr.msk.bf16.mxu1 %vm940_vm2, %v7334_v22 }
 0xef7   : > { %11437 = vmatmul.mubr.msk.bf16.vlgmr.msra.gmra.mrb[160].mxu1 %vm7274_vm7, %v12349_v14  ;;  %11465 = vmatmul.mubr.msk.bf16.vlgmr.msra.gmra.mrb[204].mxu0 %vm7274_vm7, %v12351_v47 }
 0xef8   : > { %11441 = vmatpush3.bf16.msra.mxu1 %v7342_v17  ;;  %11475 = vmatpush3.bf16.msra.mxu0 %v14718_v32 }
 0xef9   : > { %11446 = vmatprep.subr.bf16.mxu1 %v14718_v32  ;;  %11989 = vmatprep.subr.msk.bf16.mxu0 %vm4116_vm5, %v14720_v39 }
 0xefa   : > { %11478 = vmatprep.mubr.msk.bf16.mxu0 %vm7274_vm7, %v12352_v62  ;;  %v7602_v62 = vsel %vm940_vm2, %v9415_v16, 0 }
 0xefc   : > { %11477 = vmatpush3.bf16.msra.mxu0 %v14735_v40 }
 0xefd   : > { %11488 = vmatprep.subr.bf16.mxu0 %v14718_v32 }
 0xeff   : > { %11479 = vmatmul.mubr.msk.bf16.vlgmr.msra.gmra.mrb[208].mxu0 %vm7274_vm7, %v12353_v42  ;;  %v9422_v42 = vld [vmem:[%s15004_s11 + $0xc] sm:$0xf] }
 0xf00   : > { %11489 = vmatpush3.bf16.msra.mxu0 %v14718_v32  ;;  %11492 = vmatprep.mubr.msk.bf16.mxu0 %vm7274_vm7, %v12354_v3 }
 0xf01   : > { %11991 = vmatprep.subr.msk.bf16.mxu0 %vm4116_vm5, %v14720_v39 }
 0xf04   : > { %11491 = vmatpush3.bf16.msra.mxu0 %v14735_v40 }
 0xf05   : > { %11502 = vmatprep.subr.bf16.mxu0 %v14718_v32 }
 0xf07   : > { %11493 = vmatmul.mubr.msk.bf16.vlgmr.msra.gmra.mrb[212].mxu0 %vm7274_vm7, %v12355_v52  ;;  %v7732_v52 = vsel %vm940_vm2, %v9422_v42, 0 }
 0xf08   : > { %11503 = vmatpush3.bf16.msra.mxu0 %v14718_v32  ;;  %11506 = vmatprep.mubr.msk.bf16.mxu0 %vm7274_vm7, %v12356_v49  ;;  %v9429_v49 = vld [vmem:[%s15004_s11 + $0x10] sm:$0xf] }
 0xf09   : > { %11993 = vmatprep.subr.msk.bf16.mxu0 %vm4116_vm5, %v14720_v39 }
 0xf0c   : > { %11505 = vmatpush3.bf16.msra.mxu0 %v14735_v40 }
 0xf0d   : > { %11516 = vmatprep.subr.bf16.mxu0 %v14718_v32 }
 0xf0f   : > { %11507 = vmatmul.mubr.msk.bf16.vlgmr.msra.gmra.mrb[216].mxu0 %vm7274_vm7, %v12357_v60 }
 0xf10   : > { %11517 = vmatpush3.bf16.msra.mxu0 %v14718_v32  ;;  %11520 = vmatprep.mubr.msk.bf16.mxu0 %vm7274_vm7, %v12358_v56  ;;  %v7862_v56 = vsel %vm940_vm2, %v9429_v49, 0 }
 0xf11   : > { %11995 = vmatprep.subr.msk.bf16.mxu0 %vm4116_vm5, %v14720_v39 }
 0xf14   : > { %11519 = vmatpush3.bf16.msra.mxu0 %v14735_v40 }
 0xf15   : > { %11530 = vmatprep.subr.bf16.mxu0 %v14718_v32 }
 0xf17   : > { %11521 = vmatmul.mubr.msk.bf16.vlgmr.msra.gmra.mrb[220].mxu0 %vm7274_vm7, %v12359_v19  ;;  %v9436_v19 = vld [vmem:[%s15004_s11 + $0x14] sm:$0xf] }
 0xf18   : > { %11531 = vmatpush3.bf16.msra.mxu0 %v14718_v32  ;;  %11534 = vmatprep.mubr.msk.bf16.mxu0 %vm7274_vm7, %v12360_v31 }
 0xf19   : > { %11997 = vmatprep.subr.msk.bf16.mxu0 %vm4116_vm5, %v14720_v39 }
 0xf1c   : > { %11533 = vmatpush3.bf16.msra.mxu0 %v14735_v40 }
 0xf1d   : > { %11544 = vmatprep.subr.bf16.mxu0 %v14718_v32 }
 0xf1f   : > { %11535 = vmatmul.mubr.msk.bf16.vlgmr.msra.gmra.mrb[224].mxu0 %vm7274_vm7, %v12361_v41  ;;  %v7992_v41 = vsel %vm940_vm2, %v9436_v19, 0 }
 0xf20   : > { %11545 = vmatpush3.bf16.msra.mxu0 %v14718_v32  ;;  %11548 = vmatprep.mubr.msk.bf16.mxu0 %vm7274_vm7, %v12364_v55  ;;  %v9443_v55 = vld [vmem:[%s15004_s11 + $0x18] sm:$0xf] }
 0xf21   : > { %11999 = vmatprep.subr.msk.bf16.mxu0 %vm4116_vm5, %v14720_v39 }
 0xf24   : > { %11547 = vmatpush3.bf16.msra.mxu0 %v14735_v40 }
 0xf25   : > { %11558 = vmatprep.subr.bf16.mxu0 %v12528_v0 }
 0xf27   : > { %11549 = vmatmul.mubr.msk.bf16.vlgmr.msra.gmra.mrb[228].mxu0 %vm7274_vm7, %v12365_v4 }
 0xf28   : > { %11560 = vmatprep.mubr.msk.bf16.mxu0 %vm12529_vm0, %v12528_v0  ;;  %v9408_v0 = vld [vmem:[%s15004_s11 + $0x4] sm:$0xf] }
 0xf29   : > { %v7472_v15 = vsel %vm940_vm2, %v9408_v0, 0 }
 0xfca   : > { %v11438_v5 = vpop.f32.mrb[160].mxu1  ;;  %v11466_v63 = vpop.f32.mrb[204].mxu0 }
 0xfcb   : > { %v7318_v54 = vpop.f32.mrb[161].mxu1  ;;  %v7333_v27 = vpack.c.bf16 %v11438_v5, %v11438_v5  ;;  %v7577_v25 = vpop.f32.mrb[205].mxu0  ;;  %v7592_v3 = vpack.c.bf16 %v11466_v63, %v11466_v63  ;;  %v8122_v5 = vsel %vm940_vm2, %v9443_v55, 0 }
 0xfcc   : > { %v11439_v57 = vpop.f32.mrb[162].mxu1  ;;  %v11467_v35 = vpop.f32.mrb[206].mxu0 }
 0xfcd   : > { %v7321_v8 = vpop.f32.mrb[163].mxu1  ;;  %v7580_v37 = vpop.f32.mrb[207].mxu0 }
 0xfce   : > { %v7332_v9 = vpack.c.bf16 %v7321_v8, %v7318_v54  ;;  %v7591_v45 = vpack.c.bf16 %v7580_v37, %v7577_v25  ;;  %v9450_v54 = vld [vmem:[%s15004_s11 + $0x1c] sm:$0xf] }
 0xfcf   : > { %v8252_v8 = vsel %vm940_vm2, %v9450_v54, 0 }
 0xfd0   : > { %11442 = vmatprep.mubr.msk.bf16.mxu1 %vm924_vm3, %v7332_v9  ;;  %v9457_v9 = vld [vmem:[%s15004_s11 + $0x20] sm:$0xf] }
 0xfd1   : > { %11443 = vmatmul.mubr.msk.bf16.vlgmr.msra.gmra.mrb[164].mxu1 %vm924_vm3, %v7333_v27  ;;  %v8382_v27 = vsel %vm940_vm2, %v9457_v9, 0 }
 0xfd2   : > { %11447 = vmatpush3.bf16.msra.mxu1 %v14718_v32  ;;  %11450 = vmatprep.mubr.msk.bf16.mxu1 %vm7274_vm7, %v12362_v59  ;;  %v11480_v43 = vpop.f32.mrb[208].mxu0 }
 0xfd3   : > { %11985 = vmatprep.subr.msk.bf16.mxu1 %vm4116_vm5, %v14720_v39  ;;  %v7707_v48 = vpop.f32.mrb[209].mxu0  ;;  %v7722_v60 = vpack.c.bf16 %v11480_v43, %v11480_v43 }
 0xfd4   : > { %v11481_v51 = vpop.f32.mrb[210].mxu0 }
 0xfd5   : > { %v7710_v11 = vpop.f32.mrb[211].mxu0 }
 0xfd6   : > { %11449 = vmatpush3.bf16.msra.mxu1 %v14735_v40  ;;  %v7721_v38 = vpack.c.bf16 %v7710_v11, %v7707_v48  ;;  %v12532_v11 = vmov 2  }
 0xfd7   : > { %11986 = vmatprep.subr.msk.bf16.mxu1 %vm940_vm2, %v9408_v0  ;;  %v12530_v0 = vmov 1  }
 0xfd8   : > { %12084 = vset.pattern.permute.xlu1 %v12530_v0 }
 0xfd9   : > { %11451 = vmatmul.mubr.msk.bf16.vlgmr.msra.gmra.mrb[168].mxu1 %vm7274_vm7, %v12363_v7 }
 0xfda   : > { %11455 = vmatpush3.bf16.msra.mxu1 %v7472_v15  ;;  %v11494_v26 = vpop.f32.mrb[212].mxu0  ;;  %v12531_v15 = vmov 0  }
 0xfdb   : > { %11988 = vmatprep.subr.msk.bf16.mxu1 %vm940_vm2, %v9415_v16  ;;  %v7837_v1 = vpop.f32.mrb[213].mxu0  ;;  %v7852_v31 = vpack.c.bf16 %v11494_v26, %v11494_v26  ;;  %12083 = vset.pattern.permute.xlu0 %v12531_v15  ;;  %v9397_v16 = vld [vmem:[%s15005_s12] ss:$0 sm:$0xff]  ;;  %v12534_v26 = vmov 4  }
 0xfdc   : > { %v11495_v53 = vpop.f32.mrb[214].mxu0 }
 0xfdd   : > { %v7840_v2 = vpop.f32.mrb[215].mxu0 }
 0xfde   : > { %v7851_v50 = vpack.c.bf16 %v7840_v2, %v7837_v1  ;;  %v12535_v1 = vmov 5  }
 0xfe2   : > { %v11508_v21 = vpop.f32.mrb[216].mxu0 }
 0xfe3   : > { %v7967_v36 = vpop.f32.mrb[217].mxu0  ;;  %v7982_v4 = vpack.c.bf16 %v11508_v21, %v11508_v21  ;;  %v12537_v21 = vmov 7  }
 0xfe4   : > { %v11509_v44 = vpop.f32.mrb[218].mxu0 }
 0xfe5   : > { %v7970_v58 = vpop.f32.mrb[219].mxu0 }
 0xfe6   : > { %v7981_v33 = vpack.c.bf16 %v7970_v58, %v7967_v36  ;;  %v12366_v36 = vld [vmem:[%s15008_s15] sm:$0xff]  }
 0xfe7   : > { %11559 = vmatpush3.bf16.msra.mxu0 %v12366_v36 }
 0xfea   : > { %v11522_v30 = vpop.f32.mrb[220].mxu0 }
 0xfeb   : > { %v8097_v10 = vpop.f32.mrb[221].mxu0  ;;  %v8112_v57 = vpack.c.bf16 %v11522_v30, %v11522_v30 }
 0xfec   : > { %v11523_v28 = vpop.f32.mrb[222].mxu0 }
 0xfed   : > { %v8100_v46 = vpop.f32.mrb[223].mxu0 }
 0xfee   : > { %v8111_v12 = vpack.c.bf16 %v8100_v46, %v8097_v10 }
 0xff2   : > { %v11536_v6 = vpop.f32.mrb[224].mxu0 }
 0xff3   : > { %v8227_v29 = vpop.f32.mrb[225].mxu0  ;;  %v8242_v59 = vpack.c.bf16 %v11536_v6, %v11536_v6 }
 0xff4   : > { %v11537_v24 = vpop.f32.mrb[226].mxu0 }
 0xff5   : > { %v8230_v61 = vpop.f32.mrb[227].mxu0 }
 0xff6   : > { %v8241_v23 = vpack.c.bf16 %v8230_v61, %v8227_v29 }
 0xffa   : > { %v11550_v18 = vpop.f32.mrb[228].mxu0 }
 0xffb   : > { %v8357_v34 = vpop.f32.mrb[229].mxu0  ;;  %v8372_v7 = vpack.c.bf16 %v11550_v18, %v11550_v18  ;;  %v9460_v18 = vld [vmem:[%s15006_s13 + $0x18] sm:$0xff] }
 0xffc   : > { %v11551_v13 = vpop.f32.mrb[230].mxu0 }
 0xffd   : > { %v8360_v20 = vpop.f32.mrb[231].mxu0  ;;  %v8438_v13 = vld [vmem:[%s15006_s13] sm:$0xff] }
 0xffe   : > { %v8371_v32 = vpack.c.bf16 %v8360_v20, %v8357_v34 }
0x10ac   : > { %v11452_v39 = vpop.f32.mrb[168].mxu1 }
0x10ad   : > { %v7447_v14 = vpop.f32.mrb[169].mxu1  ;;  %v7462_v17 = vpack.c.bf16 %v11452_v39, %v11452_v39 }
0x10ae   : > { %v11453_v22 = vpop.f32.mrb[170].mxu1 }
0x10af   : > { %v7450_v40 = vpop.f32.mrb[171].mxu1 }
0x10b0   : > { %v7461_v47 = vpack.c.bf16 %v7450_v40, %v7447_v14  ;;  %v9463_v14 = vld [vmem:[%s15006_s13 + $0x30] sm:$0xff] }
0x10b2   : > { %11456 = vmatprep.mubr.msk.bf16.mxu1 %vm924_vm3, %v7461_v47 }
0x10b3   : > { %11457 = vmatmul.mubr.msk.bf16.vlgmr.msra.gmra.mrb[164].mxu1 %vm924_vm3, %v7462_v17  ;;  %v9466_v17 = vld [vmem:[%s15006_s13 + $0x48] sm:$0xff] }
0x10b4   : > { %11469 = vmatpush3.bf16.msra.mxu1 %v7602_v62  ;;  %11470 = vmatprep.mubr.msk.bf16.mxu1 %vm924_vm3, %v7591_v45 }
0x10b5   : > { %11990 = vmatprep.subr.msk.bf16.mxu1 %vm940_vm2, %v9422_v42  ;;  %v9461_v42 = vld [vmem:[%s15006_s13 + $0x20] sm:$0xff] }
0x10bf   : > { %11471 = vmatmul.mubr.msk.bf16.vlgmr.msra.gmra.mrb[164].mxu1 %vm924_vm3, %v7592_v3 }
0x10c0   : > { %11483 = vmatpush3.bf16.msra.mxu1 %v7732_v52  ;;  %11484 = vmatprep.mubr.msk.bf16.mxu1 %vm924_vm3, %v7721_v38  ;;  %v12533_v38 = vmov 3  }
0x10c1   : > { %11992 = vmatprep.subr.msk.bf16.mxu1 %vm940_vm2, %v9429_v49  ;;  %v8439_v49 = vld [vmem:[%s15006_s13 + $0x8] sm:$0xff] }
0x10cb   : > { %11485 = vmatmul.mubr.msk.bf16.vlgmr.msra.gmra.mrb[164].mxu1 %vm924_vm3, %v7722_v60  ;;  %v9464_v60 = vld [vmem:[%s15006_s13 + $0x38] sm:$0xff] }
0x10cc   : > { %11497 = vmatpush3.bf16.msra.mxu1 %v7862_v56  ;;  %11498 = vmatprep.mubr.msk.bf16.mxu1 %vm924_vm3, %v7851_v50  ;;  %v12536_v50 = vmov 6   ;;  %v9462_v56 = vld [vmem:[%s15006_s13 + $0x28] sm:$0xf] }
0x10cd   : > { %11994 = vmatprep.subr.msk.bf16.mxu1 %vm940_vm2, %v9436_v19  ;;  %v8440_v19 = vld [vmem:[%s15006_s13 + $0x10] sm:$0xf] }
0x10d7   : > { %11499 = vmatmul.mubr.msk.bf16.vlgmr.msra.gmra.mrb[164].mxu1 %vm924_vm3, %v7852_v31 }
0x10d8   : > { %11511 = vmatpush3.bf16.msra.mxu1 %v7992_v41  ;;  %11512 = vmatprep.mubr.msk.bf16.mxu1 %vm924_vm3, %v7981_v33 }
0x10d9   : > { %11996 = vmatprep.subr.msk.bf16.mxu1 %vm940_vm2, %v9443_v55  ;;  %v9469_v55 = vld [vmem:[%s15006_s13 + $0x60] sm:$0xff] }
0x10e3   : > { %11513 = vmatmul.mubr.msk.bf16.vlgmr.msra.gmra.mrb[164].mxu1 %vm924_vm3, %v7982_v4  ;;  %v9467_v4 = vld [vmem:[%s15006_s13 + $0x50] sm:$0xff] }
0x10e4   : > { %11525 = vmatpush3.bf16.msra.mxu1 %v8122_v5  ;;  %11526 = vmatprep.mubr.msk.bf16.mxu1 %vm924_vm3, %v8111_v12  ;;  %v9465_v5 = vld [vmem:[%s15006_s13 + $0x40] sm:$0xf] }
0x10e5   : > { %11998 = vmatprep.subr.msk.bf16.mxu1 %vm940_vm2, %v9450_v54 }
0x10ef   : > { %11527 = vmatmul.mubr.msk.bf16.vlgmr.msra.gmra.mrb[164].mxu1 %vm924_vm3, %v8112_v57 }
0x10f0   : > { %11539 = vmatpush3.bf16.msra.mxu1 %v8252_v8  ;;  %11540 = vmatprep.mubr.msk.bf16.mxu1 %vm924_vm3, %v8241_v23 }
0x10f1   : > { %12000 = vmatprep.subr.msk.bf16.mxu1 %vm940_vm2, %v9457_v9 }
0x10fb   : > { %11541 = vmatmul.mubr.msk.bf16.vlgmr.msra.gmra.mrb[164].mxu1 %vm924_vm3, %v8242_v59 }
0x10fc   : > { %11553 = vmatpush3.bf16.msra.mxu1 %v8382_v27  ;;  %11554 = vmatprep.mubr.msk.bf16.mxu1 %vm924_vm3, %v8371_v32 }
0x1107   : > { %11555 = vmatmul.mubr.msk.bf16.vlgmr.msra.gmra.mrb[164].mxu1 %vm924_vm3, %v8372_v7  ;;  %v9470_v7 = vld [vmem:[%s15006_s13 + $0x68] sm:$0xff] }
0x11da   : > { %v11556_v63 = vpop.f32.mrb[164].mxu1 }
0x11db   : > { %v11587_v25 = vadd.f32 %v11556_v63, %v9397_v16  ;;  %v8418_v35 = vpop.f32.mrb[165].mxu1 }
0x11dc   : > { %v11557_v37 = vpop.f32.mrb[166].mxu1  ;;  %v11588_v43 = vadd.f32 %v9397_v16, %v8418_v35 }
0x11dd   : > { %v8437_v45 = vmax.f32 %v11587_v25, 0.0  ;;  %v8421_v48 = vpop.f32.mrb[167].mxu1  ;;  %v9472_v37 = vld [vmem:[%s15006_s13 + $0x78] sm:$0xff] }
0x11de   : > { %v8435_v51 = vmax.f32 %v11588_v43, 0.0  ;;  %v11589_v53 = vadd.f32 %v9397_v16, %v8421_v48  ;;  %v9471_v43 = vld [vmem:[%s15006_s13 + $0x70] sm:$0xf] }
0x11df   : > { %8475 = vperm.xlu1 %12084, %v8437_v45   ;;  %8453 = vperm.xlu0 %12083, %v8437_v45  }
0x11e0   : > { %v8436_v2 = vmax.f32 %v11589_v53, 0.0  ;;  %v9476_v53 = vld [vmem:[%s15006_s13 + $0x98] sm:$0xff] }
0x11e3   : > { %12085 = vset.pattern.permute.xlu1 %v12532_v11  ;;  %8443 = vperm.xlu0 %12083, %v8435_v51  }
0x11e4   : > { %8497 = vperm.xlu1 %12085, %v8437_v45  }
0x11e7   : > { %12090 = vset.pattern.permute.xlu0 %v12532_v11 }
0x11e8   : > { %12086 = vset.pattern.permute.xlu1 %v12533_v38  ;;  %8489 = vperm.xlu0 %12090, %v8435_v51  }
0x11e9   : > { %8519 = vperm.xlu1 %12086, %v8437_v45  }
0x11ec   : > { %12091 = vset.pattern.permute.xlu0 %v12533_v38 }
0x11ed   : > { %12087 = vset.pattern.permute.xlu1 %v12534_v26  ;;  %8511 = vperm.xlu0 %12091, %v8435_v51  }
0x11ee   : > { %8541 = vperm.xlu1 %12087, %v8437_v45  }
0x11f1   : > { %12092 = vset.pattern.permute.xlu0 %v12534_v26 }
0x11f2   : > { %12088 = vset.pattern.permute.xlu1 %v12535_v1  ;;  %8533 = vperm.xlu0 %12092, %v8435_v51  }
0x11f3   : > { %8563 = vperm.xlu1 %12088, %v8437_v45  }
0x11f6   : > { %12093 = vset.pattern.permute.xlu0 %v12535_v1 }
0x11f7   : > { %12089 = vset.pattern.permute.xlu1 %v12530_v0  ;;  %8555 = vperm.xlu0 %12093, %v8435_v51  }
0x11f8   : > { %8467 = vperm.xlu1 %12089, %v8435_v51  }
0x11fb   : > { %12094 = vset.pattern.permute.xlu0 %v12531_v15  ;;  %v9468_v15 = vld [vmem:[%s15006_s13 + $0x58] sm:$0xf] }
0x11fc   : > { %12096 = vset.pattern.permute.xlu1 %v12536_v50  ;;  %8448 = vperm.xlu0 %12094, %v8436_v2  }
0x11fd   : > { %8585 = vperm.xlu1 %12096, %v8437_v45  }
0x1200   : > { %12095 = vset.pattern.permute.xlu0 %v12536_v50 }
0x1201   : > { %12097 = vset.pattern.permute.xlu1 %v12530_v0  ;;  %8577 = vperm.xlu0 %12095, %v8435_v51  }
0x1202   : > { %8471 = vperm.xlu1 %12097, %v8436_v2  }
0x1205   : > { %12103 = vset.pattern.permute.xlu0 %v12537_v21 }
0x1206   : > { %12098 = vset.pattern.permute.xlu1 %v12532_v11  ;;  %8599 = vperm.xlu0 %12103, %v8435_v51  }
0x1207   : > { %8493 = vperm.xlu1 %12098, %v8436_v2  }
0x120b   : > { %12099 = vset.pattern.permute.xlu1 %v12533_v38 }
0x120c   : > { %8515 = vperm.xlu1 %12099, %v8436_v2  }
0x1210   : > { %12100 = vset.pattern.permute.xlu1 %v12534_v26 }
0x1211   : > { %8537 = vperm.xlu1 %12100, %v8436_v2  }
0x1215   : > { %12101 = vset.pattern.permute.xlu1 %v12535_v1  ;;  %v9475_v1 = vld [vmem:[%s15006_s13 + $0x90] sm:$0xff] }
0x1216   : > { %8559 = vperm.xlu1 %12101, %v8436_v2  }
0x121a   : > { %12102 = vset.pattern.permute.xlu1 %v12536_v50 }
0x121b   : > { %8581 = vperm.xlu1 %12102, %v8436_v2  }
0x121f   : > { %12104 = vset.pattern.permute.xlu1 %v12537_v21 }
0x1220   : > { %8603 = vperm.xlu1 %12104, %v8436_v2  }
0x1224   : > { %8607 = vperm.xlu1 %12104, %v8437_v45   ;;  %v9473_v45 = vld [vmem:[%s15006_s13 + $0x80] sm:$0xff] }
0x125e   : > { %v8476_v44 = vpop.permute.xlu1 %8475  ;;  %v8454_v30 = vpop.permute.xlu0 %8453 }
0x125f   : > { %v8480_v9 = vmul.f32 %v9462_v56, %v8476_v44  ;;  %v8458_v59 = vmul.f32 %v8454_v30, %v8440_v19  ;;  %v9474_v30 = vld [vmem:[%s15006_s13 + $0x88] sm:$0xf] }
0x1261   : > { %v8483_v38 = vadd.f32 %v8480_v9, %v8458_v59 }
0x1262   : > { %v8444_v28 = vpop.permute.xlu0 %8443 }
0x1263   : > { %v8498_v58 = vpop.permute.xlu1 %8497  ;;  %v8456_v39 = vmul.f32 %v8444_v28, %v8438_v13 }
0x1264   : > { %v8502_v35 = vmul.f32 %v9465_v5, %v8498_v58 }
0x1266   : > { %v8505_v44 = vadd.f32 %v8502_v35, %v8483_v38 }
0x1267   : > { %v8490_v12 = vpop.permute.xlu0 %8489 }
0x1268   : > { %v8520_v33 = vpop.permute.xlu1 %8519  ;;  %v8500_v47 = vmul.f32 %v9463_v14, %v8490_v12 }
0x1269   : > { %v8524_v26 = vmul.f32 %v9468_v15, %v8520_v33  ;;  %v9478_v33 = vld [vmem:[%s15006_s13 + $0xa8] sm:$0xff] }
0x126c   : > { %v8512_v24 = vpop.permute.xlu0 %8511 }
0x126d   : > { %v8542_v10 = vpop.permute.xlu1 %8541  ;;  %v8522_v31 = vmul.f32 %v9466_v17, %v8512_v24  ;;  %v9480_v17 = vld [vmem:[%s15006_s13 + $0xb8] sm:$0xf] }
0x126e   : > { %v8546_v58 = vmul.f32 %v9471_v43, %v8542_v10  ;;  %v9479_v10 = vld [vmem:[%s15006_s13 + $0xb0] sm:$0xff] }
0x1271   : > { %v8534_v23 = vpop.permute.xlu0 %8533 }
0x1272   : > { %v14859_v46 = vpop.permute.xlu1 %8563  ;;  %v8544_v16 = vmul.f32 %v9469_v55, %v8534_v23  ;;  %v8527_v23 = vadd.f32 %v8524_v26, %v8505_v44 }
0x1276   : > { %v8556_v32 = vpop.permute.xlu0 %8555 }
0x1277   : > { %v8468_v6 = vpop.permute.xlu1 %8467  ;;  %v8566_v2 = vmul.f32 %v9472_v37, %v8556_v32  ;;  %v8549_v32 = vadd.f32 %v8546_v58, %v8527_v23 }
0x1278   : > { %v8478_v20 = vmul.f32 %v9460_v18, %v8468_v6  ;;  %v9477_v18 = vld [vmem:[%s15006_s13 + $0xa0] sm:$0xf] }
0x127a   : > { %v8481_v40 = vadd.f32 %v8478_v20, %v8456_v39 }
0x127b   : > { %v8449_v62 = vpop.permute.xlu0 %8448 }
0x127c   : > { %v14861_v29 = vpop.permute.xlu1 %8585  ;;  %v8503_v3 = vadd.f32 %v8500_v47, %v8481_v40  ;;  %v8457_v57 = vmul.f32 %v8449_v62, %v8439_v49 }
0x127d   : > { %v8590_v14 = vmul.f32 %v9477_v18, %v14861_v29 }
0x127e   : > { %v8525_v54 = vadd.f32 %v8522_v31, %v8503_v3 }
0x1280   : > { %v8578_v27 = vpop.permute.xlu0 %8577  ;;  %v8547_v48 = vadd.f32 %v8544_v16, %v8525_v54 }
0x1281   : > { %v8472_v61 = vpop.permute.xlu1 %8471  ;;  %v8588_v6 = vmul.f32 %v9475_v1, %v8578_v27 }
0x1282   : > { %v8479_v41 = vmul.f32 %v9461_v42, %v8472_v61  ;;  %v8569_v12 = vadd.f32 %v8566_v2, %v8547_v48 }
0x1284   : > { %v8482_v63 = vadd.f32 %v8479_v41, %v8457_v57 }
0x1285   : > { %v8600_v28 = vpop.permute.xlu0 %8599 }
0x1286   : > { %v8494_v34 = vpop.permute.xlu1 %8493  ;;  %v8610_v13 = vmul.f32 %v9478_v33, %v8600_v28 }
0x1287   : > { %v8501_v8 = vmul.f32 %v9464_v60, %v8494_v34  ;;  %v8568_v34 = vmul.f32 %v9474_v30, %v14859_v46 }
0x1289   : > { %v8504_v51 = vadd.f32 %v8501_v8, %v8482_v63  ;;  %v8571_v62 = vadd.f32 %v8568_v34, %v8549_v32  ;;  %v8629_v8 = vld [vmem:[%s15051_s22] sm:$0x1]  ;;  %s12457_s22 = scalar_lea.vmem %s12456_s20, 32 }
0x128a   : > { %p12459_p1 = scmp.lt.s32.totalorder %s12457_s22, %s12451_s16 }
0x128b   : > { %v8516_v22 = vpop.permute.xlu1 %8515  ;;  %v8593_v49 = vadd.f32 %v8590_v14, %v8571_v62 }
0x128c   : > { %v8523_v25 = vmul.f32 %v9467_v4, %v8516_v22  ;;  %v8591_v22 = vadd.f32 %v8588_v6, %v8569_v12  ;;  %p12460_p6 = por %p12459_p1, %p12458_p13 }
0x128e   : > { %v8526_v50 = vadd.f32 %v8523_v25, %v8504_v51  ;;  %v8613_v42 = vadd.f32 %v8610_v13, %v8591_v22  ;;  %p12461_p9 = pnand %p12460_p6, %p12454_p11 }
0x1290   : > { %v8538_v52 = vpop.permute.xlu1 %8537  ;;  %v8617_v29 = vsel %vm8616_vm8, %v8613_v42, 0.0 }
0x1291   : > { %v8545_v11 = vmul.f32 %v9470_v7, %v8538_v52  ;;  %v8634_v7 = vld [vmem:[%s15052_s23] sm:$0x1] }
0x1293   : > { %v8548_v24 = vadd.f32 %v8545_v11, %v8526_v50 }
0x1295   : > { %v8560_v0 = vpop.permute.xlu1 %8559 }
0x1296   : > { %v8567_v21 = vmul.f32 %v9473_v45, %v8560_v0 }
0x1298   : > { %v8570_v20 = vadd.f32 %v8567_v21, %v8548_v24 }
0x129a   : > { %v8582_v36 = vpop.permute.xlu1 %8581 }
0x129b   : > { %v8589_v61 = vmul.f32 %v9476_v53, %v8582_v36 }
0x129d   : > { %v8592_v40 = vadd.f32 %v8589_v61, %v8570_v20 }
0x129f   : > { %v8604_v39 = vpop.permute.xlu1 %8603 }
0x12a0   : > { %v8611_v47 = vmul.f32 %v9479_v10, %v8604_v39 }
0x12a2   : > { %v8614_v3 = vadd.f32 %v8611_v47, %v8592_v40 }
0x12a3   : > { %v8608_v52 = vpop.permute.xlu1 %8607 }
0x12a4   : > { %v8618_v46 = vsel %vm8616_vm8, %v8614_v3, 0.0  ;;  %v8612_v60 = vmul.f32 %v9480_v17, %v8608_v52 }
0x12a5   : > { %v8619_v19 = vadd.f32 %v8618_v46, %v8617_v29 }
0x12a6   : > { %v8615_v56 = vadd.f32 %v8612_v60, %v8593_v49 }
0x12a8   : > { %v8621_v31 = vsel %vm8620_vm9, %v8615_v56, 0.0 }
0x12a9   : > { %v8622_v41 = vadd.f32 %v8621_v31, %v8619_v19 }
0x12ab   : > { %v8623_v55 = vrot.slane %v8622_v41, 4 }
0x12ad   : > { %v8624_v4 = vadd.f32 %v8623_v55, %v8622_v41 }
0x12af   : > { %v8625_v5 = vrot.slane %v8624_v4, 2 }
0x12b1   : > { %v8626_v54 = vadd.f32 %v8625_v5, %v8624_v4 }
0x12b3   : > { %v8627_v57 = vrot.slane %v8626_v54, 1 }
0x12b5   : > { %v8628_v9 = vadd.f32 %v8627_v57, %v8626_v54 }
0x12b7   : > { %v8630_v59 = vadd.f32 %v8629_v8, %v8628_v9 }
0x12b9   : > { %v8631_v27 = vpack.c.bf16 %v8630_v59, %v8630_v59 }
0x12bb   : > { %11561 = vmatmul.mubr.msk.bf16.vlgmr.msra.gmra.mrb[232].mxu0 %vm8616_vm8, %v8631_v27 }
0x138e   : > { %v8678_v0 = vpop.f32.mrb[232].mxu0 }
0x138f   : > { %v8679_v15 = vadd.f32 %v8678_v0, %v8634_v7  ;;  %v11562_v16 = vpop.f32.mrb[233].mxu0 }
0x1390   : > { %v8681_v63 = vpop.f32.mrb[234].mxu0 }
0x1391   : > { %v11563_v25 = vpop.f32.mrb[235].mxu0  ;;  %8685 = vst.msk [vmem:[%s585_s17] sm:$0x1] %vm8684_vm10, %v8679_v15 }
0x1392   : > { %12464 = shalt.err (!%p12461_p9)
}
0x1393   : > { %s12465_s30 = scalar_lea.hbm %s14951_s24, 16  ;;  %s12469_s23 = scalar_lea.hbm %s15054_s0, 32 }
0x1394   : > { %p12466_p2 = scmp.ne.s32.totalorder %s14951_s24, %s12465_s30  ;;  %p12470_p5 = scmp.lt.u32.totalorder %s14951_s24, %s15054_s0 }
0x1395   : > { %p12471_p10 = scmp.lt.u32.totalorder %s12469_s23, %s12465_s30  ;;  %p12473_p4 = scmp.lt.u32.totalorder %s12465_s30, %s14951_s24 }
0x1396   : > { %p12467_p0 = pnand %p12466_p2, %p15055_p7 }
0x1397   : > { %p12472_p12 = por %p12471_p10, %p12470_p5 }
0x1398   : > { %p12468_p3 = pneg %p12467_p0 }
0x1399   : > { %p12474_p8 = por %p12473_p4, %p12472_p12 }
0x139b   : > { %p12475_p11 = pnand %p12474_p8, %p12468_p3 }
0x139d   : > { %12478 = shalt.err (!%p12475_p11)
}
0x139e   : > { %12013 = dma.vmem_to_hbm [thread:$0]  (%p15055_p7), %s14953_s26, 16, %s14951_s24, %s8687_s28  }
0x139f PF: > { %s15056_s21 = sld [smem:[#allocation15_spill]]  ;;  %s15057_s29 = sld [smem:[#allocation12_spill]] }
0x13a0   : > { %s15058_s16 = sld [smem:[#allocation19_spill]] }
0x13a5   : > { %p12035_p13 = scmp.ge.s32.totalorder %s15056_s21, 2  ;;  %s8711_s25 = sand.u32 1, %s15057_s29  }
0x13a6   : > { %p15059_p1 = scmp.ne.s32.totalorder %s15058_s16, 0  ;;  %s8712_s20 = scalar_lea.sflag [#allocation4], %s8711_s25 }
0x13a8   : > { %p12026_p6 = pnand %p12035_p13, %p15059_p1 }
0x13aa   : > { %12504 = dma.done.wait (!%p12026_p6), %s8712_s20, 16  }
0x13ab   : > { %12506 = vsyncadd (!%p12026_p6), %s8712_s20, 4294967280  ;;  %s15060_s27 = sld [smem:[#allocation16_spill]]  ;;  %s15061_s24 = sld [smem:[#allocation13_spill]] }
0x13ac   : > { %s15062_s25 = sld [smem:[#allocation14_spill]]  ;;  %s15063_s26 = sld [smem:[#allocation17_spill]] }
0x13b1   : > { %p29_p9 = scmp.ge.s32.totalorder %s15060_s27, 4  }
0x13b3   :  { %31 = sbr.rel (!%p29_p9) target bundleno = 11 (0xb), region = 207 }
0x13ba   :  { %8716 = vsyncpa [#allocation3], 1 }
0x13bb   :  { %8718 = vsyncpa [#allocation3 + $0x1], 1 }
0x13bc   :  { %8719 = vsyncpa [#allocation6], 1 }
0x13bd   :  { %8720 = vsyncpa [#allocation4], 1 }
0x13be   :  { %8722 = vsyncpa [#allocation4 + $0x1], 1 }

</bundles_post_ra>
